<compile_context>
chip_gen: v5e
topology: v5e:2x2
jax: 0.10.0
libtpu: 0.0.40
codegen_flags: <defaults>
</compile_context>

<pallas_src>
import jax
import jax.numpy as jnp
from jax.experimental import pallas as pl
from jax.experimental.pallas import tpu as pltpu


def _make_decoder_kernel(B, S, H, V, L):
    """Fused teacher-forced decoder: one grid step == one decode step."""
    f32 = jnp.float32
    bf16 = jnp.bfloat16

    def kernel(tok_ref, *refs):
        # ---- unpack refs ----
        emb_ref, h0_ref, c0_ref, ctx0_ref, watch_ref, ea_ref = refs[:6]
        base = 6
        lstm_refs = []
        for l in range(L):
            n = 4 if l == 0 else 3
            lstm_refs.append(refs[base:base + n])
            base += n
        aw1h_ref, aw2_ref, ab2_ref = refs[base:base + 3]; base += 3
        (mw1h_ref, mw1c_ref, mb1_ref, mw2_ref, mb2_ref,
         mw3_ref, mb3_ref) = refs[base:base + 7]; base += 7
        logp_ref, attw_ref, hout_ref, cout_ref, ctxout_ref = refs[base:base + 5]; base += 5
        h_sc, c_sc, ctx_sc = refs[base:base + 3]

        t = pl.program_id(0)
        last = pl.num_programs(0) - 1

        # seed the carried LSTM/context state from the initial values on step 0
        @pl.when(t == 0)
        def _():
            h_sc[...] = h0_ref[...]
            c_sc[...] = c0_ref[...]
            ctx_sc[...] = ctx0_ref[...]

        # ---- embedding: direct row gather via scalar-prefetched token ids ----
        rows = [emb_ref[pl.ds(tok_ref[t, b], 1), :] for b in range(B)]
        emb_x = jnp.concatenate(rows, axis=0)                       # (B, H) f32

        x_e = emb_x.astype(bf16)
        x_c = ctx_sc[...].astype(bf16)                              # previous context

        # ---- stacked LSTM, one time step, PyTorch gate order (i, f, g, o) ----
        # cat([embed, context], dim=2) is realized as a split matmul per gate.
        lstm_out = None
        x_in = None
        for l in range(L):
            if l == 0:
                wxe_ref, wxc_ref, wh_ref, bg_ref = lstm_refs[0]
            else:
                wx_ref, wh_ref, bg_ref = lstm_refs[l]
            h_prev = h_sc[l]                                        # (B, H) f32
            c_prev = c_sc[l]
            h_bf = h_prev.astype(bf16)
            g = []
            for k in range(4):                                      # per-gate weights
                acc = bg_ref[k] + jnp.dot(h_bf, wh_ref[k],
                                          preferred_element_type=f32)
                if l == 0:
                    acc = acc + jnp.dot(x_e, wxe_ref[k], preferred_element_type=f32)
                    acc = acc + jnp.dot(x_c, wxc_ref[k], preferred_element_type=f32)
                else:
                    acc = acc + jnp.dot(x_in, wx_ref[k], preferred_element_type=f32)
                g.append(acc)
            i_g = jax.nn.sigmoid(g[0])
            f_g = jax.nn.sigmoid(g[1])
            g_g = jnp.tanh(g[2])
            o_g = jax.nn.sigmoid(g[3])
            c_new = f_g * c_prev + i_g * g_g
            h_new = o_g * jnp.tanh(c_new)
            h_sc[l] = h_new
            c_sc[l] = c_new
            x_in = h_new.astype(bf16)
            lstm_out = h_new                                        # top layer == output

        # ---- additive attention (annotation projection precomputed in wrapper) ----
        e_h = jnp.dot(lstm_out.astype(bf16), aw1h_ref[...],
                      preferred_element_type=f32)                   # (B, H)
        t_act = jnp.tanh(ea_ref[...] + e_h[:, None, :])             # (B, S, H) f32
        # second attention linear (H -> 1): elementwise multiply + lane reduce
        energies = jnp.sum(t_act * aw2_ref[...], axis=-1) + ab2_ref[...]   # (B, S)
        m = jnp.max(energies, axis=-1, keepdims=True)
        p = jnp.exp(energies - m)
        attn_w = p / jnp.sum(p, axis=-1, keepdims=True)             # softmax over S
        attw_ref[0] = attn_w                                        # (B, S) lane-dense

        context = jnp.einsum('bqs,bsh->bqh', attn_w[:, None, :], watch_ref[...],
                             preferred_element_type=f32).reshape(B, H)
        ctx_sc[...] = context

        # ---- MLP head (BatchNorm folded into the linears in the wrapper) ----
        z = (jnp.dot(lstm_out.astype(bf16), mw1h_ref[...], preferred_element_type=f32)
             + jnp.dot(context.astype(bf16), mw1c_ref[...], preferred_element_type=f32)
             + mb1_ref[...])
        z = jnp.maximum(z, 0.0)
        z = jnp.dot(z.astype(bf16), mw2_ref[...], preferred_element_type=f32) + mb2_ref[...]
        z = jnp.maximum(z, 0.0)
        z = jnp.dot(z.astype(bf16), mw3_ref[...], preferred_element_type=f32) + mb3_ref[...]

        # ---- log_softmax over vocab ----
        zm = jnp.max(z, axis=1, keepdims=True)
        zs = z - zm
        lse = jnp.log(jnp.sum(jnp.exp(zs), axis=1, keepdims=True))
        logp_ref[0] = zs - lse

        # write the final LSTM/context state once, at the last decode step
        @pl.when(t == last)
        def _():
            hout_ref[...] = h_sc[...]
            cout_ref[...] = c_sc[...]
            ctxout_ref[...] = ctx_sc[...]

    return kernel


def init_params(key, H, V, L):
    keys = iter(jax.random.split(key, 64))

    def rnd(shape, scale=0.1):
        return scale * jax.random.normal(next(keys), shape, dtype=jnp.float32)

    p = {}
    p["emb"] = rnd((V, H), 0.5)                    # nn.Embedding(V, H)
    p["lstm"] = []
    for l in range(L):
        in_l = 2 * H if l == 0 else H              # nn.LSTM(2H, H, L)
        p["lstm"].append(dict(
            wih_t=rnd((in_l, 4 * H)),
            whh_t=rnd((H, 4 * H)),
            b_ih=rnd((1, 4 * H)),
            b_hh=rnd((1, 4 * H)),
        ))
    p["attn"] = dict(                              # Linear(2H,H), Tanh, Linear(H,1)
        w1_t=rnd((2 * H, H)), b1=rnd((1, H)),
        w2=rnd((1, H)), b2=rnd((1, 1)),
    )
    p["mlp"] = dict(                               # Linear/BN/ReLU x2 + Linear(256, V)
        w1_t=rnd((2 * H, H)), b1=rnd((1, H)),
        bn1_gamma=1.0 + rnd((1, H)), bn1_beta=rnd((1, H)),
        w2_t=rnd((H, 256)), b2=rnd((1, 256)),
        bn2_gamma=1.0 + rnd((1, 256)), bn2_beta=rnd((1, 256)),
        w3_t=rnd((256, V)), b3=rnd((1, V)),
    )
    return p


def attention_decoder_decode(params, token_ids, hidden_state, cell_state,
                             watch_outputs, context, *,
                             hidden_size, output_size, num_layers):
    """Runs T teacher-forced decode steps of AttentionDecoder in one pallas_call."""
    T, B = token_ids.shape
    S = watch_outputs.shape[1]
    H, V, L = hidden_size, output_size, num_layers
    f32, bf16 = jnp.float32, jnp.bfloat16
    eps = 1e-5

    def gate_stack(w):                 # (rows, 4H) -> (4, rows, H), gate order (i,f,g,o)
        return jnp.stack([w[:, k * H:(k + 1) * H] for k in range(4)], axis=0)

    # ---- LSTM weights: per-gate stacked blocks, merged biases, bf16 weights ----
    lstm_args = []
    for l in range(L):
        lp = params["lstm"][l]
        wh_g = gate_stack(lp["whh_t"]).astype(bf16)                  # (4, H, H)
        b_g = gate_stack(lp["b_ih"] + lp["b_hh"]).astype(f32)        # (4, 1, H)
        if l == 0:
            wxe_g = gate_stack(lp["wih_t"][:H]).astype(bf16)         # embedding part
            wxc_g = gate_stack(lp["wih_t"][H:2 * H]).astype(bf16)    # context part
            lstm_args += [wxe_g, wxc_g, wh_g, b_g]
        else:
            wx_g = gate_stack(lp["wih_t"]).astype(bf16)
            lstm_args += [wx_g, wh_g, b_g]

    # ---- attention: hoist the step-invariant annotation projection ----
    at = params["attn"]
    aw1_h = at["w1_t"][:H].astype(bf16)                              # query projection
    e_a = (jnp.dot(watch_outputs.reshape(B * S, H), at["w1_t"][H:2 * H])
           + at["b1"]).reshape(B, S, H).astype(f32)
    aw2 = at["w2"].reshape(1, 1, H).astype(f32)                      # second linear (H->1)
    ab2 = at["b2"].reshape(1, 1).astype(f32)

    # ---- MLP: fold eval-mode BatchNorm (running mean=0, var=1) into the linears ----
    # TODO(synk): training-mode BatchNorm (batch statistics) not reproduced; eval semantics used.
    mlp = params["mlp"]
    s1 = mlp["bn1_gamma"] / jnp.sqrt(1.0 + eps)
    s2 = mlp["bn2_gamma"] / jnp.sqrt(1.0 + eps)
    mw1_h = (mlp["w1_t"][:H] * s1).astype(bf16)
    mw1_c = (mlp["w1_t"][H:2 * H] * s1).astype(bf16)
    mb1 = (mlp["b1"] * s1 + mlp["bn1_beta"]).astype(f32)
    mw2 = (mlp["w2_t"] * s2).astype(bf16)
    mb2 = (mlp["b2"] * s2 + mlp["bn2_beta"]).astype(f32)
    mw3 = mlp["w3_t"].astype(bf16)
    mb3 = mlp["b3"].astype(f32)

    args = [params["emb"].astype(f32),             # (V, H) embedding table (row gather)
            hidden_state.astype(f32),              # (L, B, H) initial hidden
            cell_state.astype(f32),                # (L, B, H) initial cell
            context.reshape(B, H).astype(f32),     # (B, H)   initial context
            watch_outputs.astype(f32),             # (B, S, H)
            e_a]                                   # (B, S, H) precomputed W_a @ ann + b
    args += lstm_args
    args += [aw1_h, aw2, ab2]
    args += [mw1_h, mw1_c, mb1, mw2, mb2, mw3, mb3]

    def resident_spec(a):
        zeros = (0,) * a.ndim
        return pl.BlockSpec(a.shape, lambda t, tok, _z=zeros: _z)   # resident across steps

    in_specs = [resident_spec(a) for a in args]
    out_specs = (
        pl.BlockSpec((1, B, V), lambda t, tok: (t, 0, 0)),          # per-step log-probs
        pl.BlockSpec((1, B, S), lambda t, tok: (t, 0, 0)),          # per-step attention
        pl.BlockSpec((L, B, H), lambda t, tok: (0, 0, 0)),          # final hidden
        pl.BlockSpec((L, B, H), lambda t, tok: (0, 0, 0)),          # final cell
        pl.BlockSpec((B, H), lambda t, tok: (0, 0)),                # final context
    )
    out_shapes = (
        jax.ShapeDtypeStruct((T, B, V), jnp.float32),
        jax.ShapeDtypeStruct((T, B, S), jnp.float32),
        jax.ShapeDtypeStruct((L, B, H), jnp.float32),
        jax.ShapeDtypeStruct((L, B, H), jnp.float32),
        jax.ShapeDtypeStruct((B, H), jnp.float32),
    )

    grid_spec = pltpu.PrefetchScalarGridSpec(
        num_scalar_prefetch=1,                      # token ids land in SMEM
        grid=(T,),
        in_specs=in_specs,
        out_specs=out_specs,
        scratch_shapes=[pltpu.VMEM((L, B, H), jnp.float32),   # h carry
                        pltpu.VMEM((L, B, H), jnp.float32),   # c carry
                        pltpu.VMEM((B, H), jnp.float32)],     # context carry
    )

    kernel = _make_decoder_kernel(B, S, H, V, L)
    logp, attw, h_new, c_new, ctx_new = pl.pallas_call(
        kernel,
        out_shape=out_shapes,
        grid_spec=grid_spec,
        compiler_params=pltpu.CompilerParams(
            dimension_semantics=("arbitrary",),     # sequential state carry over steps
            vmem_limit_bytes=64 * 1024 * 1024),
    )(token_ids.astype(jnp.int32), *args)

    return (jnp.transpose(logp, (1, 0, 2)),         # (B, T, V) log-probs per step
            h_new, c_new,                           # (L, B, H) final LSTM state
            ctx_new.reshape(B, 1, H),               # final context
            jnp.transpose(attw, (1, 0, 2)))         # (B, T, S) attention weights


if __name__ == "__main__":
    # batch, watch seq len, hidden, vocab, lstm layers, decode steps
    B, S, H, V, L, T = 2, 8, 32, 48, 3, 6
    key = jax.random.PRNGKey(0)
    k_ids, k_h, k_w, k_p = jax.random.split(key, 4)

    # teacher-forced inputs: step-0 token is <sos>, then the target tokens
    token_ids = jax.random.randint(k_ids, (T, B), 0, V, dtype=jnp.int32)
    hidden_state = 0.1 * jax.random.normal(k_h, (L, B, H), dtype=jnp.float32)
    cell_state = jnp.zeros((L, B, H), dtype=jnp.float32)
    watch_outputs = jax.random.normal(k_w, (B, S, H), dtype=jnp.float32)
    context0 = jnp.zeros((B, 1, H), dtype=jnp.float32)

    params = init_params(k_p, H, V, L)

    outs = attention_decoder_decode(
        params, token_ids, hidden_state, cell_state, watch_outputs, context0,
        hidden_size=H, output_size=V, num_layers=L)
    jax.block_until_ready(outs)

    logp, h_new, c_new, ctx_new, attn_w = outs
    assert logp.shape == (B, T, V)
    assert h_new.shape == (L, B, H) and c_new.shape == (L, B, H)
    assert ctx_new.shape == (B, 1, H)
    assert attn_w.shape == (B, T, S)
    assert bool(jnp.all(jnp.isfinite(logp)))
    assert bool(jnp.allclose(jnp.exp(logp).sum(-1), 1.0, atol=1e-3))
    assert bool(jnp.allclose(attn_w.sum(-1), 1.0, atol=1e-3))
    print("KERNEL_OK")
</pallas_src>

<mosaic_0001>
module attributes {stable_mosaic.version = 11 : i64} {
  func.func @kernel(%arg0: i32, %arg1: memref<6x2xi32, #tpu.memory_space<smem>>, %arg2: memref<48x32xf32, #tpu.memory_space<vmem>>, %arg3: memref<3x2x32xf32, #tpu.memory_space<vmem>>, %arg4: memref<3x2x32xf32, #tpu.memory_space<vmem>>, %arg5: memref<2x32xf32, #tpu.memory_space<vmem>>, %arg6: memref<2x8x32xf32, #tpu.memory_space<vmem>>, %arg7: memref<2x8x32xf32, #tpu.memory_space<vmem>>, %arg8: memref<4x32x32xbf16, #tpu.memory_space<vmem>>, %arg9: memref<4x32x32xbf16, #tpu.memory_space<vmem>>, %arg10: memref<4x32x32xbf16, #tpu.memory_space<vmem>>, %arg11: memref<4x1x32xf32, #tpu.memory_space<vmem>>, %arg12: memref<4x32x32xbf16, #tpu.memory_space<vmem>>, %arg13: memref<4x32x32xbf16, #tpu.memory_space<vmem>>, %arg14: memref<4x1x32xf32, #tpu.memory_space<vmem>>, %arg15: memref<4x32x32xbf16, #tpu.memory_space<vmem>>, %arg16: memref<4x32x32xbf16, #tpu.memory_space<vmem>>, %arg17: memref<4x1x32xf32, #tpu.memory_space<vmem>>, %arg18: memref<32x32xbf16, #tpu.memory_space<vmem>>, %arg19: memref<1x1x32xf32, #tpu.memory_space<vmem>>, %arg20: memref<1x1xf32, #tpu.memory_space<vmem>>, %arg21: memref<32x32xbf16, #tpu.memory_space<vmem>>, %arg22: memref<32x32xbf16, #tpu.memory_space<vmem>>, %arg23: memref<1x32xf32, #tpu.memory_space<vmem>>, %arg24: memref<32x256xbf16, #tpu.memory_space<vmem>>, %arg25: memref<1x256xf32, #tpu.memory_space<vmem>>, %arg26: memref<256x48xbf16, #tpu.memory_space<vmem>>, %arg27: memref<1x48xf32, #tpu.memory_space<vmem>>, %arg28: memref<1x2x48xf32, #tpu.memory_space<vmem>>, %arg29: memref<1x2x8xf32, #tpu.memory_space<vmem>>, %arg30: memref<3x2x32xf32, #tpu.memory_space<vmem>>, %arg31: memref<3x2x32xf32, #tpu.memory_space<vmem>>, %arg32: memref<2x32xf32, #tpu.memory_space<vmem>>, %arg33: memref<3x2x32xf32, #tpu.memory_space<vmem>>, %arg34: memref<3x2x32xf32, #tpu.memory_space<vmem>>, %arg35: memref<2x32xf32, #tpu.memory_space<vmem>>) attributes {dimension_semantics = [#tpu.dimension_semantics<arbitrary>], iteration_bounds = array<i64: 6>, scalar_prefetch = 1 : i64, scratch_operands = 3 : i64, tpu.core_type = #tpu.core_type<tc>, window_params = [{pipeline_mode = #tpu.pipeline_mode<synchronous>, transform_indices = @transform_0, window_bounds = array<i64: 48, 32>}, {pipeline_mode = #tpu.pipeline_mode<synchronous>, transform_indices = @transform_1, window_bounds = array<i64: 3, 2, 32>}, {pipeline_mode = #tpu.pipeline_mode<synchronous>, transform_indices = @transform_2, window_bounds = array<i64: 3, 2, 32>}, {pipeline_mode = #tpu.pipeline_mode<synchronous>, transform_indices = @transform_3, window_bounds = array<i64: 2, 32>}, {pipeline_mode = #tpu.pipeline_mode<synchronous>, transform_indices = @transform_4, window_bounds = array<i64: 2, 8, 32>}, {pipeline_mode = #tpu.pipeline_mode<synchronous>, transform_indices = @transform_5, window_bounds = array<i64: 2, 8, 32>}, {pipeline_mode = #tpu.pipeline_mode<synchronous>, transform_indices = @transform_6, window_bounds = array<i64: 4, 32, 32>}, {pipeline_mode = #tpu.pipeline_mode<synchronous>, transform_indices = @transform_7, window_bounds = array<i64: 4, 32, 32>}, {pipeline_mode = #tpu.pipeline_mode<synchronous>, transform_indices = @transform_8, window_bounds = array<i64: 4, 32, 32>}, {pipeline_mode = #tpu.pipeline_mode<synchronous>, transform_indices = @transform_9, window_bounds = array<i64: 4, 1, 32>}, {pipeline_mode = #tpu.pipeline_mode<synchronous>, transform_indices = @transform_10, window_bounds = array<i64: 4, 32, 32>}, {pipeline_mode = #tpu.pipeline_mode<synchronous>, transform_indices = @transform_11, window_bounds = array<i64: 4, 32, 32>}, {pipeline_mode = #tpu.pipeline_mode<synchronous>, transform_indices = @transform_12, window_bounds = array<i64: 4, 1, 32>}, {pipeline_mode = #tpu.pipeline_mode<synchronous>, transform_indices = @transform_13, window_bounds = array<i64: 4, 32, 32>}, {pipeline_mode = #tpu.pipeline_mode<synchronous>, transform_indices = @transform_14, window_bounds = array<i64: 4, 32, 32>}, {pipeline_mode = #tpu.pipeline_mode<synchronous>, transform_indices = @transform_15, window_bounds = array<i64: 4, 1, 32>}, {pipeline_mode = #tpu.pipeline_mode<synchronous>, transform_indices = @transform_16, window_bounds = array<i64: 32, 32>}, {pipeline_mode = #tpu.pipeline_mode<synchronous>, transform_indices = @transform_17, window_bounds = array<i64: 1, 1, 32>}, {pipeline_mode = #tpu.pipeline_mode<synchronous>, transform_indices = @transform_18, window_bounds = array<i64: 1, 1>}, {pipeline_mode = #tpu.pipeline_mode<synchronous>, transform_indices = @transform_19, window_bounds = array<i64: 32, 32>}, {pipeline_mode = #tpu.pipeline_mode<synchronous>, transform_indices = @transform_20, window_bounds = array<i64: 32, 32>}, {pipeline_mode = #tpu.pipeline_mode<synchronous>, transform_indices = @transform_21, window_bounds = array<i64: 1, 32>}, {pipeline_mode = #tpu.pipeline_mode<synchronous>, transform_indices = @transform_22, window_bounds = array<i64: 32, 256>}, {pipeline_mode = #tpu.pipeline_mode<synchronous>, transform_indices = @transform_23, window_bounds = array<i64: 1, 256>}, {pipeline_mode = #tpu.pipeline_mode<synchronous>, transform_indices = @transform_24, window_bounds = array<i64: 256, 48>}, {pipeline_mode = #tpu.pipeline_mode<synchronous>, transform_indices = @transform_25, window_bounds = array<i64: 1, 48>}, {transform_indices = @transform_26, window_bounds = array<i64: 1, 2, 48>}, {transform_indices = @transform_27, window_bounds = array<i64: 1, 2, 8>}, {pipeline_mode = #tpu.pipeline_mode<synchronous>, transform_indices = @transform_28, window_bounds = array<i64: 3, 2, 32>}, {pipeline_mode = #tpu.pipeline_mode<synchronous>, transform_indices = @transform_29, window_bounds = array<i64: 3, 2, 32>}, {pipeline_mode = #tpu.pipeline_mode<synchronous>, transform_indices = @transform_30, window_bounds = array<i64: 2, 32>}]} {
    %c0_i32 = arith.constant 0 : i32
    %0 = arith.cmpi eq, %arg0, %c0_i32 : i32
    %1 = arith.extui %0 : i1 to i32
    %c0_i32_0 = arith.constant 0 : i32
    %2 = arith.cmpi ne, %1, %c0_i32_0 : i32
    scf.if %2 {
      %c0_244 = arith.constant 0 : index
      %c0_245 = arith.constant 0 : index
      %c0_246 = arith.constant 0 : index
      %335 = vector.load %arg3[%c0_244, %c0_245, %c0_246] : memref<3x2x32xf32, #tpu.memory_space<vmem>>, vector<3x2x32xf32>
      %c0_247 = arith.constant 0 : index
      %c0_248 = arith.constant 0 : index
      %c0_249 = arith.constant 0 : index
      %336 = vector.load %arg33[%c0_247, %c0_248, %c0_249] : memref<3x2x32xf32, #tpu.memory_space<vmem>>, vector<3x2x32xf32>
      tpu.vector_store %arg33[%c0_247, %c0_248, %c0_249], %335 {strides = array<i32>} : memref<3x2x32xf32, #tpu.memory_space<vmem>>, vector<3x2x32xf32>,
      %c0_250 = arith.constant 0 : index
      %c0_251 = arith.constant 0 : index
      %c0_252 = arith.constant 0 : index
      %337 = vector.load %arg4[%c0_250, %c0_251, %c0_252] : memref<3x2x32xf32, #tpu.memory_space<vmem>>, vector<3x2x32xf32>
      %c0_253 = arith.constant 0 : index
      %c0_254 = arith.constant 0 : index
      %c0_255 = arith.constant 0 : index
      %338 = vector.load %arg34[%c0_253, %c0_254, %c0_255] : memref<3x2x32xf32, #tpu.memory_space<vmem>>, vector<3x2x32xf32>
      tpu.vector_store %arg34[%c0_253, %c0_254, %c0_255], %337 {strides = array<i32>} : memref<3x2x32xf32, #tpu.memory_space<vmem>>, vector<3x2x32xf32>,
      %c0_256 = arith.constant 0 : index
      %c0_257 = arith.constant 0 : index
      %339 = vector.load %arg5[%c0_256, %c0_257] : memref<2x32xf32, #tpu.memory_space<vmem>>, vector<2x32xf32>
      %c0_258 = arith.constant 0 : index
      %c0_259 = arith.constant 0 : index
      %340 = vector.load %arg35[%c0_258, %c0_259] : memref<2x32xf32, #tpu.memory_space<vmem>>, vector<2x32xf32>
      tpu.vector_store %arg35[%c0_258, %c0_259], %339 {strides = array<i32>} : memref<2x32xf32, #tpu.memory_space<vmem>>, vector<2x32xf32>,
    } else {
    }
    %3 = arith.index_cast %arg0 : i32 to index
    %c0 = arith.constant 0 : index
    %4 = memref.load %arg1[%3, %c0] : memref<6x2xi32, #tpu.memory_space<smem>>
    %5 = arith.index_cast %4 : i32 to index
    %c0_1 = arith.constant 0 : index
    %6 = vector.load %arg2[%5, %c0_1] : memref<48x32xf32, #tpu.memory_space<vmem>>, vector<1x32xf32>
    %7 = arith.index_cast %arg0 : i32 to index
    %c1 = arith.constant 1 : index
    %8 = memref.load %arg1[%7, %c1] : memref<6x2xi32, #tpu.memory_space<smem>>
    %9 = arith.index_cast %8 : i32 to index
    %c0_2 = arith.constant 0 : index
    %10 = vector.load %arg2[%9, %c0_2] : memref<48x32xf32, #tpu.memory_space<vmem>>, vector<1x32xf32>
    %11 = tpu.concatenate %6, %10 in 0 : vector<1x32xf32>, vector<1x32xf32> -> vector<2x32xf32>
    %12 = arith.truncf %11 : vector<2x32xf32> to vector<2x32xbf16>
    %c0_3 = arith.constant 0 : index
    %c0_4 = arith.constant 0 : index
    %13 = vector.load %arg35[%c0_3, %c0_4] : memref<2x32xf32, #tpu.memory_space<vmem>>, vector<2x32xf32>
    %14 = arith.truncf %13 : vector<2x32xf32> to vector<2x32xbf16>
    %c0_5 = arith.constant 0 : index
    %c0_6 = arith.constant 0 : index
    %c0_7 = arith.constant 0 : index
    %15 = vector.load %arg33[%c0_5, %c0_6, %c0_7] : memref<3x2x32xf32, #tpu.memory_space<vmem>>, vector<1x2x32xf32>
    %16 = vector.shape_cast %15 : vector<1x2x32xf32> to vector<2x32xf32>
    %c0_8 = arith.constant 0 : index
    %c0_9 = arith.constant 0 : index
    %c0_10 = arith.constant 0 : index
    %17 = vector.load %arg34[%c0_8, %c0_9, %c0_10] : memref<3x2x32xf32, #tpu.memory_space<vmem>>, vector<1x2x32xf32>
    %18 = vector.shape_cast %17 : vector<1x2x32xf32> to vector<2x32xf32>
    %19 = arith.truncf %16 : vector<2x32xf32> to vector<2x32xbf16>
    %c0_11 = arith.constant 0 : index
    %c0_12 = arith.constant 0 : index
    %c0_13 = arith.constant 0 : index
    %20 = vector.load %arg11[%c0_11, %c0_12, %c0_13] : memref<4x1x32xf32, #tpu.memory_space<vmem>>, vector<1x1x32xf32>
    %21 = vector.shape_cast %20 : vector<1x1x32xf32> to vector<1x32xf32>
    %c0_14 = arith.constant 0 : index
    %c0_15 = arith.constant 0 : index
    %c0_16 = arith.constant 0 : index
    %22 = vector.load %arg10[%c0_14, %c0_15, %c0_16] : memref<4x32x32xbf16, #tpu.memory_space<vmem>>, vector<1x32x32xbf16>
    %23 = vector.shape_cast %22 : vector<1x32x32xbf16> to vector<32x32xbf16>
    %cst = arith.constant dense<0.000000e+00> : vector<2x32xf32>
    %24 = tpu.matmul %19, %23, %cst {dimension_numbers = #tpu.dot_dimension_numbers<[1], [0], [0], [1], [0, 0, 1, 1], [], []>} : vector<2x32xbf16>, vector<32x32xbf16>, vector<2x32xf32> -> vector<2x32xf32>
    %25 = vector.broadcast %21 : vector<1x32xf32> to vector<2x32xf32>
    %26 = arith.addf %25, %24 : vector<2x32xf32>
    %c0_17 = arith.constant 0 : index
    %c0_18 = arith.constant 0 : index
    %c0_19 = arith.constant 0 : index
    %27 = vector.load %arg8[%c0_17, %c0_18, %c0_19] : memref<4x32x32xbf16, #tpu.memory_space<vmem>>, vector<1x32x32xbf16>
    %28 = vector.shape_cast %27 : vector<1x32x32xbf16> to vector<32x32xbf16>
    %cst_20 = arith.constant dense<0.000000e+00> : vector<2x32xf32>
    %29 = tpu.matmul %12, %28, %cst_20 {dimension_numbers = #tpu.dot_dimension_numbers<[1], [0], [0], [1], [0, 0, 1, 1], [], []>} : vector<2x32xbf16>, vector<32x32xbf16>, vector<2x32xf32> -> vector<2x32xf32>
    %30 = arith.addf %26, %29 : vector<2x32xf32>
    %c0_21 = arith.constant 0 : index
    %c0_22 = arith.constant 0 : index
    %c0_23 = arith.constant 0 : index
    %31 = vector.load %arg9[%c0_21, %c0_22, %c0_23] : memref<4x32x32xbf16, #tpu.memory_space<vmem>>, vector<1x32x32xbf16>
    %32 = vector.shape_cast %31 : vector<1x32x32xbf16> to vector<32x32xbf16>
    %cst_24 = arith.constant dense<0.000000e+00> : vector<2x32xf32>
    %33 = tpu.matmul %14, %32, %cst_24 {dimension_numbers = #tpu.dot_dimension_numbers<[1], [0], [0], [1], [0, 0, 1, 1], [], []>} : vector<2x32xbf16>, vector<32x32xbf16>, vector<2x32xf32> -> vector<2x32xf32>
    %34 = arith.addf %30, %33 : vector<2x32xf32>
    %c1_25 = arith.constant 1 : index
    %c0_26 = arith.constant 0 : index
    %c0_27 = arith.constant 0 : index
    %35 = vector.load %arg11[%c1_25, %c0_26, %c0_27] : memref<4x1x32xf32, #tpu.memory_space<vmem>>, vector<1x1x32xf32>
    %36 = vector.shape_cast %35 : vector<1x1x32xf32> to vector<1x32xf32>
    %c1_28 = arith.constant 1 : index
    %c0_29 = arith.constant 0 : index
    %c0_30 = arith.constant 0 : index
    %37 = vector.load %arg10[%c1_28, %c0_29, %c0_30] : memref<4x32x32xbf16, #tpu.memory_space<vmem>>, vector<1x32x32xbf16>
    %38 = vector.shape_cast %37 : vector<1x32x32xbf16> to vector<32x32xbf16>
    %cst_31 = arith.constant dense<0.000000e+00> : vector<2x32xf32>
    %39 = tpu.matmul %19, %38, %cst_31 {dimension_numbers = #tpu.dot_dimension_numbers<[1], [0], [0], [1], [0, 0, 1, 1], [], []>} : vector<2x32xbf16>, vector<32x32xbf16>, vector<2x32xf32> -> vector<2x32xf32>
    %40 = vector.broadcast %36 : vector<1x32xf32> to vector<2x32xf32>
    %41 = arith.addf %40, %39 : vector<2x32xf32>
    %c1_32 = arith.constant 1 : index
    %c0_33 = arith.constant 0 : index
    %c0_34 = arith.constant 0 : index
    %42 = vector.load %arg8[%c1_32, %c0_33, %c0_34] : memref<4x32x32xbf16, #tpu.memory_space<vmem>>, vector<1x32x32xbf16>
    %43 = vector.shape_cast %42 : vector<1x32x32xbf16> to vector<32x32xbf16>
    %cst_35 = arith.constant dense<0.000000e+00> : vector<2x32xf32>
    %44 = tpu.matmul %12, %43, %cst_35 {dimension_numbers = #tpu.dot_dimension_numbers<[1], [0], [0], [1], [0, 0, 1, 1], [], []>} : vector<2x32xbf16>, vector<32x32xbf16>, vector<2x32xf32> -> vector<2x32xf32>
    %45 = arith.addf %41, %44 : vector<2x32xf32>
    %c1_36 = arith.constant 1 : index
    %c0_37 = arith.constant 0 : index
    %c0_38 = arith.constant 0 : index
    %46 = vector.load %arg9[%c1_36, %c0_37, %c0_38] : memref<4x32x32xbf16, #tpu.memory_space<vmem>>, vector<1x32x32xbf16>
    %47 = vector.shape_cast %46 : vector<1x32x32xbf16> to vector<32x32xbf16>
    %cst_39 = arith.constant dense<0.000000e+00> : vector<2x32xf32>
    %48 = tpu.matmul %14, %47, %cst_39 {dimension_numbers = #tpu.dot_dimension_numbers<[1], [0], [0], [1], [0, 0, 1, 1], [], []>} : vector<2x32xbf16>, vector<32x32xbf16>, vector<2x32xf32> -> vector<2x32xf32>
    %49 = arith.addf %45, %48 : vector<2x32xf32>
    %c2 = arith.constant 2 : index
    %c0_40 = arith.constant 0 : index
    %c0_41 = arith.constant 0 : index
    %50 = vector.load %arg11[%c2, %c0_40, %c0_41] : memref<4x1x32xf32, #tpu.memory_space<vmem>>, vector<1x1x32xf32>
    %51 = vector.shape_cast %50 : vector<1x1x32xf32> to vector<1x32xf32>
    %c2_42 = arith.constant 2 : index
    %c0_43 = arith.constant 0 : index
    %c0_44 = arith.constant 0 : index
    %52 = vector.load %arg10[%c2_42, %c0_43, %c0_44] : memref<4x32x32xbf16, #tpu.memory_space<vmem>>, vector<1x32x32xbf16>
    %53 = vector.shape_cast %52 : vector<1x32x32xbf16> to vector<32x32xbf16>
    %cst_45 = arith.constant dense<0.000000e+00> : vector<2x32xf32>
    %54 = tpu.matmul %19, %53, %cst_45 {dimension_numbers = #tpu.dot_dimension_numbers<[1], [0], [0], [1], [0, 0, 1, 1], [], []>} : vector<2x32xbf16>, vector<32x32xbf16>, vector<2x32xf32> -> vector<2x32xf32>
    %55 = vector.broadcast %51 : vector<1x32xf32> to vector<2x32xf32>
    %56 = arith.addf %55, %54 : vector<2x32xf32>
    %c2_46 = arith.constant 2 : index
    %c0_47 = arith.constant 0 : index
    %c0_48 = arith.constant 0 : index
    %57 = vector.load %arg8[%c2_46, %c0_47, %c0_48] : memref<4x32x32xbf16, #tpu.memory_space<vmem>>, vector<1x32x32xbf16>
    %58 = vector.shape_cast %57 : vector<1x32x32xbf16> to vector<32x32xbf16>
    %cst_49 = arith.constant dense<0.000000e+00> : vector<2x32xf32>
    %59 = tpu.matmul %12, %58, %cst_49 {dimension_numbers = #tpu.dot_dimension_numbers<[1], [0], [0], [1], [0, 0, 1, 1], [], []>} : vector<2x32xbf16>, vector<32x32xbf16>, vector<2x32xf32> -> vector<2x32xf32>
    %60 = arith.addf %56, %59 : vector<2x32xf32>
    %c2_50 = arith.constant 2 : index
    %c0_51 = arith.constant 0 : index
    %c0_52 = arith.constant 0 : index
    %61 = vector.load %arg9[%c2_50, %c0_51, %c0_52] : memref<4x32x32xbf16, #tpu.memory_space<vmem>>, vector<1x32x32xbf16>
    %62 = vector.shape_cast %61 : vector<1x32x32xbf16> to vector<32x32xbf16>
    %cst_53 = arith.constant dense<0.000000e+00> : vector<2x32xf32>
    %63 = tpu.matmul %14, %62, %cst_53 {dimension_numbers = #tpu.dot_dimension_numbers<[1], [0], [0], [1], [0, 0, 1, 1], [], []>} : vector<2x32xbf16>, vector<32x32xbf16>, vector<2x32xf32> -> vector<2x32xf32>
    %64 = arith.addf %60, %63 : vector<2x32xf32>
    %c3 = arith.constant 3 : index
    %c0_54 = arith.constant 0 : index
    %c0_55 = arith.constant 0 : index
    %65 = vector.load %arg11[%c3, %c0_54, %c0_55] : memref<4x1x32xf32, #tpu.memory_space<vmem>>, vector<1x1x32xf32>
    %66 = vector.shape_cast %65 : vector<1x1x32xf32> to vector<1x32xf32>
    %c3_56 = arith.constant 3 : index
    %c0_57 = arith.constant 0 : index
    %c0_58 = arith.constant 0 : index
    %67 = vector.load %arg10[%c3_56, %c0_57, %c0_58] : memref<4x32x32xbf16, #tpu.memory_space<vmem>>, vector<1x32x32xbf16>
    %68 = vector.shape_cast %67 : vector<1x32x32xbf16> to vector<32x32xbf16>
    %cst_59 = arith.constant dense<0.000000e+00> : vector<2x32xf32>
    %69 = tpu.matmul %19, %68, %cst_59 {dimension_numbers = #tpu.dot_dimension_numbers<[1], [0], [0], [1], [0, 0, 1, 1], [], []>} : vector<2x32xbf16>, vector<32x32xbf16>, vector<2x32xf32> -> vector<2x32xf32>
    %70 = vector.broadcast %66 : vector<1x32xf32> to vector<2x32xf32>
    %71 = arith.addf %70, %69 : vector<2x32xf32>
    %c3_60 = arith.constant 3 : index
    %c0_61 = arith.constant 0 : index
    %c0_62 = arith.constant 0 : index
    %72 = vector.load %arg8[%c3_60, %c0_61, %c0_62] : memref<4x32x32xbf16, #tpu.memory_space<vmem>>, vector<1x32x32xbf16>
    %73 = vector.shape_cast %72 : vector<1x32x32xbf16> to vector<32x32xbf16>
    %cst_63 = arith.constant dense<0.000000e+00> : vector<2x32xf32>
    %74 = tpu.matmul %12, %73, %cst_63 {dimension_numbers = #tpu.dot_dimension_numbers<[1], [0], [0], [1], [0, 0, 1, 1], [], []>} : vector<2x32xbf16>, vector<32x32xbf16>, vector<2x32xf32> -> vector<2x32xf32>
    %75 = arith.addf %71, %74 : vector<2x32xf32>
    %c3_64 = arith.constant 3 : index
    %c0_65 = arith.constant 0 : index
    %c0_66 = arith.constant 0 : index
    %76 = vector.load %arg9[%c3_64, %c0_65, %c0_66] : memref<4x32x32xbf16, #tpu.memory_space<vmem>>, vector<1x32x32xbf16>
    %77 = vector.shape_cast %76 : vector<1x32x32xbf16> to vector<32x32xbf16>
    %cst_67 = arith.constant dense<0.000000e+00> : vector<2x32xf32>
    %78 = tpu.matmul %14, %77, %cst_67 {dimension_numbers = #tpu.dot_dimension_numbers<[1], [0], [0], [1], [0, 0, 1, 1], [], []>} : vector<2x32xbf16>, vector<32x32xbf16>, vector<2x32xf32> -> vector<2x32xf32>
    %79 = arith.addf %75, %78 : vector<2x32xf32>
    %80 = arith.negf %34 : vector<2x32xf32>
    %81 = math.exp %80 : vector<2x32xf32>
    %cst_68 = arith.constant 1.000000e+00 : f32
    %82 = vector.broadcast %cst_68 : f32 to vector<2x32xf32>
    %83 = arith.addf %82, %81 : vector<2x32xf32>
    %84 = arith.divf %82, %83 : vector<2x32xf32>
    %85 = arith.negf %49 : vector<2x32xf32>
    %86 = math.exp %85 : vector<2x32xf32>
    %cst_69 = arith.constant 1.000000e+00 : f32
    %87 = vector.broadcast %cst_69 : f32 to vector<2x32xf32>
    %88 = arith.addf %87, %86 : vector<2x32xf32>
    %89 = arith.divf %87, %88 : vector<2x32xf32>
    %90 = math.tanh %64 : vector<2x32xf32>
    %91 = arith.negf %79 : vector<2x32xf32>
    %92 = math.exp %91 : vector<2x32xf32>
    %cst_70 = arith.constant 1.000000e+00 : f32
    %93 = vector.broadcast %cst_70 : f32 to vector<2x32xf32>
    %94 = arith.addf %93, %92 : vector<2x32xf32>
    %95 = arith.divf %93, %94 : vector<2x32xf32>
    %96 = arith.mulf %89, %18 : vector<2x32xf32>
    %97 = arith.mulf %84, %90 : vector<2x32xf32>
    %98 = arith.addf %96, %97 : vector<2x32xf32>
    %99 = math.tanh %98 : vector<2x32xf32>
    %100 = arith.mulf %95, %99 : vector<2x32xf32>
    %c0_71 = arith.constant 0 : index
    %c0_72 = arith.constant 0 : index
    %c0_73 = arith.constant 0 : index
    %101 = vector.load %arg33[%c0_71, %c0_72, %c0_73] : memref<3x2x32xf32, #tpu.memory_space<vmem>>, vector<1x2x32xf32>
    %102 = vector.shape_cast %101 : vector<1x2x32xf32> to vector<2x32xf32>
    %103 = vector.shape_cast %100 : vector<2x32xf32> to vector<1x2x32xf32>
    tpu.vector_store %arg33[%c0_71, %c0_72, %c0_73], %103 {strides = array<i32>} : memref<3x2x32xf32, #tpu.memory_space<vmem>>, vector<1x2x32xf32>,
    %c0_74 = arith.constant 0 : index
    %c0_75 = arith.constant 0 : index
    %c0_76 = arith.constant 0 : index
    %104 = vector.load %arg34[%c0_74, %c0_75, %c0_76] : memref<3x2x32xf32, #tpu.memory_space<vmem>>, vector<1x2x32xf32>
    %105 = vector.shape_cast %104 : vector<1x2x32xf32> to vector<2x32xf32>
    %106 = vector.shape_cast %98 : vector<2x32xf32> to vector<1x2x32xf32>
    tpu.vector_store %arg34[%c0_74, %c0_75, %c0_76], %106 {strides = array<i32>} : memref<3x2x32xf32, #tpu.memory_space<vmem>>, vector<1x2x32xf32>,
    %107 = arith.truncf %100 : vector<2x32xf32> to vector<2x32xbf16>
    %c1_77 = arith.constant 1 : index
    %c0_78 = arith.constant 0 : index
    %c0_79 = arith.constant 0 : index
    %108 = vector.load %arg33[%c1_77, %c0_78, %c0_79] : memref<3x2x32xf32, #tpu.memory_space<vmem>>, vector<1x2x32xf32>
    %109 = vector.shape_cast %108 : vector<1x2x32xf32> to vector<2x32xf32>
    %c1_80 = arith.constant 1 : index
    %c0_81 = arith.constant 0 : index
    %c0_82 = arith.constant 0 : index
    %110 = vector.load %arg34[%c1_80, %c0_81, %c0_82] : memref<3x2x32xf32, #tpu.memory_space<vmem>>, vector<1x2x32xf32>
    %111 = vector.shape_cast %110 : vector<1x2x32xf32> to vector<2x32xf32>
    %112 = arith.truncf %109 : vector<2x32xf32> to vector<2x32xbf16>
    %c0_83 = arith.constant 0 : index
    %c0_84 = arith.constant 0 : index
    %c0_85 = arith.constant 0 : index
    %113 = vector.load %arg14[%c0_83, %c0_84, %c0_85] : memref<4x1x32xf32, #tpu.memory_space<vmem>>, vector<1x1x32xf32>
    %114 = vector.shape_cast %113 : vector<1x1x32xf32> to vector<1x32xf32>
    %c0_86 = arith.constant 0 : index
    %c0_87 = arith.constant 0 : index
    %c0_88 = arith.constant 0 : index
    %115 = vector.load %arg13[%c0_86, %c0_87, %c0_88] : memref<4x32x32xbf16, #tpu.memory_space<vmem>>, vector<1x32x32xbf16>
    %116 = vector.shape_cast %115 : vector<1x32x32xbf16> to vector<32x32xbf16>
    %cst_89 = arith.constant dense<0.000000e+00> : vector<2x32xf32>
    %117 = tpu.matmul %112, %116, %cst_89 {dimension_numbers = #tpu.dot_dimension_numbers<[1], [0], [0], [1], [0, 0, 1, 1], [], []>} : vector<2x32xbf16>, vector<32x32xbf16>, vector<2x32xf32> -> vector<2x32xf32>
    %118 = vector.broadcast %114 : vector<1x32xf32> to vector<2x32xf32>
    %119 = arith.addf %118, %117 : vector<2x32xf32>
    %c0_90 = arith.constant 0 : index
    %c0_91 = arith.constant 0 : index
    %c0_92 = arith.constant 0 : index
    %120 = vector.load %arg12[%c0_90, %c0_91, %c0_92] : memref<4x32x32xbf16, #tpu.memory_space<vmem>>, vector<1x32x32xbf16>
    %121 = vector.shape_cast %120 : vector<1x32x32xbf16> to vector<32x32xbf16>
    %cst_93 = arith.constant dense<0.000000e+00> : vector<2x32xf32>
    %122 = tpu.matmul %107, %121, %cst_93 {dimension_numbers = #tpu.dot_dimension_numbers<[1], [0], [0], [1], [0, 0, 1, 1], [], []>} : vector<2x32xbf16>, vector<32x32xbf16>, vector<2x32xf32> -> vector<2x32xf32>
    %123 = arith.addf %119, %122 : vector<2x32xf32>
    %c1_94 = arith.constant 1 : index
    %c0_95 = arith.constant 0 : index
    %c0_96 = arith.constant 0 : index
    %124 = vector.load %arg14[%c1_94, %c0_95, %c0_96] : memref<4x1x32xf32, #tpu.memory_space<vmem>>, vector<1x1x32xf32>
    %125 = vector.shape_cast %124 : vector<1x1x32xf32> to vector<1x32xf32>
    %c1_97 = arith.constant 1 : index
    %c0_98 = arith.constant 0 : index
    %c0_99 = arith.constant 0 : index
    %126 = vector.load %arg13[%c1_97, %c0_98, %c0_99] : memref<4x32x32xbf16, #tpu.memory_space<vmem>>, vector<1x32x32xbf16>
    %127 = vector.shape_cast %126 : vector<1x32x32xbf16> to vector<32x32xbf16>
    %cst_100 = arith.constant dense<0.000000e+00> : vector<2x32xf32>
    %128 = tpu.matmul %112, %127, %cst_100 {dimension_numbers = #tpu.dot_dimension_numbers<[1], [0], [0], [1], [0, 0, 1, 1], [], []>} : vector<2x32xbf16>, vector<32x32xbf16>, vector<2x32xf32> -> vector<2x32xf32>
    %129 = vector.broadcast %125 : vector<1x32xf32> to vector<2x32xf32>
    %130 = arith.addf %129, %128 : vector<2x32xf32>
    %c1_101 = arith.constant 1 : index
    %c0_102 = arith.constant 0 : index
    %c0_103 = arith.constant 0 : index
    %131 = vector.load %arg12[%c1_101, %c0_102, %c0_103] : memref<4x32x32xbf16, #tpu.memory_space<vmem>>, vector<1x32x32xbf16>
    %132 = vector.shape_cast %131 : vector<1x32x32xbf16> to vector<32x32xbf16>
    %cst_104 = arith.constant dense<0.000000e+00> : vector<2x32xf32>
    %133 = tpu.matmul %107, %132, %cst_104 {dimension_numbers = #tpu.dot_dimension_numbers<[1], [0], [0], [1], [0, 0, 1, 1], [], []>} : vector<2x32xbf16>, vector<32x32xbf16>, vector<2x32xf32> -> vector<2x32xf32>
    %134 = arith.addf %130, %133 : vector<2x32xf32>
    %c2_105 = arith.constant 2 : index
    %c0_106 = arith.constant 0 : index
    %c0_107 = arith.constant 0 : index
    %135 = vector.load %arg14[%c2_105, %c0_106, %c0_107] : memref<4x1x32xf32, #tpu.memory_space<vmem>>, vector<1x1x32xf32>
    %136 = vector.shape_cast %135 : vector<1x1x32xf32> to vector<1x32xf32>
    %c2_108 = arith.constant 2 : index
    %c0_109 = arith.constant 0 : index
    %c0_110 = arith.constant 0 : index
    %137 = vector.load %arg13[%c2_108, %c0_109, %c0_110] : memref<4x32x32xbf16, #tpu.memory_space<vmem>>, vector<1x32x32xbf16>
    %138 = vector.shape_cast %137 : vector<1x32x32xbf16> to vector<32x32xbf16>
    %cst_111 = arith.constant dense<0.000000e+00> : vector<2x32xf32>
    %139 = tpu.matmul %112, %138, %cst_111 {dimension_numbers = #tpu.dot_dimension_numbers<[1], [0], [0], [1], [0, 0, 1, 1], [], []>} : vector<2x32xbf16>, vector<32x32xbf16>, vector<2x32xf32> -> vector<2x32xf32>
    %140 = vector.broadcast %136 : vector<1x32xf32> to vector<2x32xf32>
    %141 = arith.addf %140, %139 : vector<2x32xf32>
    %c2_112 = arith.constant 2 : index
    %c0_113 = arith.constant 0 : index
    %c0_114 = arith.constant 0 : index
    %142 = vector.load %arg12[%c2_112, %c0_113, %c0_114] : memref<4x32x32xbf16, #tpu.memory_space<vmem>>, vector<1x32x32xbf16>
    %143 = vector.shape_cast %142 : vector<1x32x32xbf16> to vector<32x32xbf16>
    %cst_115 = arith.constant dense<0.000000e+00> : vector<2x32xf32>
    %144 = tpu.matmul %107, %143, %cst_115 {dimension_numbers = #tpu.dot_dimension_numbers<[1], [0], [0], [1], [0, 0, 1, 1], [], []>} : vector<2x32xbf16>, vector<32x32xbf16>, vector<2x32xf32> -> vector<2x32xf32>
    %145 = arith.addf %141, %144 : vector<2x32xf32>
    %c3_116 = arith.constant 3 : index
    %c0_117 = arith.constant 0 : index
    %c0_118 = arith.constant 0 : index
    %146 = vector.load %arg14[%c3_116, %c0_117, %c0_118] : memref<4x1x32xf32, #tpu.memory_space<vmem>>, vector<1x1x32xf32>
    %147 = vector.shape_cast %146 : vector<1x1x32xf32> to vector<1x32xf32>
    %c3_119 = arith.constant 3 : index
    %c0_120 = arith.constant 0 : index
    %c0_121 = arith.constant 0 : index
    %148 = vector.load %arg13[%c3_119, %c0_120, %c0_121] : memref<4x32x32xbf16, #tpu.memory_space<vmem>>, vector<1x32x32xbf16>
    %149 = vector.shape_cast %148 : vector<1x32x32xbf16> to vector<32x32xbf16>
    %cst_122 = arith.constant dense<0.000000e+00> : vector<2x32xf32>
    %150 = tpu.matmul %112, %149, %cst_122 {dimension_numbers = #tpu.dot_dimension_numbers<[1], [0], [0], [1], [0, 0, 1, 1], [], []>} : vector<2x32xbf16>, vector<32x32xbf16>, vector<2x32xf32> -> vector<2x32xf32>
    %151 = vector.broadcast %147 : vector<1x32xf32> to vector<2x32xf32>
    %152 = arith.addf %151, %150 : vector<2x32xf32>
    %c3_123 = arith.constant 3 : index
    %c0_124 = arith.constant 0 : index
    %c0_125 = arith.constant 0 : index
    %153 = vector.load %arg12[%c3_123, %c0_124, %c0_125] : memref<4x32x32xbf16, #tpu.memory_space<vmem>>, vector<1x32x32xbf16>
    %154 = vector.shape_cast %153 : vector<1x32x32xbf16> to vector<32x32xbf16>
    %cst_126 = arith.constant dense<0.000000e+00> : vector<2x32xf32>
    %155 = tpu.matmul %107, %154, %cst_126 {dimension_numbers = #tpu.dot_dimension_numbers<[1], [0], [0], [1], [0, 0, 1, 1], [], []>} : vector<2x32xbf16>, vector<32x32xbf16>, vector<2x32xf32> -> vector<2x32xf32>
    %156 = arith.addf %152, %155 : vector<2x32xf32>
    %157 = arith.negf %123 : vector<2x32xf32>
    %158 = math.exp %157 : vector<2x32xf32>
    %cst_127 = arith.constant 1.000000e+00 : f32
    %159 = vector.broadcast %cst_127 : f32 to vector<2x32xf32>
    %160 = arith.addf %159, %158 : vector<2x32xf32>
    %161 = arith.divf %159, %160 : vector<2x32xf32>
    %162 = arith.negf %134 : vector<2x32xf32>
    %163 = math.exp %162 : vector<2x32xf32>
    %cst_128 = arith.constant 1.000000e+00 : f32
    %164 = vector.broadcast %cst_128 : f32 to vector<2x32xf32>
    %165 = arith.addf %164, %163 : vector<2x32xf32>
    %166 = arith.divf %164, %165 : vector<2x32xf32>
    %167 = math.tanh %145 : vector<2x32xf32>
    %168 = arith.negf %156 : vector<2x32xf32>
    %169 = math.exp %168 : vector<2x32xf32>
    %cst_129 = arith.constant 1.000000e+00 : f32
    %170 = vector.broadcast %cst_129 : f32 to vector<2x32xf32>
    %171 = arith.addf %170, %169 : vector<2x32xf32>
    %172 = arith.divf %170, %171 : vector<2x32xf32>
    %173 = arith.mulf %166, %111 : vector<2x32xf32>
    %174 = arith.mulf %161, %167 : vector<2x32xf32>
    %175 = arith.addf %173, %174 : vector<2x32xf32>
    %176 = math.tanh %175 : vector<2x32xf32>
    %177 = arith.mulf %172, %176 : vector<2x32xf32>
    %c1_130 = arith.constant 1 : index
    %c0_131 = arith.constant 0 : index
    %c0_132 = arith.constant 0 : index
    %178 = vector.load %arg33[%c1_130, %c0_131, %c0_132] : memref<3x2x32xf32, #tpu.memory_space<vmem>>, vector<1x2x32xf32>
    %179 = vector.shape_cast %178 : vector<1x2x32xf32> to vector<2x32xf32>
    %180 = vector.shape_cast %177 : vector<2x32xf32> to vector<1x2x32xf32>
    tpu.vector_store %arg33[%c1_130, %c0_131, %c0_132], %180 {strides = array<i32>} : memref<3x2x32xf32, #tpu.memory_space<vmem>>, vector<1x2x32xf32>,
    %c1_133 = arith.constant 1 : index
    %c0_134 = arith.constant 0 : index
    %c0_135 = arith.constant 0 : index
    %181 = vector.load %arg34[%c1_133, %c0_134, %c0_135] : memref<3x2x32xf32, #tpu.memory_space<vmem>>, vector<1x2x32xf32>
    %182 = vector.shape_cast %181 : vector<1x2x32xf32> to vector<2x32xf32>
    %183 = vector.shape_cast %175 : vector<2x32xf32> to vector<1x2x32xf32>
    tpu.vector_store %arg34[%c1_133, %c0_134, %c0_135], %183 {strides = array<i32>} : memref<3x2x32xf32, #tpu.memory_space<vmem>>, vector<1x2x32xf32>,
    %184 = arith.truncf %177 : vector<2x32xf32> to vector<2x32xbf16>
    %c2_136 = arith.constant 2 : index
    %c0_137 = arith.constant 0 : index
    %c0_138 = arith.constant 0 : index
    %185 = vector.load %arg33[%c2_136, %c0_137, %c0_138] : memref<3x2x32xf32, #tpu.memory_space<vmem>>, vector<1x2x32xf32>
    %186 = vector.shape_cast %185 : vector<1x2x32xf32> to vector<2x32xf32>
    %c2_139 = arith.constant 2 : index
    %c0_140 = arith.constant 0 : index
    %c0_141 = arith.constant 0 : index
    %187 = vector.load %arg34[%c2_139, %c0_140, %c0_141] : memref<3x2x32xf32, #tpu.memory_space<vmem>>, vector<1x2x32xf32>
    %188 = vector.shape_cast %187 : vector<1x2x32xf32> to vector<2x32xf32>
    %189 = arith.truncf %186 : vector<2x32xf32> to vector<2x32xbf16>
    %c0_142 = arith.constant 0 : index
    %c0_143 = arith.constant 0 : index
    %c0_144 = arith.constant 0 : index
    %190 = vector.load %arg17[%c0_142, %c0_143, %c0_144] : memref<4x1x32xf32, #tpu.memory_space<vmem>>, vector<1x1x32xf32>
    %191 = vector.shape_cast %190 : vector<1x1x32xf32> to vector<1x32xf32>
    %c0_145 = arith.constant 0 : index
    %c0_146 = arith.constant 0 : index
    %c0_147 = arith.constant 0 : index
    %192 = vector.load %arg16[%c0_145, %c0_146, %c0_147] : memref<4x32x32xbf16, #tpu.memory_space<vmem>>, vector<1x32x32xbf16>
    %193 = vector.shape_cast %192 : vector<1x32x32xbf16> to vector<32x32xbf16>
    %cst_148 = arith.constant dense<0.000000e+00> : vector<2x32xf32>
    %194 = tpu.matmul %189, %193, %cst_148 {dimension_numbers = #tpu.dot_dimension_numbers<[1], [0], [0], [1], [0, 0, 1, 1], [], []>} : vector<2x32xbf16>, vector<32x32xbf16>, vector<2x32xf32> -> vector<2x32xf32>
    %195 = vector.broadcast %191 : vector<1x32xf32> to vector<2x32xf32>
    %196 = arith.addf %195, %194 : vector<2x32xf32>
    %c0_149 = arith.constant 0 : index
    %c0_150 = arith.constant 0 : index
    %c0_151 = arith.constant 0 : index
    %197 = vector.load %arg15[%c0_149, %c0_150, %c0_151] : memref<4x32x32xbf16, #tpu.memory_space<vmem>>, vector<1x32x32xbf16>
    %198 = vector.shape_cast %197 : vector<1x32x32xbf16> to vector<32x32xbf16>
    %cst_152 = arith.constant dense<0.000000e+00> : vector<2x32xf32>
    %199 = tpu.matmul %184, %198, %cst_152 {dimension_numbers = #tpu.dot_dimension_numbers<[1], [0], [0], [1], [0, 0, 1, 1], [], []>} : vector<2x32xbf16>, vector<32x32xbf16>, vector<2x32xf32> -> vector<2x32xf32>
    %200 = arith.addf %196, %199 : vector<2x32xf32>
    %c1_153 = arith.constant 1 : index
    %c0_154 = arith.constant 0 : index
    %c0_155 = arith.constant 0 : index
    %201 = vector.load %arg17[%c1_153, %c0_154, %c0_155] : memref<4x1x32xf32, #tpu.memory_space<vmem>>, vector<1x1x32xf32>
    %202 = vector.shape_cast %201 : vector<1x1x32xf32> to vector<1x32xf32>
    %c1_156 = arith.constant 1 : index
    %c0_157 = arith.constant 0 : index
    %c0_158 = arith.constant 0 : index
    %203 = vector.load %arg16[%c1_156, %c0_157, %c0_158] : memref<4x32x32xbf16, #tpu.memory_space<vmem>>, vector<1x32x32xbf16>
    %204 = vector.shape_cast %203 : vector<1x32x32xbf16> to vector<32x32xbf16>
    %cst_159 = arith.constant dense<0.000000e+00> : vector<2x32xf32>
    %205 = tpu.matmul %189, %204, %cst_159 {dimension_numbers = #tpu.dot_dimension_numbers<[1], [0], [0], [1], [0, 0, 1, 1], [], []>} : vector<2x32xbf16>, vector<32x32xbf16>, vector<2x32xf32> -> vector<2x32xf32>
    %206 = vector.broadcast %202 : vector<1x32xf32> to vector<2x32xf32>
    %207 = arith.addf %206, %205 : vector<2x32xf32>
    %c1_160 = arith.constant 1 : index
    %c0_161 = arith.constant 0 : index
    %c0_162 = arith.constant 0 : index
    %208 = vector.load %arg15[%c1_160, %c0_161, %c0_162] : memref<4x32x32xbf16, #tpu.memory_space<vmem>>, vector<1x32x32xbf16>
    %209 = vector.shape_cast %208 : vector<1x32x32xbf16> to vector<32x32xbf16>
    %cst_163 = arith.constant dense<0.000000e+00> : vector<2x32xf32>
    %210 = tpu.matmul %184, %209, %cst_163 {dimension_numbers = #tpu.dot_dimension_numbers<[1], [0], [0], [1], [0, 0, 1, 1], [], []>} : vector<2x32xbf16>, vector<32x32xbf16>, vector<2x32xf32> -> vector<2x32xf32>
    %211 = arith.addf %207, %210 : vector<2x32xf32>
    %c2_164 = arith.constant 2 : index
    %c0_165 = arith.constant 0 : index
    %c0_166 = arith.constant 0 : index
    %212 = vector.load %arg17[%c2_164, %c0_165, %c0_166] : memref<4x1x32xf32, #tpu.memory_space<vmem>>, vector<1x1x32xf32>
    %213 = vector.shape_cast %212 : vector<1x1x32xf32> to vector<1x32xf32>
    %c2_167 = arith.constant 2 : index
    %c0_168 = arith.constant 0 : index
    %c0_169 = arith.constant 0 : index
    %214 = vector.load %arg16[%c2_167, %c0_168, %c0_169] : memref<4x32x32xbf16, #tpu.memory_space<vmem>>, vector<1x32x32xbf16>
    %215 = vector.shape_cast %214 : vector<1x32x32xbf16> to vector<32x32xbf16>
    %cst_170 = arith.constant dense<0.000000e+00> : vector<2x32xf32>
    %216 = tpu.matmul %189, %215, %cst_170 {dimension_numbers = #tpu.dot_dimension_numbers<[1], [0], [0], [1], [0, 0, 1, 1], [], []>} : vector<2x32xbf16>, vector<32x32xbf16>, vector<2x32xf32> -> vector<2x32xf32>
    %217 = vector.broadcast %213 : vector<1x32xf32> to vector<2x32xf32>
    %218 = arith.addf %217, %216 : vector<2x32xf32>
    %c2_171 = arith.constant 2 : index
    %c0_172 = arith.constant 0 : index
    %c0_173 = arith.constant 0 : index
    %219 = vector.load %arg15[%c2_171, %c0_172, %c0_173] : memref<4x32x32xbf16, #tpu.memory_space<vmem>>, vector<1x32x32xbf16>
    %220 = vector.shape_cast %219 : vector<1x32x32xbf16> to vector<32x32xbf16>
    %cst_174 = arith.constant dense<0.000000e+00> : vector<2x32xf32>
    %221 = tpu.matmul %184, %220, %cst_174 {dimension_numbers = #tpu.dot_dimension_numbers<[1], [0], [0], [1], [0, 0, 1, 1], [], []>} : vector<2x32xbf16>, vector<32x32xbf16>, vector<2x32xf32> -> vector<2x32xf32>
    %222 = arith.addf %218, %221 : vector<2x32xf32>
    %c3_175 = arith.constant 3 : index
    %c0_176 = arith.constant 0 : index
    %c0_177 = arith.constant 0 : index
    %223 = vector.load %arg17[%c3_175, %c0_176, %c0_177] : memref<4x1x32xf32, #tpu.memory_space<vmem>>, vector<1x1x32xf32>
    %224 = vector.shape_cast %223 : vector<1x1x32xf32> to vector<1x32xf32>
    %c3_178 = arith.constant 3 : index
    %c0_179 = arith.constant 0 : index
    %c0_180 = arith.constant 0 : index
    %225 = vector.load %arg16[%c3_178, %c0_179, %c0_180] : memref<4x32x32xbf16, #tpu.memory_space<vmem>>, vector<1x32x32xbf16>
    %226 = vector.shape_cast %225 : vector<1x32x32xbf16> to vector<32x32xbf16>
    %cst_181 = arith.constant dense<0.000000e+00> : vector<2x32xf32>
    %227 = tpu.matmul %189, %226, %cst_181 {dimension_numbers = #tpu.dot_dimension_numbers<[1], [0], [0], [1], [0, 0, 1, 1], [], []>} : vector<2x32xbf16>, vector<32x32xbf16>, vector<2x32xf32> -> vector<2x32xf32>
    %228 = vector.broadcast %224 : vector<1x32xf32> to vector<2x32xf32>
    %229 = arith.addf %228, %227 : vector<2x32xf32>
    %c3_182 = arith.constant 3 : index
    %c0_183 = arith.constant 0 : index
    %c0_184 = arith.constant 0 : index
    %230 = vector.load %arg15[%c3_182, %c0_183, %c0_184] : memref<4x32x32xbf16, #tpu.memory_space<vmem>>, vector<1x32x32xbf16>
    %231 = vector.shape_cast %230 : vector<1x32x32xbf16> to vector<32x32xbf16>
    %cst_185 = arith.constant dense<0.000000e+00> : vector<2x32xf32>
    %232 = tpu.matmul %184, %231, %cst_185 {dimension_numbers = #tpu.dot_dimension_numbers<[1], [0], [0], [1], [0, 0, 1, 1], [], []>} : vector<2x32xbf16>, vector<32x32xbf16>, vector<2x32xf32> -> vector<2x32xf32>
    %233 = arith.addf %229, %232 : vector<2x32xf32>
    %234 = arith.negf %200 : vector<2x32xf32>
    %235 = math.exp %234 : vector<2x32xf32>
    %cst_186 = arith.constant 1.000000e+00 : f32
    %236 = vector.broadcast %cst_186 : f32 to vector<2x32xf32>
    %237 = arith.addf %236, %235 : vector<2x32xf32>
    %238 = arith.divf %236, %237 : vector<2x32xf32>
    %239 = arith.negf %211 : vector<2x32xf32>
    %240 = math.exp %239 : vector<2x32xf32>
    %cst_187 = arith.constant 1.000000e+00 : f32
    %241 = vector.broadcast %cst_187 : f32 to vector<2x32xf32>
    %242 = arith.addf %241, %240 : vector<2x32xf32>
    %243 = arith.divf %241, %242 : vector<2x32xf32>
    %244 = math.tanh %222 : vector<2x32xf32>
    %245 = arith.negf %233 : vector<2x32xf32>
    %246 = math.exp %245 : vector<2x32xf32>
    %cst_188 = arith.constant 1.000000e+00 : f32
    %247 = vector.broadcast %cst_188 : f32 to vector<2x32xf32>
    %248 = arith.addf %247, %246 : vector<2x32xf32>
    %249 = arith.divf %247, %248 : vector<2x32xf32>
    %250 = arith.mulf %243, %188 : vector<2x32xf32>
    %251 = arith.mulf %238, %244 : vector<2x32xf32>
    %252 = arith.addf %250, %251 : vector<2x32xf32>
    %253 = math.tanh %252 : vector<2x32xf32>
    %254 = arith.mulf %249, %253 : vector<2x32xf32>
    %c2_189 = arith.constant 2 : index
    %c0_190 = arith.constant 0 : index
    %c0_191 = arith.constant 0 : index
    %255 = vector.load %arg33[%c2_189, %c0_190, %c0_191] : memref<3x2x32xf32, #tpu.memory_space<vmem>>, vector<1x2x32xf32>
    %256 = vector.shape_cast %255 : vector<1x2x32xf32> to vector<2x32xf32>
    %257 = vector.shape_cast %254 : vector<2x32xf32> to vector<1x2x32xf32>
    tpu.vector_store %arg33[%c2_189, %c0_190, %c0_191], %257 {strides = array<i32>} : memref<3x2x32xf32, #tpu.memory_space<vmem>>, vector<1x2x32xf32>,
    %c2_192 = arith.constant 2 : index
    %c0_193 = arith.constant 0 : index
    %c0_194 = arith.constant 0 : index
    %258 = vector.load %arg34[%c2_192, %c0_193, %c0_194] : memref<3x2x32xf32, #tpu.memory_space<vmem>>, vector<1x2x32xf32>
    %259 = vector.shape_cast %258 : vector<1x2x32xf32> to vector<2x32xf32>
    %260 = vector.shape_cast %252 : vector<2x32xf32> to vector<1x2x32xf32>
    tpu.vector_store %arg34[%c2_192, %c0_193, %c0_194], %260 {strides = array<i32>} : memref<3x2x32xf32, #tpu.memory_space<vmem>>, vector<1x2x32xf32>,
    %261 = arith.truncf %254 : vector<2x32xf32> to vector<2x32xbf16>
    %c0_195 = arith.constant 0 : index
    %c0_196 = arith.constant 0 : index
    %262 = vector.load %arg18[%c0_195, %c0_196] : memref<32x32xbf16, #tpu.memory_space<vmem>>, vector<32x32xbf16>
    %cst_197 = arith.constant dense<0.000000e+00> : vector<2x32xf32>
    %263 = tpu.matmul %261, %262, %cst_197 {dimension_numbers = #tpu.dot_dimension_numbers<[1], [0], [0], [1], [0, 0, 1, 1], [], []>} : vector<2x32xbf16>, vector<32x32xbf16>, vector<2x32xf32> -> vector<2x32xf32>
    %c0_198 = arith.constant 0 : index
    %c0_199 = arith.constant 0 : index
    %c0_200 = arith.constant 0 : index
    %264 = vector.load %arg7[%c0_198, %c0_199, %c0_200] : memref<2x8x32xf32, #tpu.memory_space<vmem>>, vector<2x8x32xf32>
    %265 = vector.shape_cast %263 : vector<2x32xf32> to vector<2x1x32xf32>
    %266 = vector.broadcast %265 : vector<2x1x32xf32> to vector<2x8x32xf32>
    %267 = arith.addf %264, %266 : vector<2x8x32xf32>
    %268 = math.tanh %267 : vector<2x8x32xf32>
    %c0_201 = arith.constant 0 : index
    %c0_202 = arith.constant 0 : index
    %c0_203 = arith.constant 0 : index
    %269 = vector.load %arg19[%c0_201, %c0_202, %c0_203] : memref<1x1x32xf32, #tpu.memory_space<vmem>>, vector<1x1x32xf32>
    %270 = vector.broadcast %269 : vector<1x1x32xf32> to vector<2x8x32xf32>
    %271 = arith.mulf %268, %270 : vector<2x8x32xf32>
    %cst_204 = arith.constant dense<0.000000e+00> : vector<2x8xf32>
    %272 = vector.multi_reduction <add>, %271, %cst_204 [2] : vector<2x8x32xf32> to vector<2x8xf32>
    %c0_205 = arith.constant 0 : index
    %c0_206 = arith.constant 0 : index
    %273 = vector.load %arg20[%c0_205, %c0_206] : memref<1x1xf32, #tpu.memory_space<vmem>>, vector<1x1xf32>
    %274 = vector.broadcast %273 : vector<1x1xf32> to vector<2x8xf32>
    %275 = arith.addf %272, %274 : vector<2x8xf32>
    %cst_207 = arith.constant dense<0xFF800000> : vector<2xf32>
    %276 = vector.multi_reduction <maximumf>, %275, %cst_207 [1] : vector<2x8xf32> to vector<2xf32>
    %277 = vector.shape_cast %276 : vector<2xf32> to vector<2x1xf32>
    %278 = vector.broadcast %277 : vector<2x1xf32> to vector<2x8xf32>
    %279 = arith.subf %275, %278 : vector<2x8xf32>
    %280 = math.exp %279 : vector<2x8xf32>
    %cst_208 = arith.constant dense<0.000000e+00> : vector<2xf32>
    %281 = vector.multi_reduction <add>, %280, %cst_208 [1] : vector<2x8xf32> to vector<2xf32>
    %282 = vector.shape_cast %281 : vector<2xf32> to vector<2x1xf32>
    %283 = vector.broadcast %282 : vector<2x1xf32> to vector<2x8xf32>
    %284 = arith.divf %280, %283 : vector<2x8xf32>
    %c0_209 = arith.constant 0 : index
    %c0_210 = arith.constant 0 : index
    %c0_211 = arith.constant 0 : index
    %285 = vector.load %arg29[%c0_209, %c0_210, %c0_211] : memref<1x2x8xf32, #tpu.memory_space<vmem>>, vector<1x2x8xf32>
    %286 = vector.shape_cast %285 : vector<1x2x8xf32> to vector<2x8xf32>
    %287 = vector.shape_cast %284 : vector<2x8xf32> to vector<1x2x8xf32>
    tpu.vector_store %arg29[%c0_209, %c0_210, %c0_211], %287 {strides = array<i32>} : memref<1x2x8xf32, #tpu.memory_space<vmem>>, vector<1x2x8xf32>,
    %288 = vector.shape_cast %284 : vector<2x8xf32> to vector<2x1x8xf32>
    %c0_212 = arith.constant 0 : index
    %c0_213 = arith.constant 0 : index
    %c0_214 = arith.constant 0 : index
    %289 = vector.load %arg6[%c0_212, %c0_213, %c0_214] : memref<2x8x32xf32, #tpu.memory_space<vmem>>, vector<2x8x32xf32>
    "tpu.trace_start"() <{level = 10 : i32, message = "bqs,bsh->bqh"}> : () -> ()
    %cst_215 = arith.constant dense<0.000000e+00> : vector<2x1x32xf32>
    %290 = tpu.matmul %288, %289, %cst_215 {dimension_numbers = #tpu.dot_dimension_numbers<[2], [1], [1], [2], [0, 0, 0, 1, 1, 2], [0], [0]>} : vector<2x1x8xf32>, vector<2x8x32xf32>, vector<2x1x32xf32> -> vector<2x1x32xf32>
    "tpu.trace_stop"() : () -> ()
    %291 = vector.shape_cast %290 : vector<2x1x32xf32> to vector<2x32xf32>
    %c0_216 = arith.constant 0 : index
    %c0_217 = arith.constant 0 : index
    %292 = vector.load %arg35[%c0_216, %c0_217] : memref<2x32xf32, #tpu.memory_space<vmem>>, vector<2x32xf32>
    tpu.vector_store %arg35[%c0_216, %c0_217], %291 {strides = array<i32>} : memref<2x32xf32, #tpu.memory_space<vmem>>, vector<2x32xf32>,
    %293 = arith.truncf %254 : vector<2x32xf32> to vector<2x32xbf16>
    %c0_218 = arith.constant 0 : index
    %c0_219 = arith.constant 0 : index
    %294 = vector.load %arg21[%c0_218, %c0_219] : memref<32x32xbf16, #tpu.memory_space<vmem>>, vector<32x32xbf16>
    %cst_220 = arith.constant dense<0.000000e+00> : vector<2x32xf32>
    %295 = tpu.matmul %293, %294, %cst_220 {dimension_numbers = #tpu.dot_dimension_numbers<[1], [0], [0], [1], [0, 0, 1, 1], [], []>} : vector<2x32xbf16>, vector<32x32xbf16>, vector<2x32xf32> -> vector<2x32xf32>
    %296 = arith.truncf %291 : vector<2x32xf32> to vector<2x32xbf16>
    %c0_221 = arith.constant 0 : index
    %c0_222 = arith.constant 0 : index
    %297 = vector.load %arg22[%c0_221, %c0_222] : memref<32x32xbf16, #tpu.memory_space<vmem>>, vector<32x32xbf16>
    %cst_223 = arith.constant dense<0.000000e+00> : vector<2x32xf32>
    %298 = tpu.matmul %296, %297, %cst_223 {dimension_numbers = #tpu.dot_dimension_numbers<[1], [0], [0], [1], [0, 0, 1, 1], [], []>} : vector<2x32xbf16>, vector<32x32xbf16>, vector<2x32xf32> -> vector<2x32xf32>
    %299 = arith.addf %295, %298 : vector<2x32xf32>
    %c0_224 = arith.constant 0 : index
    %c0_225 = arith.constant 0 : index
    %300 = vector.load %arg23[%c0_224, %c0_225] : memref<1x32xf32, #tpu.memory_space<vmem>>, vector<1x32xf32>
    %301 = vector.broadcast %300 : vector<1x32xf32> to vector<2x32xf32>
    %302 = arith.addf %299, %301 : vector<2x32xf32>
    %cst_226 = arith.constant 0.000000e+00 : f32
    %303 = vector.broadcast %cst_226 : f32 to vector<2x32xf32>
    %304 = arith.maximumf %302, %303 : vector<2x32xf32>
    %305 = arith.truncf %304 : vector<2x32xf32> to vector<2x32xbf16>
    %c0_227 = arith.constant 0 : index
    %c0_228 = arith.constant 0 : index
    %306 = vector.load %arg24[%c0_227, %c0_228] : memref<32x256xbf16, #tpu.memory_space<vmem>>, vector<32x256xbf16>
    %cst_229 = arith.constant dense<0.000000e+00> : vector<2x256xf32>
    %307 = tpu.matmul %305, %306, %cst_229 {dimension_numbers = #tpu.dot_dimension_numbers<[1], [0], [0], [1], [0, 0, 1, 1], [], []>} : vector<2x32xbf16>, vector<32x256xbf16>, vector<2x256xf32> -> vector<2x256xf32>
    %c0_230 = arith.constant 0 : index
    %c0_231 = arith.constant 0 : index
    %308 = vector.load %arg25[%c0_230, %c0_231] : memref<1x256xf32, #tpu.memory_space<vmem>>, vector<1x256xf32>
    %309 = vector.broadcast %308 : vector<1x256xf32> to vector<2x256xf32>
    %310 = arith.addf %307, %309 : vector<2x256xf32>
    %cst_232 = arith.constant 0.000000e+00 : f32
    %311 = vector.broadcast %cst_232 : f32 to vector<2x256xf32>
    %312 = arith.maximumf %310, %311 : vector<2x256xf32>
    %313 = arith.truncf %312 : vector<2x256xf32> to vector<2x256xbf16>
    %c0_233 = arith.constant 0 : index
    %c0_234 = arith.constant 0 : index
    %314 = vector.load %arg26[%c0_233, %c0_234] : memref<256x48xbf16, #tpu.memory_space<vmem>>, vector<256x48xbf16>
    %cst_235 = arith.constant dense<0.000000e+00> : vector<2x48xf32>
    %315 = tpu.matmul %313, %314, %cst_235 {dimension_numbers = #tpu.dot_dimension_numbers<[1], [0], [0], [1], [0, 0, 1, 1], [], []>} : vector<2x256xbf16>, vector<256x48xbf16>, vector<2x48xf32> -> vector<2x48xf32>
    %c0_236 = arith.constant 0 : index
    %c0_237 = arith.constant 0 : index
    %316 = vector.load %arg27[%c0_236, %c0_237] : memref<1x48xf32, #tpu.memory_space<vmem>>, vector<1x48xf32>
    %317 = vector.broadcast %316 : vector<1x48xf32> to vector<2x48xf32>
    %318 = arith.addf %315, %317 : vector<2x48xf32>
    %cst_238 = arith.constant dense<0xFF800000> : vector<2xf32>
    %319 = vector.multi_reduction <maximumf>, %318, %cst_238 [1] : vector<2x48xf32> to vector<2xf32>
    %320 = vector.shape_cast %319 : vector<2xf32> to vector<2x1xf32>
    %321 = vector.broadcast %320 : vector<2x1xf32> to vector<2x48xf32>
    %322 = arith.subf %318, %321 : vector<2x48xf32>
    %323 = math.exp %322 : vector<2x48xf32>
    %cst_239 = arith.constant dense<0.000000e+00> : vector<2xf32>
    %324 = vector.multi_reduction <add>, %323, %cst_239 [1] : vector<2x48xf32> to vector<2xf32>
    %325 = vector.shape_cast %324 : vector<2xf32> to vector<2x1xf32>
    %326 = math.log %325 : vector<2x1xf32>
    %327 = vector.broadcast %326 : vector<2x1xf32> to vector<2x48xf32>
    %328 = arith.subf %322, %327 : vector<2x48xf32>
    %c0_240 = arith.constant 0 : index
    %c0_241 = arith.constant 0 : index
    %c0_242 = arith.constant 0 : index
    %329 = vector.load %arg28[%c0_240, %c0_241, %c0_242] : memref<1x2x48xf32, #tpu.memory_space<vmem>>, vector<1x2x48xf32>
    %330 = vector.shape_cast %329 : vector<1x2x48xf32> to vector<2x48xf32>
    %331 = vector.shape_cast %328 : vector<2x48xf32> to vector<1x2x48xf32>
    tpu.vector_store %arg28[%c0_240, %c0_241, %c0_242], %331 {strides = array<i32>} : memref<1x2x48xf32, #tpu.memory_space<vmem>>, vector<1x2x48xf32>,
    %c5_i32 = arith.constant 5 : i32
    %332 = arith.cmpi eq, %arg0, %c5_i32 : i32
    %333 = arith.extui %332 : i1 to i32
    %c0_i32_243 = arith.constant 0 : i32
    %334 = arith.cmpi ne, %333, %c0_i32_243 : i32
    scf.if %334 {
      %c0_244 = arith.constant 0 : index
      %c0_245 = arith.constant 0 : index
      %c0_246 = arith.constant 0 : index
      %335 = vector.load %arg33[%c0_244, %c0_245, %c0_246] : memref<3x2x32xf32, #tpu.memory_space<vmem>>, vector<3x2x32xf32>
      %c0_247 = arith.constant 0 : index
      %c0_248 = arith.constant 0 : index
      %c0_249 = arith.constant 0 : index
      %336 = vector.load %arg30[%c0_247, %c0_248, %c0_249] : memref<3x2x32xf32, #tpu.memory_space<vmem>>, vector<3x2x32xf32>
      tpu.vector_store %arg30[%c0_247, %c0_248, %c0_249], %335 {strides = array<i32>} : memref<3x2x32xf32, #tpu.memory_space<vmem>>, vector<3x2x32xf32>,
      %c0_250 = arith.constant 0 : index
      %c0_251 = arith.constant 0 : index
      %c0_252 = arith.constant 0 : index
      %337 = vector.load %arg34[%c0_250, %c0_251, %c0_252] : memref<3x2x32xf32, #tpu.memory_space<vmem>>, vector<3x2x32xf32>
      %c0_253 = arith.constant 0 : index
      %c0_254 = arith.constant 0 : index
      %c0_255 = arith.constant 0 : index
      %338 = vector.load %arg31[%c0_253, %c0_254, %c0_255] : memref<3x2x32xf32, #tpu.memory_space<vmem>>, vector<3x2x32xf32>
      tpu.vector_store %arg31[%c0_253, %c0_254, %c0_255], %337 {strides = array<i32>} : memref<3x2x32xf32, #tpu.memory_space<vmem>>, vector<3x2x32xf32>,
      %c0_256 = arith.constant 0 : index
      %c0_257 = arith.constant 0 : index
      %339 = vector.load %arg35[%c0_256, %c0_257] : memref<2x32xf32, #tpu.memory_space<vmem>>, vector<2x32xf32>
      %c0_258 = arith.constant 0 : index
      %c0_259 = arith.constant 0 : index
      %340 = vector.load %arg32[%c0_258, %c0_259] : memref<2x32xf32, #tpu.memory_space<vmem>>, vector<2x32xf32>
      tpu.vector_store %arg32[%c0_258, %c0_259], %339 {strides = array<i32>} : memref<2x32xf32, #tpu.memory_space<vmem>>, vector<2x32xf32>,
    } else {
    }
    return
  }
  func.func @transform_0(%arg0: i32, %arg1: memref<6x2xi32, #tpu.memory_space<smem>>) -> (i32, i32) {
    %c0_i32 = arith.constant 0 : i32
    %c0_i32_0 = arith.constant 0 : i32
    %c0_i32_1 = arith.constant 0 : i32
    return %c0_i32, %c0_i32_0 : i32, i32
  }
  func.func @transform_1(%arg0: i32, %arg1: memref<6x2xi32, #tpu.memory_space<smem>>) -> (i32, i32, i32) {
    %c0_i32 = arith.constant 0 : i32
    %c0_i32_0 = arith.constant 0 : i32
    %c0_i32_1 = arith.constant 0 : i32
    %c0_i32_2 = arith.constant 0 : i32
    return %c0_i32, %c0_i32_0, %c0_i32_1 : i32, i32, i32
  }
  func.func @transform_2(%arg0: i32, %arg1: memref<6x2xi32, #tpu.memory_space<smem>>) -> (i32, i32, i32) {
    %c0_i32 = arith.constant 0 : i32
    %c0_i32_0 = arith.constant 0 : i32
    %c0_i32_1 = arith.constant 0 : i32
    %c0_i32_2 = arith.constant 0 : i32
    return %c0_i32, %c0_i32_0, %c0_i32_1 : i32, i32, i32
  }
  func.func @transform_3(%arg0: i32, %arg1: memref<6x2xi32, #tpu.memory_space<smem>>) -> (i32, i32) {
    %c0_i32 = arith.constant 0 : i32
    %c0_i32_0 = arith.constant 0 : i32
    %c0_i32_1 = arith.constant 0 : i32
    return %c0_i32, %c0_i32_0 : i32, i32
  }
  func.func @transform_4(%arg0: i32, %arg1: memref<6x2xi32, #tpu.memory_space<smem>>) -> (i32, i32, i32) {
    %c0_i32 = arith.constant 0 : i32
    %c0_i32_0 = arith.constant 0 : i32
    %c0_i32_1 = arith.constant 0 : i32
    %c0_i32_2 = arith.constant 0 : i32
    return %c0_i32, %c0_i32_0, %c0_i32_1 : i32, i32, i32
  }
  func.func @transform_5(%arg0: i32, %arg1: memref<6x2xi32, #tpu.memory_space<smem>>) -> (i32, i32, i32) {
    %c0_i32 = arith.constant 0 : i32
    %c0_i32_0 = arith.constant 0 : i32
    %c0_i32_1 = arith.constant 0 : i32
    %c0_i32_2 = arith.constant 0 : i32
    return %c0_i32, %c0_i32_0, %c0_i32_1 : i32, i32, i32
  }
  func.func @transform_6(%arg0: i32, %arg1: memref<6x2xi32, #tpu.memory_space<smem>>) -> (i32, i32, i32) {
    %c0_i32 = arith.constant 0 : i32
    %c0_i32_0 = arith.constant 0 : i32
    %c0_i32_1 = arith.constant 0 : i32
    %c0_i32_2 = arith.constant 0 : i32
    return %c0_i32, %c0_i32_0, %c0_i32_1 : i32, i32, i32
  }
  func.func @transform_7(%arg0: i32, %arg1: memref<6x2xi32, #tpu.memory_space<smem>>) -> (i32, i32, i32) {
    %c0_i32 = arith.constant 0 : i32
    %c0_i32_0 = arith.constant 0 : i32
    %c0_i32_1 = arith.constant 0 : i32
    %c0_i32_2 = arith.constant 0 : i32
    return %c0_i32, %c0_i32_0, %c0_i32_1 : i32, i32, i32
  }
  func.func @transform_8(%arg0: i32, %arg1: memref<6x2xi32, #tpu.memory_space<smem>>) -> (i32, i32, i32) {
    %c0_i32 = arith.constant 0 : i32
    %c0_i32_0 = arith.constant 0 : i32
    %c0_i32_1 = arith.constant 0 : i32
    %c0_i32_2 = arith.constant 0 : i32
    return %c0_i32, %c0_i32_0, %c0_i32_1 : i32, i32, i32
  }
  func.func @transform_9(%arg0: i32, %arg1: memref<6x2xi32, #tpu.memory_space<smem>>) -> (i32, i32, i32) {
    %c0_i32 = arith.constant 0 : i32
    %c0_i32_0 = arith.constant 0 : i32
    %c0_i32_1 = arith.constant 0 : i32
    %c0_i32_2 = arith.constant 0 : i32
    return %c0_i32, %c0_i32_0, %c0_i32_1 : i32, i32, i32
  }
  func.func @transform_10(%arg0: i32, %arg1: memref<6x2xi32, #tpu.memory_space<smem>>) -> (i32, i32, i32) {
    %c0_i32 = arith.constant 0 : i32
    %c0_i32_0 = arith.constant 0 : i32
    %c0_i32_1 = arith.constant 0 : i32
    %c0_i32_2 = arith.constant 0 : i32
    return %c0_i32, %c0_i32_0, %c0_i32_1 : i32, i32, i32
  }
  func.func @transform_11(%arg0: i32, %arg1: memref<6x2xi32, #tpu.memory_space<smem>>) -> (i32, i32, i32) {
    %c0_i32 = arith.constant 0 : i32
    %c0_i32_0 = arith.constant 0 : i32
    %c0_i32_1 = arith.constant 0 : i32
    %c0_i32_2 = arith.constant 0 : i32
    return %c0_i32, %c0_i32_0, %c0_i32_1 : i32, i32, i32
  }
  func.func @transform_12(%arg0: i32, %arg1: memref<6x2xi32, #tpu.memory_space<smem>>) -> (i32, i32, i32) {
    %c0_i32 = arith.constant 0 : i32
    %c0_i32_0 = arith.constant 0 : i32
    %c0_i32_1 = arith.constant 0 : i32
    %c0_i32_2 = arith.constant 0 : i32
    return %c0_i32, %c0_i32_0, %c0_i32_1 : i32, i32, i32
  }
  func.func @transform_13(%arg0: i32, %arg1: memref<6x2xi32, #tpu.memory_space<smem>>) -> (i32, i32, i32) {
    %c0_i32 = arith.constant 0 : i32
    %c0_i32_0 = arith.constant 0 : i32
    %c0_i32_1 = arith.constant 0 : i32
    %c0_i32_2 = arith.constant 0 : i32
    return %c0_i32, %c0_i32_0, %c0_i32_1 : i32, i32, i32
  }
  func.func @transform_14(%arg0: i32, %arg1: memref<6x2xi32, #tpu.memory_space<smem>>) -> (i32, i32, i32) {
    %c0_i32 = arith.constant 0 : i32
    %c0_i32_0 = arith.constant 0 : i32
    %c0_i32_1 = arith.constant 0 : i32
    %c0_i32_2 = arith.constant 0 : i32
    return %c0_i32, %c0_i32_0, %c0_i32_1 : i32, i32, i32
  }
  func.func @transform_15(%arg0: i32, %arg1: memref<6x2xi32, #tpu.memory_space<smem>>) -> (i32, i32, i32) {
    %c0_i32 = arith.constant 0 : i32
    %c0_i32_0 = arith.constant 0 : i32
    %c0_i32_1 = arith.constant 0 : i32
    %c0_i32_2 = arith.constant 0 : i32
    return %c0_i32, %c0_i32_0, %c0_i32_1 : i32, i32, i32
  }
  func.func @transform_16(%arg0: i32, %arg1: memref<6x2xi32, #tpu.memory_space<smem>>) -> (i32, i32) {
    %c0_i32 = arith.constant 0 : i32
    %c0_i32_0 = arith.constant 0 : i32
    %c0_i32_1 = arith.constant 0 : i32
    return %c0_i32, %c0_i32_0 : i32, i32
  }
  func.func @transform_17(%arg0: i32, %arg1: memref<6x2xi32, #tpu.memory_space<smem>>) -> (i32, i32, i32) {
    %c0_i32 = arith.constant 0 : i32
    %c0_i32_0 = arith.constant 0 : i32
    %c0_i32_1 = arith.constant 0 : i32
    %c0_i32_2 = arith.constant 0 : i32
    return %c0_i32, %c0_i32_0, %c0_i32_1 : i32, i32, i32
  }
  func.func @transform_18(%arg0: i32, %arg1: memref<6x2xi32, #tpu.memory_space<smem>>) -> (i32, i32) {
    %c0_i32 = arith.constant 0 : i32
    %c0_i32_0 = arith.constant 0 : i32
    %c0_i32_1 = arith.constant 0 : i32
    return %c0_i32, %c0_i32_0 : i32, i32
  }
  func.func @transform_19(%arg0: i32, %arg1: memref<6x2xi32, #tpu.memory_space<smem>>) -> (i32, i32) {
    %c0_i32 = arith.constant 0 : i32
    %c0_i32_0 = arith.constant 0 : i32
    %c0_i32_1 = arith.constant 0 : i32
    return %c0_i32, %c0_i32_0 : i32, i32
  }
  func.func @transform_20(%arg0: i32, %arg1: memref<6x2xi32, #tpu.memory_space<smem>>) -> (i32, i32) {
    %c0_i32 = arith.constant 0 : i32
    %c0_i32_0 = arith.constant 0 : i32
    %c0_i32_1 = arith.constant 0 : i32
    return %c0_i32, %c0_i32_0 : i32, i32
  }
  func.func @transform_21(%arg0: i32, %arg1: memref<6x2xi32, #tpu.memory_space<smem>>) -> (i32, i32) {
    %c0_i32 = arith.constant 0 : i32
    %c0_i32_0 = arith.constant 0 : i32
    %c0_i32_1 = arith.constant 0 : i32
    return %c0_i32, %c0_i32_0 : i32, i32
  }
  func.func @transform_22(%arg0: i32, %arg1: memref<6x2xi32, #tpu.memory_space<smem>>) -> (i32, i32) {
    %c0_i32 = arith.constant 0 : i32
    %c0_i32_0 = arith.constant 0 : i32
    %c0_i32_1 = arith.constant 0 : i32
    return %c0_i32, %c0_i32_0 : i32, i32
  }
  func.func @transform_23(%arg0: i32, %arg1: memref<6x2xi32, #tpu.memory_space<smem>>) -> (i32, i32) {
    %c0_i32 = arith.constant 0 : i32
    %c0_i32_0 = arith.constant 0 : i32
    %c0_i32_1 = arith.constant 0 : i32
    return %c0_i32, %c0_i32_0 : i32, i32
  }
  func.func @transform_24(%arg0: i32, %arg1: memref<6x2xi32, #tpu.memory_space<smem>>) -> (i32, i32) {
    %c0_i32 = arith.constant 0 : i32
    %c0_i32_0 = arith.constant 0 : i32
    %c0_i32_1 = arith.constant 0 : i32
    return %c0_i32, %c0_i32_0 : i32, i32
  }
  func.func @transform_25(%arg0: i32, %arg1: memref<6x2xi32, #tpu.memory_space<smem>>) -> (i32, i32) {
    %c0_i32 = arith.constant 0 : i32
    %c0_i32_0 = arith.constant 0 : i32
    %c0_i32_1 = arith.constant 0 : i32
    return %c0_i32, %c0_i32_0 : i32, i32
  }
  func.func @transform_26(%arg0: i32, %arg1: memref<6x2xi32, #tpu.memory_space<smem>>) -> (i32, i32, i32) {
    %c0_i32 = arith.constant 0 : i32
    %c0_i32_0 = arith.constant 0 : i32
    %c0_i32_1 = arith.constant 0 : i32
    return %arg0, %c0_i32, %c0_i32_0 : i32, i32, i32
  }
  func.func @transform_27(%arg0: i32, %arg1: memref<6x2xi32, #tpu.memory_space<smem>>) -> (i32, i32, i32) {
    %c0_i32 = arith.constant 0 : i32
    %c0_i32_0 = arith.constant 0 : i32
    %c0_i32_1 = arith.constant 0 : i32
    return %arg0, %c0_i32, %c0_i32_0 : i32, i32, i32
  }
  func.func @transform_28(%arg0: i32, %arg1: memref<6x2xi32, #tpu.memory_space<smem>>) -> (i32, i32, i32) {
    %c0_i32 = arith.constant 0 : i32
    %c0_i32_0 = arith.constant 0 : i32
    %c0_i32_1 = arith.constant 0 : i32
    %c0_i32_2 = arith.constant 0 : i32
    return %c0_i32, %c0_i32_0, %c0_i32_1 : i32, i32, i32
  }
  func.func @transform_29(%arg0: i32, %arg1: memref<6x2xi32, #tpu.memory_space<smem>>) -> (i32, i32, i32) {
    %c0_i32 = arith.constant 0 : i32
    %c0_i32_0 = arith.constant 0 : i32
    %c0_i32_1 = arith.constant 0 : i32
    %c0_i32_2 = arith.constant 0 : i32
    return %c0_i32, %c0_i32_0, %c0_i32_1 : i32, i32, i32
  }
  func.func @transform_30(%arg0: i32, %arg1: memref<6x2xi32, #tpu.memory_space<smem>>) -> (i32, i32) {
    %c0_i32 = arith.constant 0 : i32
    %c0_i32_0 = arith.constant 0 : i32
    %c0_i32_1 = arith.constant 0 : i32
    return %c0_i32, %c0_i32_0 : i32, i32
  }
}

</mosaic_0001>

<bundles_post_ra>
// kernel: tpu_custom_call.1
= control target key start
LH: loop header
LB: loop body
LE: loop exit
PB: predicated region body
PF: predicated region fallthrough
CT: control target
= control target key end

     0   :  { %s4692_s6 = smov 1   ;;  %s4693_s10 = smov 2   ;;  %s5455_s0 = inlined_call_operand.smem [shape: u32[32], index: -1, kind: input, shape index: {}] }
   0x1   :  { %s4759_s5 = sld [smem:[%s5455_s0]]   ;;  %s4694_s14 = smov 3  }
   0x2   :  { %s4764_s9 = sld [smem:[%s5455_s0 + %s4692_s6]]   ;;  %s4695_s18 = smov 4  }
   0x3   :  { %s4769_s13 = sld [smem:[%s5455_s0 + %s4693_s10]]   ;;  %s4696_s22 = smov 5  }
   0x4   :  { %s4774_s17 = sld [smem:[%s5455_s0 + %s4694_s14]]   ;;  %s4697_s26 = smov 6  }
   0x5   :  { %s4779_s21 = sld [smem:[%s5455_s0 + %s4695_s18]]   ;;  %s4698_s30 = smov 7  }
   0x6   :  { %s4784_s25 = sld [smem:[%s5455_s0 + %s4696_s22]]   ;;  %s4699_s4 = smov 8  }
   0x7   :  { %s4789_s29 = sld [smem:[%s5455_s0 + %s4697_s26]]   ;;  %s4700_s10 = smov 9  }
   0x8   :  { %5498 = sst [smem:[#allocation48_spill]] %s4764_s9  ;;  %s4701_s15 = smov 10  }
   0x9   :  { %5499 = sst [smem:[#allocation49_spill]] %s4769_s13  ;;  %s4702_s20 = smov 11  }
   0xa   :  { %5500 = sst [smem:[#allocation50_spill]] %s4774_s17  ;;  %s4703_s26 = smov 12  }
   0xb   :  { %s4794_s3 = sld [smem:[%s5455_s0 + %s4698_s30]]   ;;  %s4704_s1 = smov 13  }
   0xc   :  { %s4799_s8 = sld [smem:[%s5455_s0 + %s4699_s4]]   ;;  %s4705_s7 = smov 14  }
   0xd   :  { %s4804_s14 = sld [smem:[%s5455_s0 + %s4700_s10]]   ;;  %s4707_s22 = smov 16  }
   0xe   :  { %s4809_s19 = sld [smem:[%s5455_s0 + %s4701_s15]]   ;;  %s4706_s15 = smov 15  }
   0xf   :  { %s4814_s24 = sld [smem:[%s5455_s0 + %s4702_s20]]   ;;  %s4708_s28 = smov 17  }
  0x10   :  { %s4819_s30 = sld [smem:[%s5455_s0 + %s4703_s26]]   ;;  %s4720_s2 = smov 30  }
  0x11   :  { %5501 = sst [smem:[#allocation51_spill]] %s4794_s3  ;;  %s4721_s11 = smov 31  }
  0x12   :  { %5502 = sst [smem:[#allocation52_spill]] %s4799_s8 }
  0x13   :  { %5503 = sst [smem:[#allocation53_spill]] %s4804_s14 }
  0x14   :  { %5504 = sst [smem:[#allocation54_spill]] %s4809_s19 }
  0x15   :  { %s4824_s6 = sld [smem:[%s5455_s0 + %s4704_s1]]  }
  0x16   :  { %s4829_s12 = sld [smem:[%s5455_s0 + %s4705_s7]]   ;;  %s4709_s7 = smov 18  }
  0x17   :  { %s4834_s20 = sld [smem:[%s5455_s0 + %s4706_s15]]   ;;  %s4710_s15 = smov 20  }
  0x18   :  { %s4839_s27 = sld [smem:[%s5455_s0 + %s4707_s22]]   ;;  %s4711_s22 = smov 21  }
  0x19   :  { %s4844_s4 = sld [smem:[%s5455_s0 + %s4708_s28]]   ;;  %s4712_s28 = smov 22  }
  0x1a   :  { %s4854_s19 = sld [smem:[%s5455_s0 + %s4710_s15]]   ;;  %s4714_s15 = smov 24  }
  0x1b   :  { %5505 = sst [smem:[#allocation55_spill]] %s4824_s6 }
  0x1c   :  { %5506 = sst [smem:[#allocation56_spill]] %s4829_s12 }
  0x1d   :  { %s4849_s6 = sld [smem:[%s5455_s0 + %s4709_s7]]   ;;  %s4713_s7 = smov 23  }
  0x1e   :  { %s4859_s9 = sld [smem:[%s5455_s0 + %s4711_s22]]   ;;  %s4715_s22 = smov 25  }
  0x1f   :  { %5507 = sst [smem:[#allocation57_spill]] %s4844_s4 }
  0x20   :  { %s4864_s10 = sld [smem:[%s5455_s0 + %s4712_s28]]   ;;  %s4716_s28 = smov 26  }
  0x21   :  { %s4869_s16 = sld [smem:[%s5455_s0 + %s4713_s7]]  }
  0x22   :  { %s4874_s23 = sld [smem:[%s5455_s0 + %s4714_s15]]   ;;  %s4718_s15 = smov 28  }
  0x23   :  { %5508 = sst [smem:[#allocation58_spill]] %s4849_s6  ;;  %s4717_s6 = smov 27  }
  0x24   :  { %5509 = sst [smem:[#allocation59_spill]] %s4859_s9 }
  0x25   :  { %s4879_s1 = sld [smem:[%s5455_s0 + %s4715_s22]]   ;;  %s4719_s22 = smov 29  }
  0x26   :  { %5510 = sst [smem:[#allocation60_spill]] %s4864_s10 }
  0x27   :  { %5511 = sst [smem:[#allocation61_spill]] %s4869_s16 }
  0x28   :  { %5512 = sst [smem:[#allocation62_spill]] %s4874_s23 }
  0x29   :  { %s4884_s14 = sld [smem:[%s5455_s0 + %s4716_s28]]   ;;  %s70_s28 = sshll.u32 %s4759_s5, 4  ;;  %s71_s28 = int_to_ptr.vmem [resolvable:$true] %s70_s28 }
  0x2a   :  { %s4889_s8 = sld [smem:[%s5455_s0 + %s4717_s6]]  }
  0x2b   :  { %5513 = sst [smem:[#allocation63_spill]] %s4879_s1  ;;  %s4076_s1 = scalar_lea.vmem %s4759_s5, 8 }
  0x2c   :  { %s4894_s3 = sld [smem:[%s5455_s0 + %s4718_s15]]   ;;  %s4072_s15 = sshra.s32 %s71_s28, 4  ;;  %s4073_s15 = int_to_ptr.vmem [resolvable:$true] %s4072_s15 }
  0x2d   :  { %s4899_s10 = sld [smem:[%s5455_s0 + %s4719_s22]]   ;;  %s4074_s18 = scalar_lea.vmem %s4073_s15, 8 }
  0x2e   :  { %s4905_s6 = sld [smem:[%s5455_s0 + %s4720_s2]]   ;;  %p4075_p0 = scmp.ne.s32.totalorder %s4073_s15, %s4074_s18 }
  0x2f   :  { %5514 = sst [smem:[#allocation64_spill]] %s4884_s14  ;;  %p4077_p1 = scmp.lt.s32.totalorder %s4073_s15, %s4759_s5 }
  0x30   :  { %5515 = sst [smem:[#allocation65_spill]] %s4889_s8  ;;  %p4078_p2 = scmp.lt.s32.totalorder %s4076_s1, %s4074_s18 }
  0x31   :  { %s4910_s23 = sld [smem:[%s5455_s0 + %s4721_s11]]  }
  0x32   :  { %5516 = sst [smem:[#allocation66_spill]] %s4894_s3  ;;  %p4079_p3 = por %p4078_p2, %p4077_p1 }
  0x33   :  { %5517 = sst [smem:[#allocation67_spill]] %s4899_s10 }
  0x34   :  { %5518 = sst [smem:[#allocation68_spill]] %s4905_s6  ;;  %p4080_p4 = pnand %p4079_p3, %p4075_p0 }
  0x37   :  { %5519 = sst [smem:[#allocation69_spill]] %s4910_s23 }
  0x38   :  { %4083 = shalt.err (!%p4080_p4)  }
  0x39   :  { %s4722_s14 = smov [#allocation6]   ;;  %s4723_s22 = smov 19  }
  0x3a   :  { %73 = dma.vmem_to_smem %s71_s28, 128, %s4722_s14, [#allocation5] }
  0x3b   :  { %s3194_s7 = sld [smem:[%s5455_s0 + %s4723_s22]]  }
  0x41   :  { %v74_v0 = vstv %s3194_s7 }
  0x42   :  { %75 = vst [vmem:[#allocation7] sm:$0x1] %v74_v0 }
  0x43   :  { %4630 = dma.done.wait [#allocation5], 128 }
  0x44   :  { %4631 = vsyncadd [#allocation5], 4294967168 }
  0x45   :  { %78 = sfence }
  0x46   :  { %79 = vsyncpa [#allocation9], 0 }
  0x47   :  { %80 = vsyncpa [#allocation12], 0 }
  0x48   :  { %81 = vsyncpa [#allocation15], 0 }
  0x49   :  { %82 = vsyncpa [#allocation18], 0 }
  0x4a   :  { %83 = vsyncpa [#allocation21], 0 }
  0x4b   :  { %84 = vsyncpa [#allocation24], 0 }
  0x4c   :  { %85 = vsyncpa [#allocation27], 0 }
  0x4d   :  { %86 = vsyncpa [#allocation10], 0 }
  0x4e   :  { %88 = vsyncpa [#allocation10 + $0x1], 0 }
  0x4f   :  { %89 = vsyncpa [#allocation31], 0 }
  0x50   :  { %91 = vsyncpa [#allocation31 + $0x1], 0 }
  0x51   :  { %92 = vsyncpa [#allocation34], 0  ;;  %s4917_s5 = smov 0   ;;  %s4919_s0 = smov 0  }
  0x52   :  { %s4921_s16 = smov 0   ;;  %s4923_s8 = smov 0  }
  0x53 LB: > { %s5520_s13 = sld [smem:[#allocation49_spill]]  ;;  %s4938_s28 = sadd.s32 4294967295, %s4690_s8   ;;  %s4686_s16 = sphi %s4921_s16, %s5589_s16   ;;  %s4682_s0 = sphi %s4919_s0, %s5591_s0   ;;  %s4678_s5 = sphi %s4917_s5, %s5590_s5   ;;  %s4690_s8 = sphi %s4923_s8, %s5587_s8  }
  0x54   : > { %s5521_s6 = sld [smem:[#allocation68_spill]]  ;;  %s5465_s11 = sadd.s32 4294967294, %s4690_s8  }
  0x55   : > { %s5522_s3 = sld [smem:[#allocation66_spill]]  ;;  %s4942_s15 = sadd.s32 1, %s4690_s8  }
  0x56   : > { %s5523_s9 = sld [smem:[#allocation59_spill]]  ;;  %s651_s18 = sadd.s32 1, %s4686_s16 }
  0x57   : > { %s5524_s4 = sld [smem:[#allocation57_spill]]  ;;  %s648_s1 = ssub.s32 %s4690_s8, %s4942_s15 }
  0x58   : > { %s5525_s12 = sld [smem:[#allocation56_spill]]  ;;  %p661_p5 = scmp.ne.s32.totalorder %s4686_s16, %s4682_s0 }
  0x59   : > { %s5526_s17 = sld [smem:[#allocation50_spill]]  ;;  %p649_p6 = scmp.eq.s32.totalorder %s648_s1, 0 }
  0x5a   : > { %5527 = sst [smem:[#allocation70_spill]] %s4678_s5  ;;  %p5471_p7 = scmp.eq.s32.totalorder %s4938_s28, 5 }
  0x5b   : > { %5528 = sst [smem:[#allocation71_spill]] %s4686_s16  ;;  %p667_p8 = scmp.ne.s32.totalorder %s4682_s0, %s4678_s5 }
  0x5c   : > { %5529 = sst [smem:[#allocation72_spill]] %s4690_s8  ;;  %p668_p9 = scmp.eq.s32.totalorder %s5465_s11, 5 }
  0x5d   : > { %5530 = sst [smem:[#allocation73_spill]] %s4942_s15  ;;  %p4959_p10 = por %p5471_p7, %p661_p5 }
  0x5e   : > { %s4955_s14 = scalar_select %p649_p6, %s4686_s16, %s651_s18  }
  0x5f   : > { %p4963_p11 = por %p668_p9, %p667_p8  ;;  %p3209_p12 = scmp.ge.s32.totalorder %s4690_s8, 1 }
  0x60   : > { %5531 = sst [smem:[#allocation74_spill]] %s4955_s14  ;;  %p764_p13 = scmp.lt.s32.totalorder %s4690_s8, 7 }
  0x61   : > { %s5533_s26 = scalar_select %p4963_p11, 1, 0 }
  0x62   : > { %p3210_p0 = scmp.ne.s32.totalorder %s4938_s28, 0  ;;  %p3865_p1 = scmp.eq.s32.totalorder %s4938_s28, 0 }
  0x63   : > { %5534 = sst [smem:[#allocation75_spill]] %s5533_s26  ;;  %p4971_p2 = pnand %p3209_p12, %p764_p13 }
  0x64   : > { %s792_s7 = sshll.u32 %s5526_s17, 4  ;;  %s818_s18 = sshll.u32 %s4784_s25, 4  ;;  %s793_s7 = int_to_ptr.hbm [resolvable:$true] %s792_s7  ;;  %s4985_s18 = int_to_ptr.hbm [resolvable:$true] %s818_s18 }
  0x65   : > { %p3818_p3 = pneg %p4971_p2  ;;  %s4724_s11 = smov [#allocation11]  }
  0x66   : > { %s794_s14 = sshll.u32 %s4724_s11, 4  ;;  %s4084_s16 = sshra.s32 %s793_s7, 4  ;;  %s795_s14 = int_to_ptr.vmem [resolvable:$true] %s794_s14  ;;  %s4085_s16 = int_to_ptr.hbm [resolvable:$true] %s4084_s16 }
  0x67   : > { %p4981_p4 = pnand %p3865_p1, %p3818_p3  ;;  %s4086_s15 = scalar_lea.hbm %s4085_s16, 6 }
  0x68   : > { %p4087_p5 = scmp.ne.s32.totalorder %s4085_s16, %s4086_s15  ;;  %s4091_s5 = scalar_lea.hbm %s5526_s17, 6 }
  0x69   : > { %p4989_p6 = pneg %p4981_p4  ;;  %p4092_p12 = scmp.lt.s32.totalorder %s4085_s16, %s5526_s17 }
  0x6a   : > { %p4093_p13 = scmp.lt.s32.totalorder %s4091_s5, %s4086_s15 }
  0x6b   : > { %p4089_p8 = pnand %p4989_p6, %p4087_p5 }
  0x6c   : > { %p4094_p3 = por %p4093_p13, %p4092_p12 }
  0x6d   : > { %p4090_p9 = pneg %p4089_p8 }
  0x6f   : > { %p4095_p7 = pnand %p4094_p3, %p4090_p9 }
  0x71   : > { %4098 = shalt.err (!%p4095_p7)
}
  0x72   : > { %s5477_s11 = smov 32   ;;  %s5478_s8 = smov 2  }
  0x73   : > { %3824 = dma.hbm_to_vmem [thread:$0]  (!%p4981_p4), %s793_s7, 96, %s795_s14, [#allocation12], %s5477_s11, %s5477_s11, %s5478_s8  }
  0x74   : > { %s4727_s23 = smov [#allocation14]   ;;  %s4114_s16 = sshra.s32 %s4985_s18, 4  ;;  %s4115_s16 = int_to_ptr.hbm [resolvable:$true] %s4114_s16 }
  0x75   : > { %s820_s10 = sshll.u32 %s4727_s23, 4  ;;  %s4116_s5 = scalar_lea.hbm %s4115_s16, 16  ;;  %s821_s10 = int_to_ptr.vmem [resolvable:$true] %s820_s10 }
  0x76   : > { %p4117_p5 = scmp.ne.s32.totalorder %s4115_s16, %s4116_s5  ;;  %s4121_s15 = scalar_lea.hbm %s4784_s25, 16 }
  0x77   : > { %p4122_p9 = scmp.lt.s32.totalorder %s4115_s16, %s4784_s25  ;;  %p4123_p12 = scmp.lt.s32.totalorder %s4121_s15, %s4116_s5 }
  0x78   : > { %p4119_p7 = pnand %p4117_p5, %p4989_p6 }
  0x79   : > { %p4124_p13 = por %p4123_p12, %p4122_p9 }
  0x7a   : > { %p4120_p8 = pneg %p4119_p7 }
  0x7c   : > { %p4125_p3 = pnand %p4124_p13, %p4120_p8 }
  0x7e   : > { %4128 = shalt.err (!%p4125_p3)
}
  0x7f   : > { %s5479_s17 = smov 128   ;;  %s5480_s23 = smov 8  }
  0x80   : > { %3830 = dma.hbm_to_vmem [thread:$0]  (!%p4981_p4), %s4985_s18, 256, %s821_s10, [#allocation15], %s5479_s17, %s5479_s17, %s5480_s23  }
  0x81   : > { %s858_s14 = sshll.u32 %s4814_s24, 4  ;;  %s4730_s7 = smov [#allocation17]   ;;  %s859_s14 = int_to_ptr.hbm [resolvable:$true] %s858_s14 }
  0x82   : > { %s860_s16 = sshll.u32 %s4730_s7, 4  ;;  %s889_s5 = sshll.u32 %s5525_s12, 4  ;;  %s861_s16 = int_to_ptr.vmem [resolvable:$true] %s860_s16  ;;  %s890_s5 = int_to_ptr.hbm [resolvable:$true] %s889_s5 }
  0x83   : > { %s4144_s15 = sshra.s32 %s859_s14, 4  ;;  %s4151_s8 = scalar_lea.hbm %s4814_s24, 64  ;;  %s4145_s15 = int_to_ptr.hbm [resolvable:$true] %s4144_s15 }
  0x84   : > { %s4146_s11 = scalar_lea.hbm %s4145_s15, 64  ;;  %p4152_p9 = scmp.lt.s32.totalorder %s4145_s15, %s4814_s24 }
  0x85   : > { %p4147_p5 = scmp.ne.s32.totalorder %s4145_s15, %s4146_s11  ;;  %p4153_p12 = scmp.lt.s32.totalorder %s4151_s8, %s4146_s11 }
  0x87   : > { %p4149_p7 = pnand %p4147_p5, %p4989_p6  ;;  %p4154_p13 = por %p4153_p12, %p4152_p9 }
  0x89   : > { %p4150_p8 = pneg %p4149_p7 }
  0x8b   : > { %p4155_p3 = pnand %p4154_p13, %p4150_p8 }
  0x8d   : > { %4158 = shalt.err (!%p4155_p3)
}
  0x8e   : > { %s5482_s10 = smov 64   ;;  %s5484_s18 = smov 4  }
  0x8f   : > { %3836 = dma.hbm_to_vmem [thread:$0]  (!%p4981_p4), %s859_s14, 1024, %s861_s16, [#allocation18], %s5482_s10, %s5482_s10, %s5484_s18  }
  0x90   : > { %s4733_s7 = smov [#allocation20]   ;;  %s917_s15 = sshll.u32 %s4839_s27, 4  ;;  %s5025_s15 = int_to_ptr.hbm [resolvable:$true] %s917_s15 }
  0x91   : > { %s891_s17 = sshll.u32 %s4733_s7, 4  ;;  %s4174_s8 = sshra.s32 %s890_s5, 4  ;;  %s892_s17 = int_to_ptr.vmem [resolvable:$true] %s891_s17  ;;  %s4175_s8 = int_to_ptr.hbm [resolvable:$true] %s4174_s8 }
  0x92   : > { %s4176_s11 = scalar_lea.hbm %s4175_s8, 64  ;;  %s4181_s23 = scalar_lea.hbm %s5525_s12, 64 }
  0x93   : > { %p4177_p5 = scmp.ne.s32.totalorder %s4175_s8, %s4176_s11  ;;  %p4182_p9 = scmp.lt.s32.totalorder %s4175_s8, %s5525_s12 }
  0x94   : > { %p4183_p12 = scmp.lt.s32.totalorder %s4181_s23, %s4176_s11 }
  0x95   : > { %p4179_p7 = pnand %p4177_p5, %p4989_p6 }
  0x96   : > { %p4184_p13 = por %p4183_p12, %p4182_p9 }
  0x97   : > { %p4180_p8 = pneg %p4179_p7 }
  0x99   : > { %p4185_p3 = pnand %p4184_p13, %p4180_p8 }
  0x9b   : > { %4188 = shalt.err (!%p4185_p3)
}
  0x9c   : > { %3842 = dma.hbm_to_vmem [thread:$0]  (!%p4981_p4), %s890_s5, 1024, %s892_s17, [#allocation21], %s5482_s10, %s5482_s10, %s5484_s18  }
  0x9d   : > { %s4734_s14 = smov [#allocation23]   ;;  %s951_s7 = sshll.u32 %s4854_s19, 4  ;;  %s952_s7 = int_to_ptr.hbm [resolvable:$true] %s951_s7 }
  0x9e   : > { %s919_s16 = sshll.u32 %s4734_s14, 4  ;;  %s4204_s8 = sshra.s32 %s5025_s15, 4  ;;  %s920_s16 = int_to_ptr.vmem [resolvable:$true] %s919_s16  ;;  %s4205_s8 = int_to_ptr.hbm [resolvable:$true] %s4204_s8 }
  0x9f   : > { %s4206_s23 = scalar_lea.hbm %s4205_s8, 4  ;;  %s4211_s11 = scalar_lea.hbm %s4839_s27, 4 }
  0xa0   : > { %p4207_p5 = scmp.ne.s32.totalorder %s4205_s8, %s4206_s23  ;;  %p4212_p9 = scmp.lt.s32.totalorder %s4205_s8, %s4839_s27 }
  0xa1   : > { %p4213_p12 = scmp.lt.s32.totalorder %s4211_s11, %s4206_s23 }
  0xa2   : > { %p4209_p7 = pnand %p4207_p5, %p4989_p6 }
  0xa3   : > { %p4214_p13 = por %p4213_p12, %p4212_p9 }
  0xa4   : > { %p4210_p8 = pneg %p4209_p7 }
  0xa6   : > { %p4215_p3 = pnand %p4214_p13, %p4210_p8 }
  0xa8   : > { %4218 = shalt.err (!%p4215_p3)
}
  0xa9   : > { %s4735_s12 = smov 16   ;;  %s4736_s17 = smov 1  }
  0xaa   : > { %3848 = dma.hbm_to_vmem [thread:$0]  (!%p4981_p4), %s5025_s15, 64, %s920_s16, [#allocation24], %s4735_s12, %s4735_s12, %s4736_s17  }
  0xab   : > { %s4737_s5 = smov [#allocation26]   ;;  %s778_s10 = sshll.u32 %s5520_s13, 4  ;;  %s5046_s10 = int_to_ptr.hbm [resolvable:$true] %s778_s10 }
  0xac   : > { %s953_s14 = sshll.u32 %s4737_s5, 4  ;;  %s4234_s8 = sshra.s32 %s952_s7, 4  ;;  %s954_s14 = int_to_ptr.vmem [resolvable:$true] %s953_s14  ;;  %s4235_s8 = int_to_ptr.hbm [resolvable:$true] %s4234_s8 }
  0xad   : > { %s4236_s23 = scalar_lea.hbm %s4235_s8, 16  ;;  %s4241_s11 = scalar_lea.hbm %s4854_s19, 16 }
  0xae   : > { %p4237_p5 = scmp.ne.s32.totalorder %s4235_s8, %s4236_s23  ;;  %p4242_p9 = scmp.lt.s32.totalorder %s4235_s8, %s4854_s19 }
  0xaf   : > { %p4243_p12 = scmp.lt.s32.totalorder %s4241_s11, %s4236_s23 }
  0xb0   : > { %p4239_p7 = pnand %p4237_p5, %p4989_p6 }
  0xb1   : > { %p4244_p13 = por %p4243_p12, %p4242_p9 }
  0xb2   : > { %p4240_p8 = pneg %p4239_p7 }
  0xb4   : > { %p4245_p3 = pnand %p4244_p13, %p4240_p8 }
  0xb6   : > { %4248 = shalt.err (!%p4245_p3)
}
  0xb7   : > { %s5538_s12 = smov 64   ;;  %s807_s15 = sshll.u32 %s4779_s21, 4  ;;  %s5058_s15 = int_to_ptr.hbm [resolvable:$true] %s807_s15 }
  0xb8   : > { %3854 = dma.hbm_to_vmem [thread:$0]  (!%p4981_p4), %s952_s7, 256, %s954_s14, [#allocation27], %s5538_s12, %s5538_s12, %s5484_s18  }
  0xb9   : > { %s4738_s16 = smov [#allocation8]   ;;  %s4264_s5 = sshra.s32 %s5046_s10, 4  ;;  %s4265_s5 = int_to_ptr.hbm [resolvable:$true] %s4264_s5 }
  0xba   : > { %s780_s17 = sshll.u32 %s4738_s16, 4  ;;  %s4266_s8 = scalar_lea.hbm %s4265_s5, 6  ;;  %s781_s17 = int_to_ptr.vmem [resolvable:$true] %s780_s17 }
  0xbb   : > { %p4267_p5 = scmp.ne.s32.totalorder %s4265_s5, %s4266_s8  ;;  %s4271_s23 = scalar_lea.hbm %s5520_s13, 6 }
  0xbc   : > { %p4272_p9 = scmp.lt.s32.totalorder %s4265_s5, %s5520_s13  ;;  %p4273_p12 = scmp.lt.s32.totalorder %s4271_s23, %s4266_s8 }
  0xbd   : > { %p4269_p7 = pnand %p4267_p5, %p4989_p6 }
  0xbe   : > { %p4274_p13 = por %p4273_p12, %p4272_p9 }
  0xbf   : > { %p4270_p8 = pneg %p4269_p7 }
  0xc1   : > { %p4275_p3 = pnand %p4274_p13, %p4270_p8 }
  0xc3   : > { %4278 = shalt.err (!%p4275_p3)
}
  0xc4   : > { %s5539_s7 = smov 2   ;;  %s5540_s14 = smov 32  }
  0xc5   : > { %3821 = dma.hbm_to_vmem [thread:$0]  (!%p4981_p4), %s5046_s10, 96, %s781_s17, [#allocation9], %s5540_s14, %s5540_s14, %s5539_s7  }
  0xc6   : > { %s4739_s11 = smov [#allocation13]   ;;  %s832_s18 = sshll.u32 %s4789_s29, 4  ;;  %s5072_s18 = int_to_ptr.hbm [resolvable:$true] %s832_s18 }
  0xc7   : > { %s809_s16 = sshll.u32 %s4739_s11, 4  ;;  %s4294_s5 = sshra.s32 %s5058_s15, 4  ;;  %s810_s16 = int_to_ptr.vmem [resolvable:$true] %s809_s16  ;;  %s4295_s5 = int_to_ptr.hbm [resolvable:$true] %s4294_s5 }
  0xc8   : > { %s4296_s8 = scalar_lea.hbm %s4295_s5, 2  ;;  %s4301_s23 = scalar_lea.hbm %s4779_s21, 2 }
  0xc9   : > { %p4297_p5 = scmp.ne.s32.totalorder %s4295_s5, %s4296_s8  ;;  %p4302_p9 = scmp.lt.s32.totalorder %s4295_s5, %s4779_s21 }
  0xca   : > { %p4303_p12 = scmp.lt.s32.totalorder %s4301_s23, %s4296_s8 }
  0xcb   : > { %p4299_p7 = pnand %p4297_p5, %p4989_p6 }
  0xcc   : > { %p4304_p13 = por %p4303_p12, %p4302_p9 }
  0xcd   : > { %p4300_p8 = pneg %p4299_p7 }
  0xcf   : > { %p4305_p3 = pnand %p4304_p13, %p4300_p8 }
  0xd1   : > { %4308 = shalt.err (!%p4305_p3)
}
  0xd2   : > { %3827 = dma.hbm_to_vmem [thread:$0]  (!%p4981_p4), %s5058_s15, 32, %s810_s16, [#allocation12]  }
  0xd3   : > { %s872_s10 = sshll.u32 %s4819_s30, 4  ;;  %s4740_s17 = smov [#allocation16]   ;;  %s5083_s10 = int_to_ptr.hbm [resolvable:$true] %s872_s10 }
  0xd4   : > { %s834_s7 = sshll.u32 %s4740_s17, 4  ;;  %s4324_s14 = sshra.s32 %s5072_s18, 4  ;;  %s835_s7 = int_to_ptr.vmem [resolvable:$true] %s834_s7  ;;  %s4325_s14 = int_to_ptr.hbm [resolvable:$true] %s4324_s14 }
  0xd5   : > { %s4326_s11 = scalar_lea.hbm %s4325_s14, 16  ;;  %s4331_s5 = scalar_lea.hbm %s4789_s29, 16 }
  0xd6   : > { %p4327_p5 = scmp.ne.s32.totalorder %s4325_s14, %s4326_s11  ;;  %p4332_p9 = scmp.lt.s32.totalorder %s4325_s14, %s4789_s29 }
  0xd7   : > { %p4333_p12 = scmp.lt.s32.totalorder %s4331_s5, %s4326_s11 }
  0xd8   : > { %p4329_p7 = pnand %p4327_p5, %p4989_p6 }
  0xd9   : > { %p4334_p13 = por %p4333_p12, %p4332_p9 }
  0xda   : > { %p4330_p8 = pneg %p4329_p7 }
  0xdc   : > { %p4335_p3 = pnand %p4334_p13, %p4330_p8 }
  0xde   : > { %4338 = shalt.err (!%p4335_p3)
}
  0xdf   : > { %s5541_s15 = smov 8   ;;  %s5542_s16 = smov 128  }
  0xe0   : > { %3833 = dma.hbm_to_vmem [thread:$0]  (!%p4981_p4), %s5072_s18, 256, %s835_s7, [#allocation15], %s5542_s16, %s5542_s16, %s5541_s15  }
  0xe1   : > { %s4741_s8 = smov [#allocation19]   ;;  %s903_s17 = sshll.u32 %s4834_s20, 4  ;;  %s5097_s17 = int_to_ptr.hbm [resolvable:$true] %s903_s17 }
  0xe2   : > { %s874_s23 = sshll.u32 %s4741_s8, 4  ;;  %s4354_s14 = sshra.s32 %s5083_s10, 4  ;;  %s875_s23 = int_to_ptr.vmem [resolvable:$true] %s874_s23  ;;  %s4355_s14 = int_to_ptr.hbm [resolvable:$true] %s4354_s14 }
  0xe3   : > { %s4356_s11 = scalar_lea.hbm %s4355_s14, 64  ;;  %s4361_s5 = scalar_lea.hbm %s4819_s30, 64 }
  0xe4   : > { %p4357_p5 = scmp.ne.s32.totalorder %s4355_s14, %s4356_s11  ;;  %p4362_p9 = scmp.lt.s32.totalorder %s4355_s14, %s4819_s30 }
  0xe5   : > { %p4363_p12 = scmp.lt.s32.totalorder %s4361_s5, %s4356_s11 }
  0xe6   : > { %p4359_p7 = pnand %p4357_p5, %p4989_p6 }
  0xe7   : > { %p4364_p13 = por %p4363_p12, %p4362_p9 }
  0xe8   : > { %p4360_p8 = pneg %p4359_p7 }
  0xea   : > { %p4365_p3 = pnand %p4364_p13, %p4360_p8 }
  0xec   : > { %4368 = shalt.err (!%p4365_p3)
}
  0xed   : > { %s5543_s18 = smov 4   ;;  %s931_s7 = sshll.u32 %s5524_s4, 4  ;;  %s5111_s7 = int_to_ptr.hbm [resolvable:$true] %s931_s7 }
  0xee   : > { %3839 = dma.hbm_to_vmem [thread:$0]  (!%p4981_p4), %s5083_s10, 1024, %s875_s23, [#allocation18], %s5538_s12, %s5538_s12, %s5543_s18  }
  0xef   : > { %s4742_s15 = smov [#allocation22]   ;;  %s4384_s8 = sshra.s32 %s5097_s17, 4  ;;  %s4385_s8 = int_to_ptr.hbm [resolvable:$true] %s4384_s8 }
  0xf0   : > { %s905_s16 = sshll.u32 %s4742_s15, 4  ;;  %s4386_s14 = scalar_lea.hbm %s4385_s8, 64  ;;  %s906_s16 = int_to_ptr.vmem [resolvable:$true] %s905_s16 }
  0xf1   : > { %p4387_p5 = scmp.ne.s32.totalorder %s4385_s8, %s4386_s14  ;;  %s4391_s11 = scalar_lea.hbm %s4834_s20, 64 }
  0xf2   : > { %p4392_p9 = scmp.lt.s32.totalorder %s4385_s8, %s4834_s20  ;;  %p4393_p12 = scmp.lt.s32.totalorder %s4391_s11, %s4386_s14 }
  0xf3   : > { %p4389_p7 = pnand %p4387_p5, %p4989_p6 }
  0xf4   : > { %p4394_p13 = por %p4393_p12, %p4392_p9 }
  0xf5   : > { %p4390_p8 = pneg %p4389_p7 }
  0xf7   : > { %p4395_p3 = pnand %p4394_p13, %p4390_p8 }
  0xf9   : > { %4398 = shalt.err (!%p4395_p3)
}
  0xfa   : > { %3845 = dma.hbm_to_vmem [thread:$0]  (!%p4981_p4), %s5097_s17, 1024, %s906_s16, [#allocation21], %s5538_s12, %s5538_s12, %s5543_s18  }
  0xfb   : > { %s4743_s10 = smov [#allocation25]   ;;  %s965_s5 = sshll.u32 %s5523_s9, 4  ;;  %s966_s5 = int_to_ptr.hbm [resolvable:$true] %s965_s5 }
  0xfc   : > { %s933_s23 = sshll.u32 %s4743_s10, 4  ;;  %s4414_s15 = sshra.s32 %s5111_s7, 4  ;;  %s934_s23 = int_to_ptr.vmem [resolvable:$true] %s933_s23  ;;  %s4415_s15 = int_to_ptr.hbm [resolvable:$true] %s4414_s15 }
  0xfd   : > { %s4416_s8 = scalar_lea.hbm %s4415_s15, 16  ;;  %s4421_s14 = scalar_lea.hbm %s5524_s4, 16 }
  0xfe   : > { %p4417_p5 = scmp.ne.s32.totalorder %s4415_s15, %s4416_s8  ;;  %p4422_p9 = scmp.lt.s32.totalorder %s4415_s15, %s5524_s4 }
  0xff   : > { %p4423_p12 = scmp.lt.s32.totalorder %s4421_s14, %s4416_s8 }
 0x100   : > { %p4419_p7 = pnand %p4417_p5, %p4989_p6 }
 0x101   : > { %p4424_p13 = por %p4423_p12, %p4422_p9 }
 0x102   : > { %p4420_p8 = pneg %p4419_p7 }
 0x104   : > { %p4425_p3 = pnand %p4424_p13, %p4420_p8 }
 0x106   : > { %4428 = shalt.err (!%p4425_p3)
}
 0x107   : > { %3851 = dma.hbm_to_vmem [thread:$0]  (!%p4981_p4), %s5111_s7, 256, %s934_s23, [#allocation24], %s5538_s12, %s5538_s12, %s5543_s18  }
 0x108   : > { %s4744_s17 = smov [#allocation28]   ;;  %s4444_s11 = sshra.s32 %s966_s5, 4  ;;  %s4445_s11 = int_to_ptr.hbm [resolvable:$true] %s4444_s11 }
 0x109   : > { %s967_s16 = sshll.u32 %s4744_s17, 4  ;;  %s4446_s10 = scalar_lea.hbm %s4445_s11, 16  ;;  %s968_s16 = int_to_ptr.vmem [resolvable:$true] %s967_s16 }
 0x10a   : > { %p4447_p5 = scmp.ne.s32.totalorder %s4445_s11, %s4446_s10  ;;  %s4451_s15 = scalar_lea.hbm %s5523_s9, 16 }
 0x10b   : > { %p4452_p9 = scmp.lt.s32.totalorder %s4445_s11, %s5523_s9  ;;  %p4453_p12 = scmp.lt.s32.totalorder %s4451_s15, %s4446_s10 }
 0x10c   : > { %p4449_p7 = pnand %p4447_p5, %p4989_p6 }
 0x10d   : > { %p4454_p13 = por %p4453_p12, %p4452_p9 }
 0x10e   : > { %p4450_p8 = pneg %p4449_p7 }
 0x110   : > { %p4455_p3 = pnand %p4454_p13, %p4450_p8 }
 0x112   : > { %4458 = shalt.err (!%p4455_p3)
}
 0x113   : > { %3857 = dma.hbm_to_vmem [thread:$0]  (!%p4981_p4), %s966_s5, 256, %s968_s16, [#allocation27], %s5538_s12, %s5538_s12, %s5543_s18  }
 0x114   : > { %998 = sbr.rel (%p4971_p2) target bundleno = 2569 (0xa09), region = 124 }
 0x119   : > { %4633 = dma.done.wait (%p3865_p1), [#allocation9], 96  }
 0x11a   : > { %4635 = vsyncadd (%p3865_p1), [#allocation9], 4294967200 }
 0x11b   : > { %4637 = dma.done.wait (%p3865_p1), [#allocation12], 128  }
 0x11c   : > { %4639 = vsyncadd (%p3865_p1), [#allocation12], 4294967168 }
 0x11d   : > { %4641 = dma.done.wait (%p3865_p1), [#allocation15], 512  }
 0x11e   : > { %4643 = vsyncadd (%p3865_p1), [#allocation15], 4294966784 }
 0x11f   : > { %4645 = dma.done.wait (%p3865_p1), [#allocation18], 2048  }
 0x120   : > { %4647 = vsyncadd (%p3865_p1), [#allocation18], 4294965248 }
 0x121   : > { %4649 = dma.done.wait (%p3865_p1), [#allocation21], 2048  }
 0x122   : > { %4651 = vsyncadd (%p3865_p1), [#allocation21], 4294965248 }
 0x123   : > { %4653 = dma.done.wait (%p3865_p1), [#allocation24], 320  }
 0x124   : > { %4655 = vsyncadd (%p3865_p1), [#allocation24], 4294966976 }
 0x125   : > { %4657 = dma.done.wait (%p3865_p1), [#allocation27], 512  }
 0x126   : > { %4659 = vsyncadd (%p3865_p1), [#allocation27], 4294966784  ;;  %s5486_s26 = sand.u32 1, %s4682_s0   ;;  %1141 = sbr.rel (%p3210_p0) target bundleno = 307 (0x133), region = 180 }
 0x127   : > { %s5178_s2 = sshll.u32 %s5486_s26, 1 }
 0x128   : > { %s5487_s1 = scalar_lea.vmem [#allocation29], %s5178_s2  ;;  %s1130_s12 = scalar_lea.vmem [#allocation30], %s5178_s2 }
 0x12b   : > { %v1142_v1 = vld [vmem:[#allocation8] sm:$0x3]  ;;  %vm1145_vm0 = vcmask 254976   ;;  %v1143_v2 = vld [vmem:[#allocation8 + $0x2] sm:$0x3] }
 0x12c   : > { %1146 = vst.msk [vmem:[#allocation2] sm:$0x3] %vm1145_vm0, %v1142_v1  ;;  %v1144_v3 = vld [vmem:[#allocation8 + $0x4] sm:$0x3]  ;;  %v1149_v4 = vld [vmem:[#allocation11] sm:$0x3] }
 0x12d   : > { %1147 = vst.msk [vmem:[#allocation2 + $0x2] sm:$0x3] %vm1145_vm0, %v1143_v2  ;;  %v1150_v5 = vld [vmem:[#allocation11 + $0x2] sm:$0x3]  ;;  %v1151_v6 = vld [vmem:[#allocation11 + $0x4] sm:$0x3] }
 0x12e   : > { %1148 = vst.msk [vmem:[#allocation2 + $0x4] sm:$0x3] %vm1145_vm0, %v1144_v3  ;;  %v1155_v7 = vld [vmem:[#allocation13] sm:$0x3] }
 0x12f   : > { %1152 = vst.msk [vmem:[#allocation3] sm:$0x3] %vm1145_vm0, %v1149_v4 }
 0x130   : > { %1153 = vst.msk [vmem:[#allocation3 + $0x2] sm:$0x3] %vm1145_vm0, %v1150_v5 }
 0x131   : > { %1154 = vst.msk [vmem:[#allocation3 + $0x4] sm:$0x3] %vm1145_vm0, %v1151_v6 }
 0x132   : > { %1156 = vst.msk [vmem:[#allocation4] sm:$0x3] %vm1145_vm0, %v1155_v7 }
 0x133 PF: > { %s5544_s18 = sld [smem:[#allocation53_spill]]  ;;  %s3240_s5 = sshll.u32 %s4938_s28, 7  ;;  %v1173_v12 = vld [vmem:[#allocation2] sm:$0x3]  ;;  %vm1193_vm1 = vcmask 261120   ;;  %vm1168_vm2 = vcmask 1040384  }
 0x134   : > { %s5545_s7 = sld [smem:[#allocation51_spill]]  ;;  %s1161_s14 = sadd.s32 1, %s3240_s5  ;;  %v1175_v18 = vpack.c.bf16 %v1173_v12, %v1173_v12  ;;  %vm1637_vm11 = vcmask 254976  }
 0x135   : > { %s5546_s23 = sld [smem:[#allocation52_spill]]  ;;  %p3655_p0 = scmp.ne.s32.totalorder %s4938_s28, 5 }
 0x136   : > { %s1158_s8 = sld [smem:[#allocation6 + %s3240_s5]] }
 0x137   : > { %s1162_s17 = sld [smem:[#allocation6 + %s1161_s14]] }
 0x138   : > { %s5547_s16 = sld [smem:[#allocation48_spill]] }
 0x139   : > { %v3669_v8 = vld [vmem:[%s5544_s18 + $0x8] sm:$0xff]  ;;  %v3675_v10 = vld [vmem:[%s5544_s18 + $0x18] sm:$0xff]  ;;  %v3668_v11 = vld [vmem:[%s5544_s18] sm:$0xff]  ;;  %s5549_s5 = sld [smem:[#allocation54_spill]] }
 0x13a   : > { %v3671_v9 = vld [vmem:[%s5545_s7 + $0x8] sm:$0xff]  ;;  %1203 = vmatpush.bf16.msra.mxu0 %v3669_v8  ;;  %v3670_v13 = vld [vmem:[%s5545_s7] sm:$0xff]  ;;  %1305 = vmatpush.bf16.msra.mxu3 %v3675_v10  ;;  %v3674_v15 = vld [vmem:[%s5544_s18 + $0x10] sm:$0xff] }
 0x13b   : > { %1239 = vmatpush.bf16.msra.mxu2 %v3671_v9  ;;  %v3673_v14 = vld [vmem:[%s5546_s23 + $0x8] sm:$0xff]  ;;  %v3679_v16 = vld [vmem:[%s5546_s23 + $0x18] sm:$0xff]  ;;  %v3672_v19 = vld [vmem:[%s5546_s23] sm:$0xff] }
 0x13c   : > { %v3677_v17 = vld [vmem:[%s5545_s7 + $0x18] sm:$0xff]  ;;  %1370 = vmatpush.bf16.msra.mxu1 %v3679_v16  ;;  %v3678_v20 = vld [vmem:[%s5546_s23 + $0x10] sm:$0xff]  ;;  %v1171_v21 = vld [vmem:[#allocation4] sm:$0x3] }
 0x13d   : > { %v3683_v22 = vld [vmem:[%s5545_s7 + $0x28] sm:$0xff]  ;;  %v3676_v23 = vld [vmem:[%s5545_s7 + $0x10] sm:$0xff]  ;;  %v3682_v24 = vld [vmem:[%s5545_s7 + $0x20] sm:$0xff]  ;;  %v1172_v26 = vpack.c.bf16 %v1171_v21, %v1171_v21 }
 0x13e   : > { %s5548_s11 = smov %s5547_s16  ;;  %1204 = vmatpush.bf16.msra.mxu0 %v3668_v11  ;;  %s1159_s10 = scalar_lea.vmem %s5547_s16, %s1158_s8  ;;  %1306 = vmatpush.bf16.msra.mxu3 %v3674_v15  ;;  %v3681_v30 = vld [vmem:[%s5544_s18 + $0x28] sm:$0xff]  ;;  %v3691_v32 = vld [vmem:[%s5546_s23 + $0x38] sm:$0xff]  ;;  %v3680_v34 = vld [vmem:[%s5544_s18 + $0x20] sm:$0xff] }
 0x13f   : > { %1240 = vmatpush.bf16.msra.mxu2 %v3670_v13  ;;  %v1160_v25 = vld [vmem:[%s1159_s10] sm:$0x1]  ;;  %s1163_s15 = scalar_lea.vmem %s5548_s11, %s1162_s17  ;;  %v3685_v33 = vld [vmem:[%s5546_s23 + $0x28] sm:$0xff]  ;;  %v3687_v35 = vld [vmem:[%s5544_s18 + $0x38] sm:$0xff]  ;;  %s5550_s14 = smov %s5549_s5 }
 0x140   : > { %v1164_v27 = vld [vmem:[%s1163_s15] sm:$0x1]  ;;  %1371 = vmatpush.bf16.msra.mxu1 %v3678_v20  ;;  %v3690_v37 = vld [vmem:[%s5546_s23 + $0x30] sm:$0xff]  ;;  %v3689_v39 = vld [vmem:[%s5545_s7 + $0x38] sm:$0xff]  ;;  %s5555_s8 = sld [smem:[#allocation55_spill]] }
 0x141   : > { %3249 = vmatmul.msk.bf16.vlgmr.msra.gmra.mxu0 %vm1193_vm1, %v1175_v18  ;;  %v1166_v28 = vrot.slane %v1164_v27, 7  ;;  %3281 = vmatmul.msk.bf16.vlgmr.msra.gmra.mxu3 %vm1193_vm1, %v1175_v18  ;;  %v3684_v36 = vld [vmem:[%s5546_s23 + $0x20] sm:$0xff]  ;;  %v3686_v38 = vld [vmem:[%s5544_s18 + $0x30] sm:$0xff]  ;;  %s5561_s16 = sld [smem:[#allocation58_spill]] }
 0x142   : > { %1339 = vmatpush.bf16.msrb.mxu0 %v3677_v17  ;;  %1437 = vmatpush.bf16.msrb.mxu3 %v3683_v22  ;;  %v3688_v40 = vld [vmem:[%s5545_s7 + $0x30] sm:$0xff]  ;;  %v3993_v45 = vld [vmem:[%s5549_s5 + $0x1] ss:$0 sm:$0xff]  ;;  %v3992_v52 = vld [vmem:[%s5550_s14] ss:$0 sm:$0xff]  ;;  %s5562_s10 = sld [smem:[#allocation61_spill]] }
 0x143   : > { %1272 = vmatpush.bf16.msrb.mxu2 %v3673_v14  ;;  %v1169_v29 = vsel %vm1168_vm2, %v1160_v25, %v1166_v28  ;;  %3307 = vmatmul.msk.bf16.vlgmr.msra.gmra.mxu1 %vm1193_vm1, %v1172_v26  ;;  %v3994_v13 = vld [vmem:[%s5550_s14 + $0x2] ss:$0 sm:$0xff]  ;;  %v3697_v17 = vld [vmem:[#allocation19 + $0x18] sm:$0xff]  ;;  %v3696_v27 = vld [vmem:[#allocation19 + $0x10] sm:$0xff]  ;;  %s5563_s15 = sld [smem:[#allocation63_spill]] }
 0x144   : > { %v1170_v31 = vpack.c.bf16 %v1169_v29, %v1169_v29  ;;  %1501 = vmatpush.bf16.msrb.mxu1 %v3687_v35  ;;  %s5564_s5 = sld [smem:[#allocation60_spill]] }
 0x146   : > { %1340 = vmatpush.bf16.msrb.mxu0 %v3676_v23  ;;  %1438 = vmatpush.bf16.msrb.mxu3 %v3682_v24  ;;  %s5556_s17 = smov %s5555_s8 }
 0x147   : > { %1273 = vmatpush.bf16.msrb.mxu2 %v3672_v19 }
 0x148   : > { %3258 = vmatmul.msk.bf16.vlgmr.msra.gmra.mxu2 %vm1193_vm1, %v1170_v31  ;;  %1502 = vmatpush.bf16.msrb.mxu1 %v3686_v38 }
 0x14a   : > { %1566 = vmatpush.bf16.msra.mxu3 %v3691_v32  ;;  %1468 = vmatpush.bf16.msra.mxu0 %v3685_v33 }
 0x14b   : > { %1403 = vmatpush.bf16.msra.mxu2 %v3681_v30 }
 0x14e   : > { %1469 = vmatpush.bf16.msra.mxu0 %v3684_v36  ;;  %1567 = vmatpush.bf16.msra.mxu3 %v3690_v37  ;;  %v3995_v37 = vld [vmem:[%s5550_s14 + $0x3] ss:$0 sm:$0xff] }
 0x14f   : > { %1404 = vmatpush.bf16.msra.mxu2 %v3680_v34  ;;  %v1642_v34 = vld [vmem:[#allocation2 + $0x2] sm:$0x3] }
 0x150   : > { %v1645_v38 = vpack.c.bf16 %v1642_v34, %v1642_v34 }
 0x151   : > { %3294 = vmatmul.msk.bf16.vlgmr.msrb.gmra.mxu0 %vm1193_vm1, %v1170_v31  ;;  %3334 = vmatmul.msk.bf16.vlgmr.msrb.gmra.mxu3 %vm1193_vm1, %v1170_v31 }
 0x153   : > { %3361 = vmatmul.msk.bf16.vlgmr.msrb.gmra.mxu1 %vm1193_vm1, %v1175_v18 }
 0x158   : > { %3267 = vmatmul.msk.bf16.vlgmr.msrb.gmra.mxu2 %vm1193_vm1, %v1172_v26 }
 0x159   : > { %1535 = vmatpush.bf16.msrb.mxu2 %v3689_v39  ;;  %v3693_v39 = vld [vmem:[#allocation19 + $0x8] sm:$0xff] }
 0x15a   : > { %1672 = vmatpush.bf16.msrb.mxu0 %v3693_v39 }
 0x15d   : > { %1536 = vmatpush.bf16.msrb.mxu2 %v3688_v40  ;;  %v1174_v40 = vld [vmem:[#allocation3] sm:$0x3] }
 0x161   : > { %3347 = vmatmul.msk.bf16.vlgmr.msra.gmra.mxu0 %vm1193_vm1, %v1172_v26  ;;  %3387 = vmatmul.msk.bf16.vlgmr.msra.gmra.mxu3 %vm1193_vm1, %v1172_v26 }
 0x168   : > { %3321 = vmatmul.msk.bf16.vlgmr.msra.gmra.mxu2 %vm1193_vm1, %v1175_v18 }
 0x169   : > { %1741 = vmatpush.bf16.msra.mxu2 %v3697_v17 }
 0x16d   : > { %1742 = vmatpush.bf16.msra.mxu2 %v3696_v27 }
 0x178   : > { %3374 = vmatmul.msk.bf16.vlgmr.msrb.gmra.mxu2 %vm1193_vm1, %v1170_v31 }
 0x188   : > { %3418 = vmatmul.msk.bf16.vlgmr.msra.gmra.mxu2 %vm1193_vm1, %v1645_v38 }
 0x1be   : > { %v1206_v41 = vpop.f32.mrf.mxu0 }
 0x1bf   : > { %v1213_v57 = vadd.f32 %v3992_v52, %v1206_v41  ;;  %v3694_v52 = vld [vmem:[#allocation17] sm:$0xff] }
 0x1c0   : > { %v1373_v42 = vpop.f32.mrf.mxu1 }
 0x1c4   : > { %v1308_v43 = vpop.f32.mrf.mxu3 }
 0x1c5   : > { %v1315_v48 = vadd.f32 %v3993_v45, %v1308_v43  ;;  %v3695_v43 = vld [vmem:[#allocation17 + $0x8] sm:$0xff] }
 0x1c6   : > { %v1208_v44 = vpop.f32.mrf.mxu0  ;;  %1708 = vmatpush.bf16.msra.mxu1 %v3695_v43  ;;  %v1984_v43 = vld [vmem:[#allocation2 + $0x4] sm:$0x3] }
 0x1c8   : > { %v1375_v46 = vpop.f32.mrf.mxu1 }
 0x1c9   : > { %v3692_v46 = vld [vmem:[#allocation19] sm:$0xff] }
 0x1ca   : > { %1673 = vmatpush.bf16.msrb.mxu0 %v3692_v46  ;;  %1709 = vmatpush.bf16.msra.mxu1 %v3694_v52  ;;  %v5262_v46 = vpack.c.bf16 %v1984_v43, %v1984_v43 }
 0x1cb   : > { %v1242_v47 = vpop.f32.mrf.mxu2 }
 0x1cc   : > { %v1310_v49 = vpop.f32.mrf.mxu3  ;;  %v1246_v60 = vadd.f32 %v1242_v47, %v1213_v57  ;;  %v3705_v47 = vld [vmem:[#allocation19 + $0x38] sm:$0xff] }
 0x1cd   : > { %1875 = vmatpush.bf16.msrb.mxu2 %v3705_v47  ;;  %3399 = vmatmul.msk.bf16.vlgmr.msrb.gmra.mxu0 %vm1193_vm1, %v1645_v38  ;;  %v3709_v47 = vld [vmem:[#allocation22 + $0x8] sm:$0xff] }
 0x1ce   : > { %v1342_v50 = vpop.f32.mrf.mxu0 }
 0x1cf   : > { %v1346_v51 = vadd.f32 %v1342_v50, %v1315_v48 }
 0x1d0   : > { %v5226_v54 = vpop.f32.mrf.mxu1 }
 0x1d1   : > { %v1377_v53 = vadd.f32 %v1373_v42, %v1346_v51  ;;  %v3699_v42 = vld [vmem:[#allocation17 + $0x18] sm:$0xff]  ;;  %v1511_v50 = vadd.f32 %v3995_v37, %v5226_v54  ;;  %v3698_v51 = vld [vmem:[#allocation17 + $0x10] sm:$0xff] }
 0x1d2   : > { %1775 = vmatpush.bf16.msrb.mxu3 %v3699_v42  ;;  %v3713_v37 = vld [vmem:[#allocation22 + $0x18] sm:$0xff] }
 0x1d3   : > { %v1244_v55 = vpop.f32.mrf.mxu2  ;;  %v3389_v56 = vmul.f32 -1.442695, %v1377_v53 }
 0x1d4   : > { %v1440_v58 = vpop.f32.mrf.mxu3 }
 0x1d5   : > { %4008 = vpow2.f32 %v3389_v56 }
 0x1d6   : > { %v1344_v59 = vpop.f32.mrf.mxu0  ;;  %1776 = vmatpush.bf16.msrb.mxu3 %v3698_v51  ;;  %v3711_v51 = vld [vmem:[#allocation20 + $0x8] sm:$0xff] }
 0x1d8   : > { %v1506_v61 = vpop.f32.mrf.mxu1 }
 0x1d9   : > { %v3707_v61 = vld [vmem:[#allocation17 + $0x38] sm:$0xff] }
 0x1da   : > { %1909 = vmatpush.bf16.msra.mxu3 %v3707_v61 }
 0x1db   : > { %v1275_v62 = vpop.f32.mrf.mxu2  ;;  %v4009_v63 = vpop.eup %4008 }
 0x1dc   : > { %v1279_v0 = vadd.f32 %v1275_v62, %v1246_v60  ;;  %v1596_v1 = vadd.f32 1.0, %v4009_v63  ;;  %v1442_v3 = vpop.f32.mrf.mxu3  ;;  %v3704_v62 = vld [vmem:[#allocation19 + $0x30] sm:$0xff]  ;;  %v3701_v63 = vld [vmem:[#allocation19 + $0x28] sm:$0xff] }
 0x1dd   : > { %1876 = vmatpush.bf16.msrb.mxu2 %v3704_v62  ;;  %1808 = vmatpush.bf16.msra.mxu0 %v3701_v63  ;;  %v3700_v3 = vld [vmem:[#allocation19 + $0x20] sm:$0xff] }
 0x1de   : > { %v3388_v2 = vmul.f32 -1.442695, %v1279_v0  ;;  %4010 = vrcp.f32 %v1596_v1  ;;  %v1471_v4 = vpop.f32.mrf.mxu0  ;;  %vm1602_vm3 = vweird.f32 %v1596_v1  ;;  %v1608_v18 = vand.u32 2147483648, %v1596_v1  ;;  %v3703_v0 = vld [vmem:[#allocation17 + $0x28] sm:$0xff] }
 0x1df   : > { %v1606_v22 = vand.u32 2147483647, %v1596_v1  ;;  %1842 = vmatpush.bf16.msrb.mxu1 %v3703_v0 }
 0x1e0   : > { %4012 = vpow2.f32 %v3388_v2  ;;  %v1609_v28 = vor.u32 1.1754944e-38, %v1608_v18  ;;  %3456 = vmatmul.msk.bf16.vlgmr.msrb.gmra.mxu2 %vm1193_vm1, %v1645_v38 }
 0x1e1   : > { %vm5235_vm6 = vcmp.eq.f32.partialorder %v1606_v22, 8.507059e+37  ;;  %1809 = vmatpush.bf16.msra.mxu0 %v3700_v3  ;;  %2083 = vmatpush.bf16.msra.mxu2 %v3713_v37 }
 0x1e3   : > { %v1277_v5 = vpop.f32.mrf.mxu2 }
 0x1e4   : > { %v4011_v6 = vpop.eup %4010  ;;  %v5228_v9 = vpop.f32.mrf.mxu3  ;;  %3437 = vmatmul.msk.bf16.vlgmr.msra.gmra.mxu0 %vm1193_vm1, %v1645_v38 }
 0x1e5   : > { %v1598_v8 = vmul.f32 %v4011_v6, %v1596_v1  ;;  %vm1603_vm4 = vweird.f32 %v4011_v6  ;;  %v3706_v1 = vld [vmem:[#allocation17 + $0x30] sm:$0xff]  ;;  %2014 = vmatpush.bf16.msrb.mxu0 %v3709_v47 }
 0x1e6   : > { %v4013_v7 = vpop.eup %4012  ;;  %v1473_v11 = vpop.f32.mrf.mxu0  ;;  %vm5231_vm5 = vmor %vm1602_vm3, %vm1603_vm4  ;;  %1910 = vmatpush.bf16.msra.mxu3 %v3706_v1 }
 0x1e7   : > { %v1577_v10 = vadd.f32 1.0, %v4013_v7  ;;  %v1599_v12 = vsub.f32 1.0, %v1598_v8 }
 0x1e9   : > { %4014 = vrcp.f32 %v1577_v10  ;;  %v1600_v15 = vmul.f32 %v4011_v6, %v1599_v12  ;;  %v1587_v30 = vand.u32 2147483647, %v1577_v10  ;;  %v1589_v31 = vand.u32 2147483648, %v1577_v10 }
 0x1ea   : > { %vm1583_vm8 = vweird.f32 %v1577_v10 }
 0x1eb   : > { %v1406_v14 = vpop.f32.mrf.mxu2  ;;  %v1601_v25 = vadd.f32 %v4011_v6, %v1600_v15  ;;  %v1590_v44 = vor.u32 1.1754944e-38, %v1589_v31  ;;  %vm1588_vm10 = vcmp.eq.f32.partialorder %v1587_v30, 8.507059e+37  ;;  %v3996_v30 = vld [vmem:[%s5556_s17 + $0x1] ss:$0 sm:$0xff] }
 0x1ec   : > { %v1413_v16 = vadd.f32 %v3994_v13, %v1406_v14  ;;  %v1571_v20 = vpop.f32.mrf.mxu3 }
 0x1ed   : > { %v1605_v36 = vsel %vm5231_vm5, %v4011_v6, %v1601_v25 }
 0x1ee   : > { %v1444_v19 = vadd.f32 %v1440_v58, %v1413_v16  ;;  %v1610_v45 = vsel %vm5235_vm6, %v1609_v28, %v1605_v36  ;;  %v3997_v28 = vld [vmem:[%s5555_s8] ss:$0 sm:$0xff]  ;;  %s5565_s8 = sld [smem:[#allocation62_spill]] }
 0x1ef   : > { %v4015_v21 = vpop.eup %4014  ;;  %v1632_v55 = vmul.f32 %v1610_v45, %v1174_v40  ;;  %v3998_v45 = vld [vmem:[%s5556_s17 + $0x3] ss:$0 sm:$0xff] }
 0x1f0   : > { %v1579_v23 = vmul.f32 %v4015_v21, %v1577_v10  ;;  %v1475_v24 = vadd.f32 %v1471_v4, %v1444_v19  ;;  %vm1584_vm7 = vweird.f32 %v4015_v21  ;;  %v3702_v4 = vld [vmem:[#allocation17 + $0x20] sm:$0xff] }
 0x1f1   : > { %vm1585_vm9 = vmor %vm1583_vm8, %vm1584_vm7  ;;  %1843 = vmatpush.bf16.msrb.mxu1 %v3702_v4  ;;  %v3723_v4 = vld [vmem:[#allocation20 + $0x38] sm:$0xff] }
 0x1f2   : > { %v1580_v29 = vsub.f32 1.0, %v1579_v23  ;;  %4016 = vtanh.f32 %v1475_v24 }
 0x1f3   : > { %v1408_v33 = vpop.f32.mrf.mxu2 }
 0x1f4   : > { %v1581_v35 = vmul.f32 %v4015_v21, %v1580_v29 }
 0x1f6   : > { %v1582_v41 = vadd.f32 %v4015_v21, %v1581_v35 }
 0x1f8   : > { %v4017_v48 = vpop.eup %4016  ;;  %v1586_v49 = vsel %vm1585_vm9, %v4015_v21, %v1582_v41  ;;  %v3712_v41 = vld [vmem:[#allocation22 + $0x10] sm:$0xff] }
 0x1f9   : > { %v1591_v53 = vsel %vm1588_vm10, %v1590_v44, %v1586_v49  ;;  %2084 = vmatpush.bf16.msra.mxu2 %v3712_v41 }
 0x1fa   : > { %v1633_v56 = vmul.f32 %v4017_v48, %v1591_v53  ;;  %v3999_v53 = vld [vmem:[%s5556_s17 + $0x2] ss:$0 sm:$0xff] }
 0x1fb   : > { %v1538_v57 = vpop.f32.mrf.mxu2 }
 0x1fc   : > { %v1634_v58 = vadd.f32 %v1633_v56, %v1632_v55  ;;  %v1542_v59 = vadd.f32 %v1538_v57, %v1511_v50  ;;  %v3715_v50 = vld [vmem:[#allocation20 + $0x18] sm:$0xff]  ;;  %3495 = vmatmul.msk.bf16.vlgmr.msra.gmra.mxu2 %vm1193_vm1, %v5262_v46  ;;  %v3708_v55 = vld [vmem:[#allocation22] sm:$0xff] }
 0x1fd   : > { %v3721_v56 = vld [vmem:[#allocation22 + $0x38] sm:$0xff]  ;;  %2015 = vmatpush.bf16.msrb.mxu0 %v3708_v55 }
 0x1fe   : > { %1639 = vst.msk [vmem:[#allocation3] sm:$0x3] %vm1637_vm11, %v1634_v58  ;;  %v1573_v60 = vadd.f32 %v5228_v9, %v1542_v59  ;;  %v3710_v59 = vld [vmem:[#allocation20] sm:$0xff]  ;;  %2217 = vmatpush.bf16.msrb.mxu2 %v3721_v56 }
 0x200   : > { %v3390_v54 = vmul.f32 -1.442695, %v1573_v60  ;;  %3477 = vmatmul.msk.bf16.vlgmr.msrb.gmra.mxu0 %vm1193_vm1, %v5262_v46 }
 0x202   : > { %4018 = vpow2.f32 %v3390_v54 }
 0x203   : > { %v1540_v2 = vpop.f32.mrf.mxu2 }
 0x208   : > { %v4019_v5 = vpop.eup %4018 }
 0x209   : > { %v1616_v6 = vadd.f32 1.0, %v4019_v5  ;;  %v3720_v5 = vld [vmem:[#allocation22 + $0x30] sm:$0xff] }
 0x20a   : > { %2218 = vmatpush.bf16.msrb.mxu2 %v3720_v5 }
 0x20b   : > { %4020 = vrcp.f32 %v1616_v6  ;;  %v1628_v10 = vand.u32 2147483648, %v1616_v6  ;;  %v1626_v12 = vand.u32 2147483647, %v1616_v6  ;;  %vm1622_vm13 = vweird.f32 %v1616_v6  ;;  %v1744_v20 = vpop.f32.mrf.mxu2 }
 0x20c   : > { %4022 = vtanh.f32 %v1634_v58  ;;  %v1751_v33 = vadd.f32 %v3996_v30, %v1744_v20  ;;  %v3714_v58 = vld [vmem:[#allocation20 + $0x10] sm:$0xff] }
 0x20d   : > { %v1629_v14 = vor.u32 1.1754944e-38, %v1628_v10  ;;  %vm1627_vm15 = vcmp.eq.f32.partialorder %v1626_v12, 8.507059e+37  ;;  %v3722_v12 = vld [vmem:[#allocation20 + $0x30] sm:$0xff]  ;;  %3531 = vmatmul.msk.bf16.vlgmr.msrb.gmra.mxu2 %vm1193_vm1, %v5262_v46 }
 0x211   : > { %v4021_v7 = vpop.eup %4020 }
 0x212   : > { %v1618_v8 = vmul.f32 %v4021_v7, %v1616_v6  ;;  %vm1623_vm12 = vweird.f32 %v4021_v7  ;;  %v4023_v16 = vpop.eup %4022  ;;  %v3717_v6 = vld [vmem:[#allocation22 + $0x28] sm:$0xff] }
 0x213   : > { %vm1624_vm14 = vmor %vm1622_vm13, %vm1623_vm12  ;;  %v1746_v22 = vpop.f32.mrf.mxu2  ;;  %2150 = vmatpush.bf16.msra.mxu0 %v3717_v6 }
 0x214   : > { %v1619_v9 = vsub.f32 1.0, %v1618_v8 }
 0x216   : > { %v1620_v11 = vmul.f32 %v4021_v7, %v1619_v9  ;;  %v3719_v9 = vld [vmem:[#allocation20 + $0x28] sm:$0xff] }
 0x218   : > { %v1621_v13 = vadd.f32 %v4021_v7, %v1620_v11 }
 0x21a   : > { %v1625_v15 = vsel %vm1624_vm14, %v4021_v7, %v1621_v13 }
 0x21b   : > { %v1630_v17 = vsel %vm1627_vm15, %v1629_v14, %v1625_v15  ;;  %v3716_v14 = vld [vmem:[#allocation22 + $0x20] sm:$0xff] }
 0x21c   : > { %v1636_v18 = vmul.f32 %v4023_v16, %v1630_v17  ;;  %v3718_v15 = vld [vmem:[#allocation20 + $0x20] sm:$0xff]  ;;  %2151 = vmatpush.bf16.msra.mxu0 %v3716_v14 }
 0x21e   : > { %1638 = vst.msk [vmem:[#allocation2] sm:$0x3] %vm1637_vm11, %v1636_v18  ;;  %v1640_v19 = vpack.c.bf16 %v1636_v18, %v1636_v18 }
 0x21f   : > { %3513 = vmatmul.msk.bf16.vlgmr.msra.gmra.mxu0 %vm1193_vm1, %v5262_v46 }
 0x220   : > { %3408 = vmatmul.msk.bf16.vlgmr.msra.gmra.mxu1 %vm1193_vm1, %v1640_v19  ;;  %3427 = vmatmul.msk.bf16.vlgmr.msrb.gmra.mxu3 %vm1193_vm1, %v1640_v19 }
 0x221   : > { %2117 = vmatpush.bf16.msrb.mxu3 %v3715_v50  ;;  %2050 = vmatpush.bf16.msra.mxu1 %v3711_v51 }
 0x225   : > { %2118 = vmatpush.bf16.msrb.mxu3 %v3714_v58  ;;  %2051 = vmatpush.bf16.msra.mxu1 %v3710_v59  ;;  %v4001_v59 = vld [vmem:[#allocation23] ss:$0 sm:$0xff] }
 0x230   : > { %3446 = vmatmul.msk.bf16.vlgmr.msrb.gmra.mxu1 %vm1193_vm1, %v1640_v19  ;;  %3465 = vmatmul.msk.bf16.vlgmr.msra.gmra.mxu3 %vm1193_vm1, %v1640_v19 }
 0x231   : > { %2251 = vmatpush.bf16.msra.mxu3 %v3723_v4  ;;  %2184 = vmatpush.bf16.msrb.mxu1 %v3719_v9 }
 0x235   : > { %2252 = vmatpush.bf16.msra.mxu3 %v3722_v12  ;;  %2185 = vmatpush.bf16.msrb.mxu1 %v3718_v15  ;;  %v3724_v15 = vld [vmem:[#allocation25] sm:$0xff] }
 0x24a   : > { %v1675_v21 = vpop.f32.mrf.mxu0 }
 0x24b   : > { %v1682_v29 = vadd.f32 %v3997_v28, %v1675_v21  ;;  %v1644_v28 = vld [vmem:[#allocation3 + $0x2] sm:$0x3] }
 0x252   : > { %v1677_v23 = vpop.f32.mrf.mxu0 }
 0x261   : > { %v1811_v25 = vpop.f32.mrf.mxu0 }
 0x262   : > { %v1818_v61 = vadd.f32 %v3999_v53, %v1811_v25 }
 0x263   : > { %v1878_v24 = vpop.f32.mrf.mxu2 }
 0x264   : > { %v1885_v57 = vadd.f32 %v3998_v45, %v1878_v24 }
 0x269   : > { %v1813_v27 = vpop.f32.mrf.mxu0 }
 0x26b   : > { %v1880_v26 = vpop.f32.mrf.mxu2 }
 0x27d   : > { %v2017_v51 = vpop.f32.mrf.mxu0 }
 0x27f   : > { %v2086_v50 = vpop.f32.mrf.mxu2 }
 0x285   : > { %v2019_v53 = vpop.f32.mrf.mxu0 }
 0x29c   : > { %v2153_v56 = vpop.f32.mrf.mxu0 }
 0x29d   : > { %v1711_v31 = vpop.f32.mrf.mxu1 }
 0x29e   : > { %v1715_v32 = vadd.f32 %v1711_v31, %v1682_v29 }
 0x2a0   : > { %v3466_v34 = vmul.f32 -1.442695, %v1715_v32 }
 0x2a2   : > { %4024 = vpow2.f32 %v3466_v34 }
 0x2a3   : > { %v1778_v35 = vpop.f32.mrf.mxu3 }
 0x2a4   : > { %v1782_v36 = vadd.f32 %v1778_v35, %v1751_v33  ;;  %v2155_v58 = vpop.f32.mrf.mxu0 }
 0x2a5   : > { %v1713_v38 = vpop.f32.mrf.mxu1 }
 0x2a6   : > { %v3467_v39 = vmul.f32 -1.442695, %v1782_v36 }
 0x2a8   : > { %v4025_v40 = vpop.eup %4024  ;;  %4026 = vpow2.f32 %v3467_v39 }
 0x2a9   : > { %v5258_v42 = vadd.f32 1.0, %v4025_v40 }
 0x2ab   : > { %4028 = vrcp.f32 %v5258_v42  ;;  %v1780_v44 = vpop.f32.mrf.mxu3  ;;  %v1932_v13 = vand.u32 2147483648, %v5258_v42  ;;  %vm1926_vm2 = vweird.f32 %v5258_v42  ;;  %v1930_v17 = vand.u32 2147483647, %v5258_v42 }
 0x2ad   : > { %v1845_v48 = vpop.f32.mrf.mxu1  ;;  %v1933_v24 = vor.u32 1.1754944e-38, %v1932_v13  ;;  %vm1931_vm6 = vcmp.eq.f32.partialorder %v1930_v17, 8.507059e+37  ;;  %v4003_v13 = vld [vmem:[#allocation23 + $0x2] ss:$0 sm:$0xff] }
 0x2ae   : > { %v4027_v49 = vpop.eup %4026  ;;  %v1849_v8 = vadd.f32 %v1845_v48, %v1818_v61 }
 0x2af   : > { %v5266_v52 = vadd.f32 1.0, %v4027_v49 }
 0x2b1   : > { %v4029_v60 = vpop.eup %4028  ;;  %4030 = vrcp.f32 %v5266_v52  ;;  %v1951_v18 = vand.u32 2147483648, %v5266_v52  ;;  %v1949_v23 = vand.u32 2147483647, %v5266_v52  ;;  %vm1945_vm5 = vweird.f32 %v5266_v52 }
 0x2b2   : > { %v1922_v54 = vmul.f32 %v4029_v60, %v5258_v42  ;;  %vm1927_vm0 = vweird.f32 %v4029_v60 }
 0x2b3   : > { %v1912_v62 = vpop.f32.mrf.mxu3  ;;  %vm5278_vm3 = vmor %vm1926_vm2, %vm1927_vm0  ;;  %v1952_v27 = vor.u32 1.1754944e-38, %v1951_v18  ;;  %vm1950_vm8 = vcmp.eq.f32.partialorder %v1949_v23, 8.507059e+37  ;;  %v2160_v18 = vadd.f32 %v4003_v13, %v2153_v56 }
 0x2b4   : > { %v1923_v63 = vsub.f32 1.0, %v1922_v54  ;;  %v1916_v0 = vadd.f32 %v1912_v62, %v1885_v57  ;;  %v4000_v54 = vld [vmem:[#allocation23 + $0x1] ss:$0 sm:$0xff] }
 0x2b5   : > { %v1847_v1 = vpop.f32.mrf.mxu1 }
 0x2b6   : > { %v1924_v2 = vmul.f32 %v4029_v60, %v1923_v63  ;;  %v3468_v3 = vmul.f32 -1.442695, %v1916_v0  ;;  %v2093_v63 = vadd.f32 %v4000_v54, %v2086_v50 }
 0x2b7   : > { %v4031_v7 = vpop.eup %4030 }
 0x2b8   : > { %v1941_v10 = vmul.f32 %v4031_v7, %v5266_v52  ;;  %v1925_v11 = vadd.f32 %v4029_v60, %v1924_v2  ;;  %4032 = vpow2.f32 %v3468_v3  ;;  %vm1946_vm4 = vweird.f32 %v4031_v7  ;;  %v2088_v52 = vpop.f32.mrf.mxu2 }
 0x2b9   : > { %4034 = vtanh.f32 %v1849_v8  ;;  %vm1947_vm7 = vmor %vm1945_vm5, %vm1946_vm4  ;;  %v4002_v8 = vld [vmem:[#allocation23 + $0x3] ss:$0 sm:$0xff] }
 0x2ba   : > { %v1942_v16 = vsub.f32 1.0, %v1941_v10  ;;  %v1929_v22 = vsel %vm5278_vm3, %v4029_v60, %v1925_v11  ;;  %v2024_v60 = vadd.f32 %v4001_v59, %v2017_v51  ;;  %v3725_v11 = vld [vmem:[#allocation25 + $0x8] sm:$0xff] }
 0x2bb   : > { %v1914_v20 = vpop.f32.mrf.mxu3  ;;  %v1934_v29 = vsel %vm1931_vm6, %v1933_v24, %v1929_v22  ;;  %2350 = vmatpush.bf16.msrb.mxu0 %v3725_v11  ;;  %v4004_v11 = vld [vmem:[%s5561_s16] ss:$0 sm:$0xff]  ;;  %s5566_s16 = sld [smem:[#allocation64_spill]] }
 0x2bc   : > { %v1943_v21 = vmul.f32 %v4031_v7, %v1942_v16 }
 0x2be   : > { %v4033_v25 = vpop.eup %4032  ;;  %v1944_v26 = vadd.f32 %v4031_v7, %v1943_v21 }
 0x2bf   : > { %v1959_v30 = vadd.f32 1.0, %v4033_v25  ;;  %v4035_v32 = vpop.eup %4034  ;;  %2351 = vmatpush.bf16.msrb.mxu0 %v3724_v15 }
 0x2c0   : > { %v1948_v31 = vsel %vm1947_vm7, %v4031_v7, %v1944_v26  ;;  %v1976_v35 = vmul.f32 %v4035_v32, %v1934_v29  ;;  %v2220_v55 = vpop.f32.mrf.mxu2 }
 0x2c1   : > { %v1953_v33 = vsel %vm1950_vm8, %v1952_v27, %v1948_v31  ;;  %4036 = vrcp.f32 %v1959_v30  ;;  %v1971_v40 = vand.u32 2147483648, %v1959_v30  ;;  %v1969_v42 = vand.u32 2147483647, %v1959_v30 }
 0x2c2   : > { %v1975_v34 = vmul.f32 %v1953_v33, %v1644_v28  ;;  %vm1965_vm10 = vweird.f32 %v1959_v30  ;;  %v2227_v14 = vadd.f32 %v4002_v8, %v2220_v55 }
 0x2c3   : > { %v1972_v44 = vor.u32 1.1754944e-38, %v1971_v40  ;;  %vm1970_vm13 = vcmp.eq.f32.partialorder %v1969_v42, 8.507059e+37  ;;  %v1986_v42 = vld [vmem:[#allocation3 + $0x4] sm:$0x3] }
 0x2c4   : > { %v1977_v36 = vadd.f32 %v1976_v35, %v1975_v34 }
 0x2c6   : > { %1981 = vst.msk [vmem:[#allocation3 + $0x2] sm:$0x3] %vm1637_vm11, %v1977_v36  ;;  %4038 = vtanh.f32 %v1977_v36 }
 0x2c7   : > { %v4037_v37 = vpop.eup %4036 }
 0x2c8   : > { %v1961_v38 = vmul.f32 %v4037_v37, %v1959_v30  ;;  %vm1966_vm9 = vweird.f32 %v4037_v37  ;;  %v2222_v57 = vpop.f32.mrf.mxu2 }
 0x2c9   : > { %vm1967_vm12 = vmor %vm1965_vm10, %vm1966_vm9 }
 0x2ca   : > { %v1962_v39 = vsub.f32 1.0, %v1961_v38 }
 0x2cc   : > { %v1963_v41 = vmul.f32 %v4037_v37, %v1962_v39  ;;  %v4039_v47 = vpop.eup %4038 }
 0x2ce   : > { %v1964_v43 = vadd.f32 %v4037_v37, %v1963_v41 }
 0x2d0   : > { %v1968_v45 = vsel %vm1967_vm12, %v4037_v37, %v1964_v43  ;;  %vm2396_vm12 = vcmask 1041409  }
 0x2d1   : > { %v1973_v48 = vsel %vm1970_vm13, %v1972_v44, %v1968_v45  ;;  %vm2399_vm13 = vcmask 58368  }
 0x2d2   : > { %v1979_v49 = vmul.f32 %v4039_v47, %v1973_v48 }
 0x2d4   : > { %1980 = vst.msk [vmem:[#allocation2 + $0x2] sm:$0x3] %vm1637_vm11, %v1979_v49  ;;  %v1982_v46 = vpack.c.bf16 %v1979_v49, %v1979_v49 }
 0x2d6   : > { %3486 = vmatmul.msk.bf16.vlgmr.msra.gmra.mxu1 %vm1193_vm1, %v1982_v46  ;;  %3504 = vmatmul.msk.bf16.vlgmr.msrb.gmra.mxu3 %vm1193_vm1, %v1982_v46 }
 0x2e6   : > { %3522 = vmatmul.msk.bf16.vlgmr.msrb.gmra.mxu1 %vm1193_vm1, %v1982_v46  ;;  %3540 = vmatmul.msk.bf16.vlgmr.msra.gmra.mxu3 %vm1193_vm1, %v1982_v46 }
 0x353   : > { %v2053_v61 = vpop.f32.mrf.mxu1 }
 0x354   : > { %v2057_v62 = vadd.f32 %v2053_v61, %v2024_v60 }
 0x356   : > { %v3541_v0 = vmul.f32 -1.442695, %v2057_v62 }
 0x358   : > { %4040 = vpow2.f32 %v3541_v0  ;;  %v4745_v0 = vmov 0  }
 0x359   : > { %v2120_v1 = vpop.f32.mrf.mxu3  ;;  %3989 = vset.pattern.permute.xlu1 %v4745_v0  ;;  %3990 = vset.pattern.permute.xlu2 %v4745_v0 }
 0x35a   : > { %v2124_v2 = vadd.f32 %v2120_v1, %v2093_v63  ;;  %3991 = vset.pattern.permute.xlu0 %v4745_v0  ;;  %v4005_v1 = vld [vmem:[#allocation7] ss:$0 sm:$0xff] }
 0x35b   : > { %v2055_v3 = vpop.f32.mrf.mxu1  ;;  %2385 = vperm.xlu1 %3989, %v4005_v1  }
 0x35c   : > { %v3542_v4 = vmul.f32 -1.442695, %v2124_v2  ;;  %v2357_v3 = vld [vmem:[#allocation16] sm:$0xff] }
 0x35e   : > { %v4041_v5 = vpop.eup %4040  ;;  %4042 = vpow2.f32 %v3542_v4 }
 0x35f   : > { %v2262_v6 = vadd.f32 1.0, %v4041_v5 }
 0x361   : > { %4044 = vrcp.f32 %v2262_v6  ;;  %v2122_v7 = vpop.f32.mrf.mxu3  ;;  %v2274_v29 = vand.u32 2147483648, %v2262_v6  ;;  %vm2268_vm15 = vweird.f32 %v2262_v6  ;;  %v2272_v31 = vand.u32 2147483647, %v2262_v6 }
 0x363   : > { %v2187_v9 = vpop.f32.mrf.mxu1  ;;  %v2275_v38 = vor.u32 1.1754944e-38, %v2274_v29  ;;  %vm2273_vm4 = vcmp.eq.f32.partialorder %v2272_v31, 8.507059e+37 }
 0x364   : > { %v4043_v10 = vpop.eup %4042  ;;  %v2191_v26 = vadd.f32 %v2187_v9, %v2160_v18 }
 0x365   : > { %v2281_v12 = vadd.f32 1.0, %v4043_v10 }
 0x367   : > { %v4045_v16 = vpop.eup %4044  ;;  %4046 = vrcp.f32 %v2281_v12  ;;  %v2293_v32 = vand.u32 2147483648, %v2281_v12  ;;  %v2291_v37 = vand.u32 2147483647, %v2281_v12  ;;  %vm2287_vm3 = vweird.f32 %v2281_v12 }
 0x368   : > { %v2264_v17 = vmul.f32 %v4045_v16, %v2262_v6  ;;  %vm2269_vm14 = vweird.f32 %v4045_v16  ;;  %v2358_v6 = vld [vmem:[#allocation16 + $0x8] sm:$0xff] }
 0x369   : > { %v2254_v19 = vpop.f32.mrf.mxu3  ;;  %vm5296_vm0 = vmor %vm2268_vm15, %vm2269_vm14  ;;  %v2294_v41 = vor.u32 1.1754944e-38, %v2293_v32  ;;  %vm2292_vm6 = vcmp.eq.f32.partialorder %v2291_v37, 8.507059e+37 }
 0x36a   : > { %v2265_v20 = vsub.f32 1.0, %v2264_v17  ;;  %v2258_v21 = vadd.f32 %v2254_v19, %v2227_v14  ;;  %v2392_v19 = vlaneseq }
 0x36b   : > { %v2189_v22 = vpop.f32.mrf.mxu1 }
 0x36c   : > { %v2266_v23 = vmul.f32 %v4045_v16, %v2265_v20  ;;  %v3543_v24 = vmul.f32 -1.442695, %v2258_v21  ;;  %v5311_v21 = vand.u32 127, %v2392_v19 }
 0x36d   : > { %v4047_v25 = vpop.eup %4046 }
 0x36e   : > { %v2283_v27 = vmul.f32 %v4047_v25, %v2281_v12  ;;  %v2267_v28 = vadd.f32 %v4045_v16, %v2266_v23  ;;  %4048 = vpow2.f32 %v3543_v24  ;;  %vm2288_vm2 = vweird.f32 %v4047_v25 }
 0x36f   : > { %4050 = vtanh.f32 %v2191_v26  ;;  %vm2289_vm5 = vmor %vm2287_vm3, %vm2288_vm2 }
 0x370   : > { %v2284_v30 = vsub.f32 1.0, %v2283_v27  ;;  %v2271_v36 = vsel %vm5296_vm0, %v4045_v16, %v2267_v28 }
 0x371   : > { %v2256_v34 = vpop.f32.mrf.mxu3  ;;  %v2276_v43 = vsel %vm2273_vm4, %v2275_v38, %v2271_v36 }
 0x372   : > { %v2285_v35 = vmul.f32 %v4047_v25, %v2284_v30 }
 0x374   : > { %v4049_v39 = vpop.eup %4048  ;;  %v2286_v40 = vadd.f32 %v4047_v25, %v2285_v35 }
 0x375   : > { %v2301_v44 = vadd.f32 1.0, %v4049_v39  ;;  %v4051_v47 = vpop.eup %4050 }
 0x376   : > { %v2290_v45 = vsel %vm2289_vm5, %v4047_v25, %v2286_v40  ;;  %v2318_v46 = vmul.f32 %v4051_v47, %v2276_v43 }
 0x377   : > { %v2295_v48 = vsel %vm2292_vm6, %v2294_v41, %v2290_v45  ;;  %4052 = vrcp.f32 %v2301_v44  ;;  %v2313_v55 = vand.u32 2147483648, %v2301_v44  ;;  %v2311_v57 = vand.u32 2147483647, %v2301_v44 }
 0x378   : > { %v2317_v49 = vmul.f32 %v2295_v48, %v1986_v42  ;;  %vm2307_vm8 = vweird.f32 %v2301_v44 }
 0x379   : > { %v2314_v59 = vor.u32 1.1754944e-38, %v2313_v55  ;;  %vm2312_vm10 = vcmp.eq.f32.partialorder %v2311_v57, 8.507059e+37 }
 0x37a   : > { %v2319_v50 = vadd.f32 %v2318_v46, %v2317_v49 }
 0x37c   : > { %2323 = vst.msk [vmem:[#allocation3 + $0x4] sm:$0x3] %vm1637_vm11, %v2319_v50  ;;  %4054 = vtanh.f32 %v2319_v50 }
 0x37d   : > { %v4053_v51 = vpop.eup %4052 }
 0x37e   : > { %v2303_v52 = vmul.f32 %v4053_v51, %v2301_v44  ;;  %vm2308_vm7 = vweird.f32 %v4053_v51 }
 0x37f   : > { %vm2309_vm9 = vmor %vm2307_vm8, %vm2308_vm7  ;;  %vm2479_vm7 = vcmask 64512  }
 0x380   : > { %v2304_v53 = vsub.f32 1.0, %v2303_v52 }
 0x382   : > { %v2305_v56 = vmul.f32 %v4053_v51, %v2304_v53  ;;  %v4055_v54 = vpop.eup %4054 }
 0x384   : > { %v2306_v58 = vadd.f32 %v4053_v51, %v2305_v56 }
 0x386   : > { %v2310_v60 = vsel %vm2309_vm9, %v4053_v51, %v2306_v58 }
 0x387   : > { %v2315_v61 = vsel %vm2312_vm10, %v2314_v59, %v2310_v60 }
 0x388   : > { %v2321_v62 = vmul.f32 %v4055_v54, %v2315_v61 }
 0x38a   : > { %2322 = vst.msk [vmem:[#allocation2 + $0x4] sm:$0x3] %vm1637_vm11, %v2321_v62  ;;  %v5304_v63 = vpack.c.bf16 %v2321_v62, %v2321_v62 }
 0x38c   : > { %3552 = vmatmul.msk.bf16.vlgmr.msrb.gmra.mxu0 %vm1193_vm1, %v5304_v63 }
 0x3cd   : > { %v2386_v20 = vpop.permute.xlu1 %2385 }
 0x409   : > { %v2353_v2 = vpop.f32.mrf.mxu0 }
 0x40a   : > { %v2360_v4 = vrot.slane %v2353_v2, 1  ;;  %v2361_v5 = vperm.slane %v2353_v2, 0 }
 0x40c   : > { %v2362_v7 = vperm.slane %v2360_v4, 0  ;;  %v2365_v8 = vadd.f32 %v2361_v5, %v2357_v3 }
 0x40e   : > { %v2366_v9 = vadd.f32 %v2362_v7, %v2358_v6  ;;  %4056 = vtanh.f32 %v2365_v8  ;;  %v2478_v6 = vld [vmem:[#allocation14 + $0x8] sm:$0xff]  ;;  %v2477_v7 = vld [vmem:[#allocation14] sm:$0xff] }
 0x40f   : > { %2519 = vmatpush.msra.mxu2 %v2478_v6  ;;  %2497 = vmatpush.msra.mxu1 %v2477_v7  ;;  %v3727_v8 = vld [vmem:[#allocation26 + $0x8] sm:$0xff] }
 0x410   : > { %4058 = vtanh.f32 %v2366_v9  ;;  %v3726_v9 = vld [vmem:[#allocation26] sm:$0xff] }
 0x411   : > { %v2355_v10 = vpop.f32.mrf.mxu0  ;;  %2593 = vmatpush.bf16.msrb.mxu1 %v3727_v8 }
 0x414   : > { %v4057_v12 = vpop.eup %4056 }
 0x415   : > { %v2373_v13 = vmul.f32 %v4057_v12, %v4004_v11  ;;  %2594 = vmatpush.bf16.msrb.mxu1 %v3726_v9 }
 0x416   : > { %v4059_v15 = vpop.eup %4058 }
 0x417   : > { %v2375_v14 = vsel %vm1193_vm1, %v2373_v13, 0.0  ;;  %v2374_v16 = vmul.f32 %v4059_v15, %v4004_v11  ;;  %v3729_v15 = vld [vmem:[#allocation28 + $0x8] sm:$0xff] }
 0x418   : > { %2376 = vadd.xlane.f32.xlu0 %v2375_v14  ;;  %2568 = vmatpush.bf16.msrb.mxu3 %v3729_v15 }
 0x419   : > { %v2378_v17 = vsel %vm1193_vm1, %v2374_v16, 0.0  ;;  %v3728_v16 = vld [vmem:[#allocation28] sm:$0xff] }
 0x41c   : > { %2569 = vmatpush.bf16.msrb.mxu3 %v3728_v16  ;;  %v4007_v16 = vld [vmem:[%s5566_s16] ss:$0 sm:$0xff] }
 0x420   : > { %2379 = vadd.xlane.f32.xlu0 %v2378_v17 }
 0x48b   : > { %v2377_v18 = vpop.xlane.xlu0 %2376 }
 0x48c   : > { %v2388_v22 = vadd.f32 %v2386_v20, %v2377_v18 }
 0x48e   : > { %v2394_v25 = vperm.slane %v2388_v22, %v5311_v21 }
 0x493   : > { %v2380_v23 = vpop.xlane.xlu0 %2379 }
 0x494   : > { %v2389_v24 = vadd.f32 %v2386_v20, %v2380_v23 }
 0x496   : > { %v2395_v26 = vperm.slane %v2389_v24, %v5311_v21 }
 0x498   : > { %v2397_v27 = vsel %vm2396_vm12, %v2395_v26, %v2394_v25 }
 0x499   : > { %v2400_v28 = vsel %vm2399_vm13, %v2397_v27, -inf }
 0x49a   : > { %2401 = vmax.xlane.f32.xlu1 %v2400_v28 }
 0x50d   : > { %v2402_v29 = vpop.xlane.xlu1 %2401 }
 0x50e   : > { %v2404_v30 = vperm.slane %v2402_v29, 0  ;;  %v2405_v31 = vperm.slane %v2402_v29, 1  ;;  %v3583_v29 = vld [vmem:[%s5562_s10 + $0x10] sm:$0xf] }
 0x510   : > { %v2408_v32 = vsub.f32 %v2388_v22, %v2404_v30  ;;  %v2409_v34 = vsub.f32 %v2389_v24, %v2405_v31  ;;  %v3733_v30 = vld [vmem:[%s5562_s10 + $0x14] sm:$0xf0]  ;;  %v3732_v31 = vld [vmem:[%s5562_s10 + $0x14] sm:$0xf] }
 0x512   : > { %v2410_v33 = vmul.f32 1.442695, %v2408_v32  ;;  %v2412_v35 = vmul.f32 1.442695, %v2409_v34  ;;  %v3584_v32 = vor.u32 %v3733_v30, %v3583_v29 }
 0x514   : > { %4060 = vpow2.f32 %v2410_v33  ;;  %v3585_v33 = vld [vmem:[%s5562_s10 + $0x18] sm:$0xf0]  ;;  %2646 = vmatpush.bf16.msrb.mxu2 %v3584_v32 }
 0x515   : > { %4062 = vpow2.f32 %v2412_v35  ;;  %v3588_v34 = vor.u32 %v3732_v31, %v3585_v33  ;;  %v3575_v35 = vld [vmem:[%s5562_s10] sm:$0xf] }
 0x517   : > { %2659 = vmatpush.bf16.msra.mxu0 %v3588_v34 }
 0x51a   : > { %v4061_v36 = vpop.eup %4060 }
 0x51b   : > { %2417 = vperm.xlu2 %3990, %v4061_v36   ;;  %v4063_v37 = vpop.eup %4062 }
 0x523   : > { %2420 = vperm.xlu2 %3990, %v4063_v37  }
 0x575   : > { %v2418_v38 = vpop.permute.xlu2 %2417 }
 0x576   : > { %v2422_v40 = vperm.slane %v2418_v38, %v5311_v21 }
 0x57d   : > { %v2421_v39 = vpop.permute.xlu2 %2420 }
 0x57e   : > { %v2423_v41 = vperm.slane %v2421_v39, %v5311_v21  ;;  %v3577_v39 = vld [vmem:[%s5562_s10 + $0x8] sm:$0xf0] }
 0x580   : > { %v2424_v42 = vsel %vm2396_vm12, %v2423_v41, %v2422_v40  ;;  %v3749_v41 = vld [vmem:[%s5563_s15 + $0x78] sm:$0xff] }
 0x581   : > { %v2426_v43 = vsel %vm2399_vm13, %v2424_v42, 0.0  ;;  %v3741_v42 = vld [vmem:[%s5563_s15 + $0x38] sm:$0xff] }
 0x582   : > { %2427 = vadd.xlane.f32.xlu0 %v2426_v43  ;;  %v3748_v43 = vld [vmem:[%s5563_s15 + $0x70] sm:$0xff]  ;;  %2802 = vmatpush.bf16.msra.mxu3 %v3741_v42 }
 0x5f5   : > { %v2428_v44 = vpop.xlane.xlu0 %2427 }
 0x5f6   : > { %v2430_v45 = vperm.slane %v2428_v44, 0  ;;  %v2431_v47 = vperm.slane %v2428_v44, 1  ;;  %v3740_v44 = vld [vmem:[%s5563_s15 + $0x30] sm:$0xff] }
 0x5f7   : > { %2803 = vmatpush.bf16.msra.mxu3 %v3740_v44 }
 0x5f8   : > { %4064 = vrcp.f32 %v2430_v45  ;;  %v2445_v53 = vand.u32 2147483648, %v2430_v45  ;;  %v2460_v55 = vand.u32 2147483648, %v2431_v47  ;;  %v2443_v57 = vand.u32 2147483647, %v2430_v45 }
 0x5f9   : > { %4066 = vrcp.f32 %v2431_v47  ;;  %v2458_v59 = vand.u32 2147483647, %v2431_v47  ;;  %vm2439_vm0 = vweird.f32 %v2430_v45  ;;  %vm2454_vm2 = vweird.f32 %v2431_v47 }
 0x5fa   : > { %v2446_v61 = vor.u32 1.1754944e-38, %v2445_v53  ;;  %v2461_v62 = vor.u32 1.1754944e-38, %v2460_v55  ;;  %vm2444_vm5 = vcmp.eq.f32.partialorder %v2443_v57, 8.507059e+37 }
 0x5fb   : > { %vm2459_vm6 = vcmp.eq.f32.partialorder %v2458_v59, 8.507059e+37 }
 0x5fe   : > { %v4065_v48 = vpop.eup %4064 }
 0x5ff   : > { %v4067_v49 = vpop.eup %4066  ;;  %v2435_v46 = vmul.f32 %v4065_v48, %v2430_v45  ;;  %vm2440_vm14 = vweird.f32 %v4065_v48  ;;  %v3747_v45 = vld [vmem:[%s5563_s15 + $0x68] sm:$0xff] }
 0x600   : > { %v2450_v50 = vmul.f32 %v4067_v49, %v2431_v47  ;;  %vm2455_vm15 = vweird.f32 %v4067_v49  ;;  %vm2441_vm3 = vmor %vm2439_vm0, %vm2440_vm14  ;;  %v3739_v47 = vld [vmem:[%s5563_s15 + $0x28] sm:$0xff] }
 0x601   : > { %v2436_v51 = vsub.f32 1.0, %v2435_v46  ;;  %vm2456_vm4 = vmor %vm2454_vm2, %vm2455_vm15  ;;  %2804 = vmatpush.bf16.msra.mxu3 %v3739_v47  ;;  %v3745_v46 = vld [vmem:[%s5563_s15 + $0x58] sm:$0xff] }
 0x602   : > { %v2451_v52 = vsub.f32 1.0, %v2450_v50  ;;  %v3737_v50 = vld [vmem:[%s5563_s15 + $0x18] sm:$0xff] }
 0x603   : > { %v2437_v56 = vmul.f32 %v4065_v48, %v2436_v51  ;;  %v3744_v51 = vld [vmem:[%s5563_s15 + $0x50] sm:$0xff] }
 0x604   : > { %v2452_v58 = vmul.f32 %v4067_v49, %v2451_v52  ;;  %v4006_v52 = vld [vmem:[%s5564_s5] ss:$0 sm:$0xff] }
 0x605   : > { %v2438_v60 = vadd.f32 %v4065_v48, %v2437_v56 }
 0x606   : > { %v2453_v54 = vadd.f32 %v4067_v49, %v2452_v58 }
 0x607   : > { %v2442_v0 = vsel %vm2441_vm3, %v4065_v48, %v2438_v60  ;;  %v3746_v48 = vld [vmem:[%s5563_s15 + $0x60] sm:$0xff]  ;;  %v3743_v60 = vld [vmem:[%s5563_s15 + $0x48] sm:$0xff] }
 0x608   : > { %v2457_v1 = vsel %vm2456_vm4, %v4067_v49, %v2453_v54  ;;  %v2447_v2 = vsel %vm2444_vm5, %v2446_v61, %v2442_v0  ;;  %v3738_v49 = vld [vmem:[%s5563_s15 + $0x20] sm:$0xff]  ;;  %v3736_v54 = vld [vmem:[%s5563_s15 + $0x10] sm:$0xff] }
 0x609   : > { %v2462_v3 = vsel %vm2459_vm6, %v2461_v62, %v2457_v1  ;;  %v2448_v4 = vmul.f32 %v4061_v36, %v2447_v2  ;;  %v3731_v36 = vld [vmem:[%s5562_s10 + $0x4] sm:$0xf0]  ;;  %2805 = vmatpush.bf16.msra.mxu3 %v3738_v49  ;;  %v3742_v61 = vld [vmem:[%s5563_s15 + $0x40] sm:$0xff] }
 0x60a   : > { %v2463_v5 = vmul.f32 %v4063_v37, %v2462_v3  ;;  %v3730_v37 = vld [vmem:[%s5562_s10 + $0x4] sm:$0xf]  ;;  %v3576_v38 = vor.u32 %v3731_v36, %v3575_v35  ;;  %v3735_v62 = vld [vmem:[%s5563_s15 + $0x8] sm:$0xff]  ;;  %v2611_v1 = vld [vmem:[%s5565_s8] sm:$0x3] }
 0x60b   : > { %2467 = vperm.xlu0 %3991, %v2448_v4   ;;  %v3580_v40 = vor.u32 %v3730_v37, %v3577_v39  ;;  %v3734_v0 = vld [vmem:[%s5563_s15] sm:$0xff]  ;;  %v2614_v2 = vperm.slane %v2611_v1, 1  ;;  %v2613_v6 = vperm.slane %v2611_v1, 0 }
 0x60c   : > { %2470 = vperm.xlu2 %3990, %v2463_v5   ;;  %2647 = vmatpush.bf16.msrb.mxu2 %v3576_v38 }
 0x60d   : > { %2660 = vmatpush.bf16.msra.mxu0 %v3580_v40  ;;  %2806 = vmatpush.bf16.msra.mxu3 %v3737_v50 }
 0x611   : > { %2807 = vmatpush.bf16.msra.mxu3 %v3736_v54 }
 0x615   : > { %2808 = vmatpush.bf16.msra.mxu3 %v3735_v62 }
 0x619   : > { %2809 = vmatpush.bf16.msra.mxu3 %v3734_v0 }
 0x666   : > { %v2471_v10 = vpop.permute.xlu2 %2470 }
 0x667   : > { %v2473_v11 = vperm.slane %v2471_v10, %v5311_v21 }
 0x669   : > { %3554 = vmatmul.msk.f32.vlgmr.msra.gmra.mxu2 %vm2479_vm7, %v2473_v11 }
 0x67d   : > { %v2468_v12 = vpop.permute.xlu0 %2467 }
 0x67e   : > { %v2472_v13 = vperm.slane %v2468_v12, %v5311_v21 }
 0x680   : > { %v2474_v14 = vsel %vm2396_vm12, %v2473_v11, %v2472_v13  ;;  %3553 = vmatmul.msk.f32.vlgmr.msra.gmra.mxu1 %vm2479_vm7, %v2472_v13 }
 0x681   : > { %2476 = vst.msk [vmem:[%s1130_s12] sm:$0x3] %vm2399_vm13, %v2474_v14  ;;  %2815 = vmatpush.bf16.msra.mxu1 %v3749_v41 }
 0x685   : > { %2816 = vmatpush.bf16.msra.mxu1 %v3748_v43 }
 0x688   : > { %3572 = vmatmul.msk.bf16.vlgmr.msrb.gmra.mxu1 %vm1193_vm1, %v5304_v63 }
 0x689   : > { %2817 = vmatpush.bf16.msra.mxu1 %v3747_v45 }
 0x68d   : > { %2818 = vmatpush.bf16.msra.mxu1 %v3746_v48 }
 0x691   : > { %2819 = vmatpush.bf16.msra.mxu1 %v3745_v46 }
 0x695   : > { %2820 = vmatpush.bf16.msra.mxu1 %v3744_v51 }
 0x699   : > { %2821 = vmatpush.bf16.msra.mxu1 %v3743_v60 }
 0x69d   : > { %2822 = vmatpush.bf16.msra.mxu1 %v3742_v61 }
 0x6ec   : > { %v2521_v17 = vpop.f32.mrf.mxu2 }
 0x6ed   : > { %v2535_v18 = vpack.c.bf16 %v2521_v17, %v2521_v17  ;;  %v2526_v19 = vrot.slane %v2521_v17, 7 }
 0x6ef   : > { %v2543_v20 = vunpack.c.l.b16 %v2535_v18 }
 0x6f1   : > { %v2544_v63 = vrot.slane %v2543_v20, 7 }
 0x6fd   : > { %v2499_v21 = vpop.f32.mrf.mxu1 }
 0x6fe   : > { %v2527_v22 = vsel %vm2396_vm12, %v2526_v19, %v2499_v21  ;;  %v2534_v23 = vpack.c.bf16 %v2499_v21, %v2499_v21 }
 0x6ff   : > { %2529 = vst.msk [vmem:[#allocation4] sm:$0x3] %vm1637_vm11, %v2527_v22 }
 0x700   : > { %v2542_v24 = vunpack.c.l.b16 %v2534_v23 }
 0x702   : > { %v2545_v25 = vsel %vm2396_vm12, %v2544_v63, %v2542_v24 }
 0x703   : > { %v2546_v26 = vpack.c.b16 %v2545_v25, %v2545_v25 }
 0x705   : > { %3563 = vmatmul.msk.bf16.vlgmr.msrb.gmra.mxu3 %vm1193_vm1, %v2546_v26  ;;  %v2596_v27 = vpop.f32.mrf.mxu1 }
 0x70d   : > { %v2598_v28 = vpop.f32.mrf.mxu1 }
 0x788   : > { %v2571_v53 = vpop.f32.mrf.mxu3 }
 0x789   : > { %v2597_v55 = vadd.f32 %v2596_v27, %v2571_v53 }
 0x78b   : > { %v2604_v56 = vadd.f32 %v4006_v52, %v2597_v55 }
 0x78d   : > { %v2605_v57 = vmax.f32 %v2604_v56, 0.0 }
 0x78f   : > { %v2606_v58 = vpack.c.bf16 %v2605_v57, %v2605_v57 }
 0x790   : > { %v2573_v59 = vpop.f32.mrf.mxu3 }
 0x791   : > { %3589 = vmatmul.msk.bf16.vlgmr.msrb.gmra.mxu2 %vm1193_vm1, %v2606_v58  ;;  %3590 = vmatmul.msk.bf16.vlgmr.msra.gmra.mxu0 %vm1193_vm1, %v2606_v58  ;;  %vm2828_vm1 = vcmask 386048  }
 0x80e   : > { %v2662_v3 = vpop.f32.mrf.mxu0 }
 0x80f   : > { %v2663_v4 = vadd.f32 %v2662_v3, %v2614_v2 }
 0x811   : > { %v2667_v5 = vmax.f32 %v2663_v4, 0.0 }
 0x813   : > { %v2669_v7 = vpack.c.bf16 %v2667_v5, %v2667_v5 }
 0x814   : > { %v2649_v8 = vpop.f32.mrf.mxu2 }
 0x815   : > { %v2650_v9 = vadd.f32 %v2649_v8, %v2613_v6  ;;  %2823 = vmatmul.bf16.vlgmr.msra.gmra.mxu1 %v2669_v7 }
 0x816   : > { %v2664_v10 = vpop.f32.mrf.mxu0 }
 0x817   : > { %v2666_v11 = vmax.f32 %v2650_v9, 0.0 }
 0x819   : > { %v2668_v12 = vpack.c.bf16 %v2666_v11, %v2666_v11 }
 0x81b   : > { %2810 = vmatmul.bf16.vlgmr.msra.gmra.mxu3 %v2668_v12 }
 0x81c   : > { %v2651_v13 = vpop.f32.mrf.mxu2 }
 0x892   : > { %v2824_v14 = vpop.f32.mrf.mxu1 }
 0x89a   : > { %v2826_v15 = vpop.f32.mrf.mxu1 }
 0x89e   : > { %v2811_v17 = vpop.f32.mrf.mxu3 }
 0x89f   : > { %v2812_v18 = vadd.f32 %v4007_v16, %v2811_v17 }
 0x8a1   : > { %v2825_v19 = vadd.f32 %v2824_v14, %v2812_v18 }
 0x8a3   : > { %v2829_v20 = vsel %vm2828_vm1, %v2825_v19, -inf }
 0x8a4   : > { %2830 = vmax.xlane.f32.xlu2 %v2829_v20 }
 0x8a6   : > { %v2813_v21 = vpop.f32.mrf.mxu3 }
 0x917   : > { %v2831_v22 = vpop.xlane.xlu2 %2830 }
 0x918   : > { %v2832_v23 = vsub.f32 %v2825_v19, %v2831_v22 }
 0x91a   : > { %v2833_v63 = vmul.f32 1.442695, %v2832_v23 }
 0x91c   : > { %4068 = vpow2.f32 %v2833_v63 }
 0x922   : > { %v4069_v24 = vpop.eup %4068 }
 0x923   : > { %v2835_v25 = vsel %vm2828_vm1, %v4069_v24, 0.0 }
 0x924   : > { %2836 = vadd.xlane.f32.xlu1 %v2835_v25 }
 0x997   : > { %v2837_v26 = vpop.xlane.xlu1 %2836 }
 0x998   : > { %4070 = vlog2.f32 %v2837_v26 }
 0x99e   : > { %v4071_v27 = vpop.eup %4070 }
 0x99f   : > { %v2839_v28 = vmul.f32 0.6931472, %v4071_v27  ;;  %2845 = sbr.rel (%p3655_p0) target bundleno = 2476 (0x9ac), region = 184 }
 0x9a1   : > { %v2840_v29 = vsub.f32 %v2832_v23, %v2839_v28 }
 0x9a3   : > { %2841 = vst.msk [vmem:[%s5487_s1] sm:$0x3] %vm2828_vm1, %v2840_v29 }
 0x9a4   : > { %v2846_v30 = vld [vmem:[#allocation2] sm:$0x3]  ;;  %v2847_v31 = vld [vmem:[#allocation2 + $0x2] sm:$0x3]  ;;  %v2848_v32 = vld [vmem:[#allocation2 + $0x4] sm:$0x3] }
 0x9a5   : > { %2849 = vst.msk [vmem:[#allocation32] sm:$0x3] %vm1637_vm11, %v2846_v30  ;;  %v2852_v33 = vld [vmem:[#allocation3] sm:$0x3]  ;;  %v2853_v34 = vld [vmem:[#allocation3 + $0x2] sm:$0x3] }
 0x9a6   : > { %2850 = vst.msk [vmem:[#allocation32 + $0x2] sm:$0x3] %vm1637_vm11, %v2847_v31  ;;  %v2854_v35 = vld [vmem:[#allocation3 + $0x4] sm:$0x3]  ;;  %v2858_v36 = vld [vmem:[#allocation4] sm:$0x3] }
 0x9a7   : > { %2851 = vst.msk [vmem:[#allocation32 + $0x4] sm:$0x3] %vm1637_vm11, %v2848_v32 }
 0x9a8   : > { %2855 = vst.msk [vmem:[#allocation33] sm:$0x3] %vm1637_vm11, %v2852_v33 }
 0x9a9   : > { %2856 = vst.msk [vmem:[#allocation33 + $0x2] sm:$0x3] %vm1637_vm11, %v2853_v34 }
 0x9aa   : > { %2857 = vst.msk [vmem:[#allocation33 + $0x4] sm:$0x3] %vm1637_vm11, %v2854_v35 }
 0x9ab   : > { %2859 = vst.msk [vmem:[#allocation35] sm:$0x3] %vm1637_vm11, %v2858_v36 }
 0x9ac PF: > { %s2865_s5 = sand.u32 1, %s4938_s28   ;;  %s5492_s8 = sshll.u32 %s4938_s28, 1 }
 0x9ad   : > { %s2890_s16 = scalar_lea.hbm %s5522_s3, %s5492_s8  ;;  %s2892_s26 = sshll.u32 %s1130_s12, 4  ;;  %s2893_s26 = int_to_ptr.vmem [resolvable:$true] %s2892_s26 }
 0x9ae   : > { %s2894_s1 = sshll.u32 %s2890_s16, 4  ;;  %s2866_s4 = scalar_lea.sflag [#allocation31], %s2865_s5  ;;  %s2895_s1 = int_to_ptr.hbm [resolvable:$true] %s2894_s1 }
 0x9af   : > { %s4488_s7 = sshra.s32 %s2895_s1, 4  ;;  %s4494_s10 = scalar_lea.hbm %s5522_s3, 12  ;;  %s4489_s7 = int_to_ptr.hbm [resolvable:$true] %s4488_s7 }
 0x9b0   : > { %s4490_s9 = scalar_lea.hbm %s4489_s7, 2  ;;  %p4495_p6 = scmp.lt.s32.totalorder %s4489_s7, %s5522_s3 }
 0x9b1   : > { %p4491_p1 = scmp.ne.s32.totalorder %s4489_s7, %s4490_s9  ;;  %p4496_p5 = scmp.lt.s32.totalorder %s4494_s10, %s4490_s9 }
 0x9b3   : > { %p4492_p2 = pnand %p4491_p1, %p4959_p10  ;;  %p4497_p7 = por %p4496_p5, %p4495_p6 }
 0x9b5   : > { %p4493_p4 = pneg %p4492_p2 }
 0x9b7   : > { %p4498_p8 = pnand %p4497_p7, %p4493_p4 }
 0x9b9   : > { %4501 = shalt.err (!%p4498_p8)
}
 0x9ba   : > { %3803 = dma.vmem_to_hbm [thread:$0]  (%p4959_p10), %s2893_s26, 32, %s2895_s1, %s2866_s4  }
 0x9bb   : > { %s2919_s12 = sshll.u32 %s5521_s6, 4  ;;  %s4746_s5 = smov [#allocation33]   ;;  %s2920_s12 = int_to_ptr.hbm [resolvable:$true] %s2919_s12 }
 0x9bc   : > { %s2917_s16 = sshll.u32 %s4746_s5, 4  ;;  %s4516_s8 = sshra.s32 %s2920_s12, 4  ;;  %s2918_s16 = int_to_ptr.vmem [resolvable:$true] %s2917_s16  ;;  %s4517_s8 = int_to_ptr.hbm [resolvable:$true] %s4516_s8 }
 0x9bd   : > { %s4518_s11 = scalar_lea.hbm %s4517_s8, 6  ;;  %p5567_p12 = scmp.eq.s32.totalorder %s4938_s28, 5 }
 0x9be   : > { %p4519_p9 = scmp.ne.s32.totalorder %s4517_s8, %s4518_s11  ;;  %s4522_s9 = scalar_lea.hbm %s5521_s6, 6 }
 0x9bf   : > { %p4523_p0 = scmp.lt.s32.totalorder %s4517_s8, %s5521_s6  ;;  %p4524_p1 = scmp.lt.s32.totalorder %s4522_s9, %s4518_s11 }
 0x9c0   : > { %p4520_p13 = pnand %p4519_p9, %p5567_p12 }
 0x9c1   : > { %p4525_p2 = por %p4524_p1, %p4523_p0 }
 0x9c2   : > { %p4521_p3 = pneg %p4520_p13 }
 0x9c4   : > { %p4526_p4 = pnand %p4525_p2, %p4521_p3 }
 0x9c6   : > { %4529 = shalt.err (!%p4526_p4)
}
 0x9c7   : > { %s4747_s7 = smov 32   ;;  %s5568_s4 = sld [smem:[#allocation65_spill]] }
 0x9c8   : > { %s4748_s26 = smov 2   ;;  %p5569_p6 = pmov %p5567_p12 }
 0x9c9   : > { %s5570_s1 = sshll.u32 %s4938_s28, 1  ;;  %s5571_s10 = scalar_lea.vmem [#allocation29], %s5178_s2 }
 0x9ca   : > { %3807 = dma.vmem_to_hbm [thread:$0]  (%p5569_p6), %s2918_s16, 96, %s2920_s12, [#allocation34], %s4747_s7, %s4747_s7, %s4748_s26  }
 0x9cb   : > { %s2878_s8 = sshll.u32 %s5571_s10, 4  ;;  %s5572_s9 = sand.u32 1, %s4682_s0   ;;  %s2879_s8 = int_to_ptr.vmem [resolvable:$true] %s2878_s8 }
 0x9cc   : > { %s2861_s3 = scalar_lea.sflag [#allocation10], %s5572_s9 }
 0x9cd   : > { %s2876_s11 = scalar_lea.hbm %s5568_s4, %s5570_s1  ;;  %s4550_s14 = scalar_lea.hbm %s5568_s4, 12 }
 0x9ce   : > { %s2880_s5 = sshll.u32 %s2876_s11, 4  ;;  %s2881_s5 = int_to_ptr.hbm [resolvable:$true] %s2880_s5 }
 0x9cf   : > { %s4544_s6 = sshra.s32 %s2881_s5, 4  ;;  %s4545_s6 = int_to_ptr.hbm [resolvable:$true] %s4544_s6 }
 0x9d0   : > { %s4546_s13 = scalar_lea.hbm %s4545_s6, 2  ;;  %p4551_p9 = scmp.lt.s32.totalorder %s4545_s6, %s5568_s4 }
 0x9d1   : > { %p4547_p5 = scmp.ne.s32.totalorder %s4545_s6, %s4546_s13  ;;  %p4552_p12 = scmp.lt.s32.totalorder %s4550_s14, %s4546_s13 }
 0x9d3   : > { %p4548_p7 = pnand %p4547_p5, %p4959_p10  ;;  %p4553_p13 = por %p4552_p12, %p4551_p9 }
 0x9d5   : > { %p4549_p8 = pneg %p4548_p7 }
 0x9d7   : > { %p4554_p3 = pnand %p4553_p13, %p4549_p8 }
 0x9d9   : > { %4557 = shalt.err (!%p4554_p3)
}
 0x9da   : > { %s5573_s2 = sld [smem:[#allocation67_spill]]  ;;  %s4749_s12 = smov [#allocation32]  }
 0x9db   : > { %3802 = dma.vmem_to_hbm [thread:$0]  (%p4959_p10), %s2879_s8, 32, %s2881_s5, %s2861_s3  }
 0x9dc   : > { %s2903_s16 = sshll.u32 %s4749_s12, 4  ;;  %p5574_p1 = pmov %p5569_p6  ;;  %s2904_s16 = int_to_ptr.vmem [resolvable:$true] %s2903_s16 }
 0x9e0   : > { %s2905_s1 = sshll.u32 %s5573_s2, 4  ;;  %s4578_s13 = scalar_lea.hbm %s5573_s2, 6  ;;  %s2906_s1 = int_to_ptr.hbm [resolvable:$true] %s2905_s1 }
 0x9e1   : > { %s4572_s11 = sshra.s32 %s2906_s1, 4  ;;  %s4573_s11 = int_to_ptr.hbm [resolvable:$true] %s4572_s11 }
 0x9e2   : > { %s4574_s10 = scalar_lea.hbm %s4573_s11, 6  ;;  %p4579_p6 = scmp.lt.s32.totalorder %s4573_s11, %s5573_s2 }
 0x9e3   : > { %p4575_p0 = scmp.ne.s32.totalorder %s4573_s11, %s4574_s10  ;;  %p4580_p5 = scmp.lt.s32.totalorder %s4578_s13, %s4574_s10 }
 0x9e5   : > { %p4576_p2 = pnand %p4575_p0, %p5574_p1  ;;  %p4581_p7 = por %p4580_p5, %p4579_p6 }
 0x9e7   : > { %p4577_p4 = pneg %p4576_p2 }
 0x9e9   : > { %p4582_p8 = pnand %p4581_p7, %p4577_p4 }
 0x9eb   : > { %4585 = shalt.err (!%p4582_p8)
}
 0x9ec   : > { %p5575_p10 = pmov %p5574_p1  ;;  %s5576_s3 = sld [smem:[#allocation69_spill]] }
 0x9ed   : > { %s4750_s22 = smov [#allocation35]   ;;  %p5577_p12 = pmov %p5574_p1 }
 0x9ee   : > { %3805 = dma.vmem_to_hbm [thread:$0]  (%p5575_p10), %s2904_s16, 96, %s2906_s1, [#allocation31], %s4747_s7, %s4747_s7, %s4748_s26  }
 0x9ef   : > { %s2932_s14 = sshll.u32 %s4750_s22, 4  ;;  %s2933_s14 = int_to_ptr.vmem [resolvable:$true] %s2932_s14 }
 0x9f2   : > { %s2934_s6 = sshll.u32 %s5576_s3, 4  ;;  %s4606_s9 = scalar_lea.hbm %s5576_s3, 2  ;;  %s2935_s6 = int_to_ptr.hbm [resolvable:$true] %s2934_s6 }
 0x9f3   : > { %s4600_s8 = sshra.s32 %s2935_s6, 4  ;;  %s4601_s8 = int_to_ptr.hbm [resolvable:$true] %s4600_s8 }
 0x9f4   : > { %s4602_s5 = scalar_lea.hbm %s4601_s8, 2  ;;  %p4607_p0 = scmp.lt.s32.totalorder %s4601_s8, %s5576_s3 }
 0x9f5   : > { %p4603_p9 = scmp.ne.s32.totalorder %s4601_s8, %s4602_s5  ;;  %p4608_p1 = scmp.lt.s32.totalorder %s4606_s9, %s4602_s5 }
 0x9f7   : > { %p4604_p13 = pnand %p4603_p9, %p5577_p12  ;;  %p4609_p2 = por %p4608_p1, %p4607_p0 }
 0x9f9   : > { %p4605_p3 = pneg %p4604_p13 }
 0x9fb   : > { %p4610_p4 = pnand %p4609_p2, %p4605_p3 }
 0x9fd   : > { %4613 = shalt.err (!%p4610_p4)
}
 0x9fe   : > { %p5578_p6 = pmov %p5575_p10 }
 0xa00   : > { %3809 = dma.vmem_to_hbm [thread:$0]  (%p5578_p6), %s2933_s14, 32, %s2935_s6, [#allocation34]  }
 0xa01   : > { %p5579_p5 = pmov %p5578_p6 }
 0xa03   : > { %4661 = dma.done.wait (%p5579_p5), [#allocation31], 96   ;;  %p5580_p7 = pmov %p5579_p5 }
 0xa04   : > { %p5581_p8 = pmov %p5579_p5 }
 0xa05   : > { %4663 = vsyncadd (%p5580_p7), [#allocation31], 4294967200 }
 0xa06   : > { %4665 = dma.done.wait (%p5581_p8), [#allocation34], 128   ;;  %p5582_p10 = pmov %p5579_p5 }
 0xa08   : > { %4667 = vsyncadd (%p5582_p10), [#allocation34], 4294967168 }
 0xa09 PF: > { %s5583_s7 = sld [smem:[#allocation72_spill]] }
 0xa0a   : > { %s5584_s26 = sld [smem:[#allocation70_spill]] }
 0xa0f   : > { %p3897_p9 = scmp.ge.s32.totalorder %s5583_s7, 2 }
 0xa10   : > { %s2961_s16 = sand.u32 1, %s5584_s26  }
 0xa11   : > { %p3859_p12 = pnand %p3897_p9, %p4963_p11  ;;  %s2962_s1 = scalar_lea.sflag [#allocation10], %s2961_s16 }
 0xa13   : > { %p3860_p13 = pneg %p3859_p12 }
 0xa15   : > { %4669 = dma.done.wait (%p3860_p13), %s2962_s1, 32  }
 0xa16   : > { %4671 = vsyncadd (%p3860_p13), %s2962_s1, 4294967264  ;;  %s5586_s11 = sadd.s32 4294967294, %s5583_s7  }
 0xa17   : > { %s2971_s10 = sand.u32 1, %s5586_s11  }
 0xa18   : > { %s2972_s13 = scalar_lea.sflag [#allocation31], %s2971_s10 }
 0xa19   : > { %4673 = dma.done.wait (%p3860_p13), %s2972_s13, 32  }
 0xa1a   : > { %4675 = vsyncadd (%p3860_p13), %s2972_s13, 4294967264  ;;  %s5587_s8 = sld [smem:[#allocation73_spill]]  ;;  %s5590_s5 = smov %s4682_s0 }
 0xa1b   : > { %s5588_s28 = sld [smem:[#allocation71_spill]] }
 0xa1c   : > { %s5589_s16 = sld [smem:[#allocation74_spill]] }
 0xa20   : > { %p95_p3 = scmp.ge.s32.totalorder %s5587_s8, 8  }
 0xa21   : > { %s5591_s0 = smov %s5588_s28 }
 0xa22   :  { %97 = sbr.rel (!%p95_p3) target bundleno = 83 (0x53), region = 325 }
 0xa27   :  { %2978 = vsyncpa [#allocation9], 1 }
 0xa28   :  { %2980 = vsyncpa [#allocation9 + $0x1], 1 }
 0xa29   :  { %2981 = vsyncpa [#allocation12], 1 }
 0xa2a   :  { %2982 = vsyncpa [#allocation15], 1 }
 0xa2b   :  { %2983 = vsyncpa [#allocation18], 1 }
 0xa2c   :  { %2984 = vsyncpa [#allocation21], 1 }
 0xa2d   :  { %2985 = vsyncpa [#allocation24], 1 }
 0xa2e   :  { %2986 = vsyncpa [#allocation27], 1 }
 0xa2f   :  { %2987 = vsyncpa [#allocation10], 1 }
 0xa30   :  { %2989 = vsyncpa [#allocation10 + $0x1], 1 }
 0xa31   :  { %2990 = vsyncpa [#allocation31], 1 }
 0xa32   :  { %2992 = vsyncpa [#allocation31 + $0x1], 1 }
 0xa33   :  { %2993 = vsyncpa [#allocation34], 1 }

</bundles_post_ra>
